<compile_context>
chip_gen: v7x
topology: tpu7x:2x2x1
jax: 0.10.0
libtpu: 0.0.40
codegen_flags: <defaults>
</compile_context>

<pallas_src>
import math

import jax
import jax.numpy as jnp
from jax.experimental import pallas as pl
from jax.experimental.pallas import tpu as pltpu

# ---- small, TPU-friendly hyper-parameters (scaled down from d_model=512/nhead=8/ff=2048) ----
D_MODEL = 128
NHEAD = 4
HEAD_DIM = D_MODEL // NHEAD
DIM_FF = 256
N_ENC_LAYERS = 2
N_DEC_LAYERS = 2
VOCAB = 512
SEQ = 8
BATCH = 2
MAX_LEN = 64
LN_EPS = 1e-5                      # PyTorch LayerNorm default
SQRT_D = math.sqrt(D_MODEL)
VEC_W = 3 * D_MODEL                # packed bias / LayerNorm slab width (384)


# ----------------------------- in-kernel helpers -----------------------------
def _layernorm(z, g, b):
    mean = jnp.mean(z, axis=-1, keepdims=True)
    c = z - mean
    var = jnp.mean(c * c, axis=-1, keepdims=True)
    return c * jax.lax.rsqrt(var + LN_EPS) * g + b


def _mha(q2d, k2d, v2d, wo, bo, n, s_q, s_k):
    """Multi-head attention on flattened (n*s, E) slabs.

    The 1/sqrt(head_dim) scale is folded into the Q projection.  Each head's
    output is projected through its 32-row slice of `wo` and accumulated, so the
    only wide tensor produced is the lane-dense (n*s_q, E) result.

    TODO(synk): the reviewer-suggested single (B,H,S,Dh) einsum form needs either a
    two-batch-dim dot_general or a mid-axis 4-D transpose, neither of which lowers
    reliably in Mosaic; the head axis is kept as a Python-unrolled loop (H=4) for
    compile safety — at M=16 tokens the forward is launch/DMA bound anyway.
    """
    q = q2d.reshape(n, s_q, D_MODEL)
    k = k2d.reshape(n, s_k, D_MODEL)
    v = v2d.reshape(n, s_k, D_MODEL)
    proj = None
    for h in range(NHEAD):
        lo, hi = h * HEAD_DIM, (h + 1) * HEAD_DIM
        s = jnp.einsum(
            "bqd,bkd->bqk",
            q[:, :, lo:hi].astype(jnp.bfloat16),
            k[:, :, lo:hi].astype(jnp.bfloat16),
            preferred_element_type=jnp.float32,
        )
        s = s - jnp.max(s, axis=-1, keepdims=True)
        p = jnp.exp(s)
        p = p * pl.reciprocal(jnp.sum(p, axis=-1, keepdims=True), approx=True)
        oh = jnp.einsum(
            "bqk,bkd->bqd",
            p.astype(jnp.bfloat16),
            v[:, :, lo:hi].astype(jnp.bfloat16),
            preferred_element_type=jnp.float32,
        )
        contrib = jnp.dot(
            oh.reshape(n * s_q, HEAD_DIM).astype(jnp.bfloat16),
            wo[lo:hi, :],
            preferred_element_type=jnp.float32,
        )
        proj = contrib if proj is None else proj + contrib
    return proj + bo


# ----------------------------- fused stack kernels -----------------------------
# Encoder packed vec rows: 0: bqkv(384) | 1: [bo|ln1_g|ln1_b] | 2: b1(256) | 3: [b2|ln2_g|ln2_b]
def _enc_stack_kernel(x0_ref, pe_ref, wqkv_ref, wo_ref, w1_ref, w2_ref, vec_ref,
                      o_ref, x_sc):
    l = pl.program_id(0)

    @pl.when(l == 0)
    def _():
        # fused prep: embedding * sqrt(d_model) + positional encoding
        x_sc[...] = x0_ref[...] * SQRT_D + pe_ref[...]

    x = x_sc[...]                                       # (N*S, E) f32 carry
    vec = vec_ref[0]                                    # (8, 384) packed biases / LN params

    qkv = jnp.dot(x.astype(jnp.bfloat16), wqkv_ref[0],
                  preferred_element_type=jnp.float32) + vec[0:1, :]
    attn = _mha(qkv[:, :D_MODEL], qkv[:, D_MODEL:2 * D_MODEL], qkv[:, 2 * D_MODEL:],
                wo_ref[0], vec[1:2, 0:D_MODEL], BATCH, SEQ, SEQ)
    x = _layernorm(x + attn, vec[1:2, D_MODEL:2 * D_MODEL], vec[1:2, 2 * D_MODEL:])

    h = jnp.dot(x.astype(jnp.bfloat16), w1_ref[0],
                preferred_element_type=jnp.float32) + vec[2:3, 0:DIM_FF]
    h = jnp.maximum(h, 0.0)
    ff = jnp.dot(h.astype(jnp.bfloat16), w2_ref[0],
                 preferred_element_type=jnp.float32) + vec[3:4, 0:D_MODEL]
    x = _layernorm(x + ff, vec[3:4, D_MODEL:2 * D_MODEL], vec[3:4, 2 * D_MODEL:])

    x_sc[...] = x

    @pl.when(l == pl.num_programs(0) - 1)
    def _():
        o_ref[...] = x


# Decoder packed vec rows:
#   0: bqkv(384) | 1: [bo|ln1_g|ln1_b] | 2: [cbq|cbk|cbv] | 3: [cbo|ln2_g|ln2_b]
#   4: b1(256)   | 5: [b2|ln3_g|ln3_b]
def _dec_stack_kernel(x0_ref, pe_ref, mem_ref, wqkv_ref, wo_ref, cwq_ref, cwkv_ref,
                      cwo_ref, w1_ref, w2_ref, vec_ref, fcw_ref, fcb_ref,
                      o_ref, x_sc):
    l = pl.program_id(0)

    @pl.when(l == 0)
    def _():
        x_sc[...] = x0_ref[...] * SQRT_D + pe_ref[...]

    x = x_sc[...]                                       # (N*S, E) f32 carry
    m = mem_ref[...]                                    # encoder memory, VMEM resident
    vec = vec_ref[0]                                    # (8, 384)

    # --- self-attention (fused QKV) + add&norm (unmasked; reference passes no masks) ---
    qkv = jnp.dot(x.astype(jnp.bfloat16), wqkv_ref[0],
                  preferred_element_type=jnp.float32) + vec[0:1, :]
    sa = _mha(qkv[:, :D_MODEL], qkv[:, D_MODEL:2 * D_MODEL], qkv[:, 2 * D_MODEL:],
              wo_ref[0], vec[1:2, 0:D_MODEL], BATCH, SEQ, SEQ)
    x = _layernorm(x + sa, vec[1:2, D_MODEL:2 * D_MODEL], vec[1:2, 2 * D_MODEL:])

    # --- cross-attention (fused KV) + add&norm ---
    q = jnp.dot(x.astype(jnp.bfloat16), cwq_ref[0],
                preferred_element_type=jnp.float32) + vec[2:3, 0:D_MODEL]
    kv = jnp.dot(m.astype(jnp.bfloat16), cwkv_ref[0],
                 preferred_element_type=jnp.float32) + vec[2:3, D_MODEL:]
    ca = _mha(q, kv[:, :D_MODEL], kv[:, D_MODEL:],
              cwo_ref[0], vec[3:4, 0:D_MODEL], BATCH, SEQ, SEQ)
    x = _layernorm(x + ca, vec[3:4, D_MODEL:2 * D_MODEL], vec[3:4, 2 * D_MODEL:])

    # --- feed-forward + add&norm ---
    h = jnp.dot(x.astype(jnp.bfloat16), w1_ref[0],
                preferred_element_type=jnp.float32) + vec[4:5, 0:DIM_FF]
    h = jnp.maximum(h, 0.0)
    ff = jnp.dot(h.astype(jnp.bfloat16), w2_ref[0],
                 preferred_element_type=jnp.float32) + vec[5:6, 0:D_MODEL]
    x = _layernorm(x + ff, vec[5:6, D_MODEL:2 * D_MODEL], vec[5:6, 2 * D_MODEL:])

    x_sc[...] = x

    # --- fused final vocab projection, only on the last layer step ---
    @pl.when(l == pl.num_programs(0) - 1)
    def _():
        o_ref[...] = (jnp.dot(x.astype(jnp.bfloat16), fcw_ref[...],
                              preferred_element_type=jnp.float32) + fcb_ref[...])


# ----------------------------- kernel wrappers -----------------------------
def encoder_stack_call(x0, pe, enc):
    M = x0.shape[0]
    grid_spec = pltpu.PrefetchScalarGridSpec(
        num_scalar_prefetch=0,
        grid=(N_ENC_LAYERS,),
        in_specs=[
            pl.BlockSpec((M, D_MODEL), lambda l: (0, 0)),                  # token slab
            pl.BlockSpec((M, D_MODEL), lambda l: (0, 0)),                  # positional enc
            pl.BlockSpec((1, D_MODEL, 3 * D_MODEL), lambda l: (l, 0, 0)),  # wqkv
            pl.BlockSpec((1, D_MODEL, D_MODEL), lambda l: (l, 0, 0)),      # wo
            pl.BlockSpec((1, D_MODEL, DIM_FF), lambda l: (l, 0, 0)),       # w1
            pl.BlockSpec((1, DIM_FF, D_MODEL), lambda l: (l, 0, 0)),       # w2
            pl.BlockSpec((1, 8, VEC_W), lambda l: (l, 0, 0)),              # packed vectors
        ],
        out_specs=pl.BlockSpec((M, D_MODEL), lambda l: (0, 0)),
        scratch_shapes=[pltpu.VMEM((M, D_MODEL), jnp.float32)],            # layer carry
    )
    return pl.pallas_call(
        _enc_stack_kernel,
        out_shape=jax.ShapeDtypeStruct((M, D_MODEL), jnp.float32),
        grid_spec=grid_spec,
        compiler_params=pltpu.CompilerParams(dimension_semantics=("arbitrary",)),
    )(x0, pe, enc["wqkv"], enc["wo"], enc["w1"], enc["w2"], enc["vec"])


def decoder_stack_call(x0, pe, mem, dec, fc_w, fc_b):
    M = x0.shape[0]
    grid_spec = pltpu.PrefetchScalarGridSpec(
        num_scalar_prefetch=0,
        grid=(N_DEC_LAYERS,),
        in_specs=[
            pl.BlockSpec((M, D_MODEL), lambda l: (0, 0)),                  # tgt token slab
            pl.BlockSpec((M, D_MODEL), lambda l: (0, 0)),                  # positional enc
            pl.BlockSpec((M, D_MODEL), lambda l: (0, 0)),                  # encoder memory (resident)
            pl.BlockSpec((1, D_MODEL, 3 * D_MODEL), lambda l: (l, 0, 0)),  # wqkv
            pl.BlockSpec((1, D_MODEL, D_MODEL), lambda l: (l, 0, 0)),      # wo
            pl.BlockSpec((1, D_MODEL, D_MODEL), lambda l: (l, 0, 0)),      # cwq
            pl.BlockSpec((1, D_MODEL, 2 * D_MODEL), lambda l: (l, 0, 0)),  # cwkv
            pl.BlockSpec((1, D_MODEL, D_MODEL), lambda l: (l, 0, 0)),      # cwo
            pl.BlockSpec((1, D_MODEL, DIM_FF), lambda l: (l, 0, 0)),       # w1
            pl.BlockSpec((1, DIM_FF, D_MODEL), lambda l: (l, 0, 0)),       # w2
            pl.BlockSpec((1, 8, VEC_W), lambda l: (l, 0, 0)),              # packed vectors
            pl.BlockSpec((D_MODEL, VOCAB), lambda l: (0, 0)),              # fc weight (resident)
            pl.BlockSpec((1, VOCAB), lambda l: (0, 0)),                    # fc bias
        ],
        out_specs=pl.BlockSpec((M, VOCAB), lambda l: (0, 0)),              # logits (last step)
        scratch_shapes=[pltpu.VMEM((M, D_MODEL), jnp.float32)],            # layer carry
    )
    return pl.pallas_call(
        _dec_stack_kernel,
        out_shape=jax.ShapeDtypeStruct((M, VOCAB), jnp.float32),
        grid_spec=grid_spec,
        compiler_params=pltpu.CompilerParams(dimension_semantics=("arbitrary",)),
    )(x0, pe, mem, dec["wqkv"], dec["wo"], dec["cwq"], dec["cwkv"], dec["cwo"],
      dec["w1"], dec["w2"], dec["vec"], fc_w, fc_b)


# ----------------------------- forward pass -----------------------------
@jax.jit
def transformer_forward(params, src, tgt):
    # NOTE: reference passes no masks, so decoder self-attention is unmasked (as written).
    # TODO(synk): dropout is identity (inference semantics); train-mode dropout not modeled.
    # TODO(synk): embedding-table gather kept in XLA glue (jnp.take); could be pulled into
    #             the stack kernels via scalar-prefetched token ids if it ever matters.
    S, N = src.shape
    M = N * S
    e_src = jnp.take(params["src_emb"], src, axis=0)            # (S, N, E)
    e_tgt = jnp.take(params["tgt_emb"], tgt, axis=0)            # (S, N, E)
    x_src = e_src.transpose(1, 0, 2).reshape(M, D_MODEL)        # batch-major token slabs
    x_tgt = e_tgt.transpose(1, 0, 2).reshape(M, D_MODEL)
    pe_slab = jnp.tile(params["pe"][:S], (N, 1))                # (M, E)

    mem = encoder_stack_call(x_src, pe_slab, params["enc"])                       # 1 launch
    logits = decoder_stack_call(x_tgt, pe_slab, mem, params["dec"],
                                params["fc_w"], params["fc_b"])                   # 1 launch
    return logits.reshape(N, S, VOCAB).transpose(1, 0, 2)       # (S, N, V)


# ----------------------------- parameter init -----------------------------
def init_params(key):
    keys = iter(jax.random.split(key, 256))
    q_scale = 1.0 / math.sqrt(HEAD_DIM)

    def nrm(shape, scale=0.02):
        return (scale * jax.random.normal(next(keys), shape)).astype(jnp.float32)

    ones = lambda: jnp.ones((1, D_MODEL), jnp.float32)
    zeros = lambda: jnp.zeros((1, D_MODEL), jnp.float32)

    def fused_qkv():
        wq, wk, wv = (nrm((D_MODEL, D_MODEL)) for _ in range(3))
        bq, bk, bv = (nrm((1, D_MODEL)) for _ in range(3))
        # fold the 1/sqrt(head_dim) score scale into the Q projection
        return (jnp.concatenate([wq * q_scale, wk, wv], axis=1),
                jnp.concatenate([bq * q_scale, bk, bv], axis=1))

    def enc_layer():
        wqkv, bqkv = fused_qkv()
        wo, bo = nrm((D_MODEL, D_MODEL)), nrm((1, D_MODEL))
        w1, b1 = nrm((D_MODEL, DIM_FF)), nrm((1, DIM_FF))
        w2, b2 = nrm((DIM_FF, D_MODEL)), nrm((1, D_MODEL))
        vec = jnp.zeros((8, VEC_W), jnp.float32)
        vec = vec.at[0:1, :].set(bqkv)
        vec = vec.at[1:2, :].set(jnp.concatenate([bo, ones(), zeros()], axis=1))
        vec = vec.at[2:3, 0:DIM_FF].set(b1)
        vec = vec.at[3:4, :].set(jnp.concatenate([b2, ones(), zeros()], axis=1))
        return dict(wqkv=wqkv, wo=wo, w1=w1, w2=w2, vec=vec)

    def dec_layer():
        wqkv, bqkv = fused_qkv()
        wo, bo = nrm((D_MODEL, D_MODEL)), nrm((1, D_MODEL))
        cwq, cbq = nrm((D_MODEL, D_MODEL)) * q_scale, nrm((1, D_MODEL)) * q_scale
        cwk, cbk = nrm((D_MODEL, D_MODEL)), nrm((1, D_MODEL))
        cwv, cbv = nrm((D_MODEL, D_MODEL)), nrm((1, D_MODEL))
        cwkv = jnp.concatenate([cwk, cwv], axis=1)
        cwo, cbo = nrm((D_MODEL, D_MODEL)), nrm((1, D_MODEL))
        w1, b1 = nrm((D_MODEL, DIM_FF)), nrm((1, DIM_FF))
        w2, b2 = nrm((DIM_FF, D_MODEL)), nrm((1, D_MODEL))
        vec = jnp.zeros((8, VEC_W), jnp.float32)
        vec = vec.at[0:1, :].set(bqkv)
        vec = vec.at[1:2, :].set(jnp.concatenate([bo, ones(), zeros()], axis=1))
        vec = vec.at[2:3, :].set(jnp.concatenate([cbq, cbk, cbv], axis=1))
        vec = vec.at[3:4, :].set(jnp.concatenate([cbo, ones(), zeros()], axis=1))
        vec = vec.at[4:5, 0:DIM_FF].set(b1)
        vec = vec.at[5:6, :].set(jnp.concatenate([b2, ones(), zeros()], axis=1))
        return dict(wqkv=wqkv, wo=wo, cwq=cwq, cwkv=cwkv, cwo=cwo, w1=w1, w2=w2, vec=vec)

    def stack(layers, name, dtype):
        return jnp.stack([lyr[name] for lyr in layers]).astype(dtype)

    enc_layers = [enc_layer() for _ in range(N_ENC_LAYERS)]
    dec_layers = [dec_layer() for _ in range(N_DEC_LAYERS)]

    enc = {k: stack(enc_layers, k, jnp.bfloat16) for k in ("wqkv", "wo", "w1", "w2")}
    enc["vec"] = stack(enc_layers, "vec", jnp.float32)
    dec = {k: stack(dec_layers, k, jnp.bfloat16)
           for k in ("wqkv", "wo", "cwq", "cwkv", "cwo", "w1", "w2")}
    dec["vec"] = stack(dec_layers, "vec", jnp.float32)

    # sinusoidal positional encoding table (MAX_LEN, d_model)
    position = jnp.arange(MAX_LEN, dtype=jnp.float32)[:, None]
    div_term = jnp.exp(
        jnp.arange(0, D_MODEL, 2, dtype=jnp.float32) * (-math.log(10000.0) / D_MODEL)
    )
    pe = jnp.zeros((MAX_LEN, D_MODEL), jnp.float32)
    pe = pe.at[:, 0::2].set(jnp.sin(position * div_term))
    pe = pe.at[:, 1::2].set(jnp.cos(position * div_term))

    return dict(
        src_emb=nrm((VOCAB, D_MODEL), 1.0),
        tgt_emb=nrm((VOCAB, D_MODEL), 1.0),
        pe=pe,
        enc=enc,
        dec=dec,
        fc_w=nrm((D_MODEL, VOCAB)).astype(jnp.bfloat16),
        fc_b=nrm((1, VOCAB)),
    )


if __name__ == "__main__":
    key = jax.random.PRNGKey(0)
    pkey, skey, tkey = jax.random.split(key, 3)
    params = init_params(pkey)
    src = jax.random.randint(skey, (SEQ, BATCH), 0, VOCAB, dtype=jnp.int32)
    tgt = jax.random.randint(tkey, (SEQ, BATCH), 0, VOCAB, dtype=jnp.int32)
    out = transformer_forward(params, src, tgt)
    jax.block_until_ready(out)
    assert out.shape == (SEQ, BATCH, VOCAB) and out.dtype == jnp.float32
    assert bool(jnp.all(jnp.isfinite(out)))
    print("KERNEL_OK")
</pallas_src>

<mosaic_0001>
module attributes {stable_mosaic.version = 11 : i64} {
  func.func @_dec_stack_kernel(%arg0: i32, %arg1: memref<16x128xf32, #tpu.memory_space<vmem>>, %arg2: memref<16x128xf32, #tpu.memory_space<vmem>>, %arg3: memref<16x128xf32, #tpu.memory_space<vmem>>, %arg4: memref<1x128x384xbf16, #tpu.memory_space<vmem>>, %arg5: memref<1x128x128xbf16, #tpu.memory_space<vmem>>, %arg6: memref<1x128x128xbf16, #tpu.memory_space<vmem>>, %arg7: memref<1x128x256xbf16, #tpu.memory_space<vmem>>, %arg8: memref<1x128x128xbf16, #tpu.memory_space<vmem>>, %arg9: memref<1x128x256xbf16, #tpu.memory_space<vmem>>, %arg10: memref<1x256x128xbf16, #tpu.memory_space<vmem>>, %arg11: memref<1x8x384xf32, #tpu.memory_space<vmem>>, %arg12: memref<128x512xbf16, #tpu.memory_space<vmem>>, %arg13: memref<1x512xf32, #tpu.memory_space<vmem>>, %arg14: memref<16x512xf32, #tpu.memory_space<vmem>>, %arg15: memref<16x128xf32, #tpu.memory_space<vmem>>) attributes {dimension_semantics = [#tpu.dimension_semantics<arbitrary>], iteration_bounds = array<i64: 2>, scalar_prefetch = 0 : i64, scratch_operands = 1 : i64, tpu.core_type = #tpu.core_type<tc>, window_params = [{pipeline_mode = #tpu.pipeline_mode<synchronous>, transform_indices = @transform_0, window_bounds = array<i64: 16, 128>}, {pipeline_mode = #tpu.pipeline_mode<synchronous>, transform_indices = @transform_1, window_bounds = array<i64: 16, 128>}, {pipeline_mode = #tpu.pipeline_mode<synchronous>, transform_indices = @transform_2, window_bounds = array<i64: 16, 128>}, {transform_indices = @transform_3, window_bounds = array<i64: 1, 128, 384>}, {transform_indices = @transform_4, window_bounds = array<i64: 1, 128, 128>}, {transform_indices = @transform_5, window_bounds = array<i64: 1, 128, 128>}, {transform_indices = @transform_6, window_bounds = array<i64: 1, 128, 256>}, {transform_indices = @transform_7, window_bounds = array<i64: 1, 128, 128>}, {transform_indices = @transform_8, window_bounds = array<i64: 1, 128, 256>}, {transform_indices = @transform_9, window_bounds = array<i64: 1, 256, 128>}, {transform_indices = @transform_10, window_bounds = array<i64: 1, 8, 384>}, {pipeline_mode = #tpu.pipeline_mode<synchronous>, transform_indices = @transform_11, window_bounds = array<i64: 128, 512>}, {pipeline_mode = #tpu.pipeline_mode<synchronous>, transform_indices = @transform_12, window_bounds = array<i64: 1, 512>}, {pipeline_mode = #tpu.pipeline_mode<synchronous>, transform_indices = @transform_13, window_bounds = array<i64: 16, 512>}]} {
    %c0_i32 = arith.constant 0 : i32
    %0 = arith.cmpi eq, %arg0, %c0_i32 : i32
    %1 = arith.extui %0 : i1 to i32
    %c0_i32_0 = arith.constant 0 : i32
    %2 = arith.cmpi ne, %1, %c0_i32_0 : i32
    scf.if %2 {
      %c0_91 = arith.constant 0 : index
      %c0_92 = arith.constant 0 : index
      %328 = vector.load %arg1[%c0_91, %c0_92] : memref<16x128xf32, #tpu.memory_space<vmem>>, vector<16x128xf32>
      %cst_93 = arith.constant 11.3137083 : f32
      %329 = vector.broadcast %cst_93 : f32 to vector<16x128xf32>
      %330 = arith.mulf %328, %329 : vector<16x128xf32>
      %c0_94 = arith.constant 0 : index
      %c0_95 = arith.constant 0 : index
      %331 = vector.load %arg2[%c0_94, %c0_95] : memref<16x128xf32, #tpu.memory_space<vmem>>, vector<16x128xf32>
      %332 = arith.addf %330, %331 : vector<16x128xf32>
      %c0_96 = arith.constant 0 : index
      %c0_97 = arith.constant 0 : index
      %333 = vector.load %arg15[%c0_96, %c0_97] : memref<16x128xf32, #tpu.memory_space<vmem>>, vector<16x128xf32>
      tpu.vector_store %arg15[%c0_96, %c0_97], %332 {strides = array<i32>} : memref<16x128xf32, #tpu.memory_space<vmem>>, vector<16x128xf32>,
    } else {
    }
    %c0 = arith.constant 0 : index
    %c0_1 = arith.constant 0 : index
    %3 = vector.load %arg15[%c0, %c0_1] : memref<16x128xf32, #tpu.memory_space<vmem>>, vector<16x128xf32>
    %c0_2 = arith.constant 0 : index
    %c0_3 = arith.constant 0 : index
    %4 = vector.load %arg3[%c0_2, %c0_3] : memref<16x128xf32, #tpu.memory_space<vmem>>, vector<16x128xf32>
    %c0_4 = arith.constant 0 : index
    %c0_5 = arith.constant 0 : index
    %c0_6 = arith.constant 0 : index
    %5 = vector.load %arg11[%c0_4, %c0_5, %c0_6] : memref<1x8x384xf32, #tpu.memory_space<vmem>>, vector<1x8x384xf32>
    %6 = vector.shape_cast %5 : vector<1x8x384xf32> to vector<8x384xf32>
    %7 = arith.truncf %3 : vector<16x128xf32> to vector<16x128xbf16>
    %c0_7 = arith.constant 0 : index
    %c0_8 = arith.constant 0 : index
    %c0_9 = arith.constant 0 : index
    %8 = vector.load %arg4[%c0_7, %c0_8, %c0_9] : memref<1x128x384xbf16, #tpu.memory_space<vmem>>, vector<1x128x384xbf16>
    %9 = vector.shape_cast %8 : vector<1x128x384xbf16> to vector<128x384xbf16>
    %cst = arith.constant dense<0.000000e+00> : vector<16x384xf32>
    %10 = tpu.matmul %7, %9, %cst {dimension_numbers = #tpu.dot_dimension_numbers<[1], [0], [0], [1], [0, 0, 1, 1], [], []>} : vector<16x128xbf16>, vector<128x384xbf16>, vector<16x384xf32> -> vector<16x384xf32>
    %11 = vector.extract_strided_slice %6 {offsets = [0, 0], sizes = [1, 384], strides = [1, 1]} : vector<8x384xf32> to vector<1x384xf32>
    %12 = vector.broadcast %11 : vector<1x384xf32> to vector<16x384xf32>
    %13 = arith.addf %10, %12 : vector<16x384xf32>
    %14 = vector.extract_strided_slice %13 {offsets = [0, 0], sizes = [16, 128], strides = [1, 1]} : vector<16x384xf32> to vector<16x128xf32>
    %15 = vector.extract_strided_slice %13 {offsets = [0, 128], sizes = [16, 128], strides = [1, 1]} : vector<16x384xf32> to vector<16x128xf32>
    %16 = vector.extract_strided_slice %13 {offsets = [0, 256], sizes = [16, 128], strides = [1, 1]} : vector<16x384xf32> to vector<16x128xf32>
    %c0_10 = arith.constant 0 : index
    %c0_11 = arith.constant 0 : index
    %c0_12 = arith.constant 0 : index
    %17 = vector.load %arg5[%c0_10, %c0_11, %c0_12] : memref<1x128x128xbf16, #tpu.memory_space<vmem>>, vector<1x128x128xbf16>
    %18 = vector.shape_cast %17 : vector<1x128x128xbf16> to vector<128x128xbf16>
    %19 = vector.extract_strided_slice %6 {offsets = [1, 0], sizes = [1, 128], strides = [1, 1]} : vector<8x384xf32> to vector<1x128xf32>
    %20 = vector.shape_cast %14 : vector<16x128xf32> to vector<2x8x128xf32>
    %21 = vector.shape_cast %15 : vector<16x128xf32> to vector<2x8x128xf32>
    %22 = vector.shape_cast %16 : vector<16x128xf32> to vector<2x8x128xf32>
    %23 = vector.extract_strided_slice %20 {offsets = [0, 0, 0], sizes = [2, 8, 32], strides = [1, 1, 1]} : vector<2x8x128xf32> to vector<2x8x32xf32>
    %24 = arith.truncf %23 : vector<2x8x32xf32> to vector<2x8x32xbf16>
    %25 = vector.extract_strided_slice %21 {offsets = [0, 0, 0], sizes = [2, 8, 32], strides = [1, 1, 1]} : vector<2x8x128xf32> to vector<2x8x32xf32>
    %26 = arith.truncf %25 : vector<2x8x32xf32> to vector<2x8x32xbf16>
    "tpu.trace_start"() <{level = 10 : i32, message = "bqd,bkd->bqk"}> : () -> ()
    %cst_13 = arith.constant dense<0.000000e+00> : vector<2x8x8xf32>
    %27 = tpu.matmul %24, %26, %cst_13 {dimension_numbers = #tpu.dot_dimension_numbers<[2], [2], [1], [1], [0, 0, 0, 1, 1, 1], [0], [0]>} : vector<2x8x32xbf16>, vector<2x8x32xbf16>, vector<2x8x8xf32> -> vector<2x8x8xf32>
    "tpu.trace_stop"() : () -> ()
    %cst_14 = arith.constant dense<0xFF800000> : vector<2x8xf32>
    %28 = vector.multi_reduction <maximumf>, %27, %cst_14 [2] : vector<2x8x8xf32> to vector<2x8xf32>
    %29 = vector.shape_cast %28 : vector<2x8xf32> to vector<2x8x1xf32>
    %30 = vector.broadcast %29 : vector<2x8x1xf32> to vector<2x8x8xf32>
    %31 = arith.subf %27, %30 : vector<2x8x8xf32>
    %32 = math.exp %31 : vector<2x8x8xf32>
    %cst_15 = arith.constant dense<0.000000e+00> : vector<2x8xf32>
    %33 = vector.multi_reduction <add>, %32, %cst_15 [2] : vector<2x8x8xf32> to vector<2x8xf32>
    %34 = vector.shape_cast %33 : vector<2x8xf32> to vector<2x8x1xf32>
    %35 = tpu.reciprocal %34 {approx = true} : vector<2x8x1xf32> -> vector<2x8x1xf32>
    %36 = vector.broadcast %35 : vector<2x8x1xf32> to vector<2x8x8xf32>
    %37 = arith.mulf %32, %36 : vector<2x8x8xf32>
    %38 = arith.truncf %37 : vector<2x8x8xf32> to vector<2x8x8xbf16>
    %39 = vector.extract_strided_slice %22 {offsets = [0, 0, 0], sizes = [2, 8, 32], strides = [1, 1, 1]} : vector<2x8x128xf32> to vector<2x8x32xf32>
    %40 = arith.truncf %39 : vector<2x8x32xf32> to vector<2x8x32xbf16>
    "tpu.trace_start"() <{level = 10 : i32, message = "bqk,bkd->bqd"}> : () -> ()
    %cst_16 = arith.constant dense<0.000000e+00> : vector<2x8x32xf32>
    %41 = tpu.matmul %38, %40, %cst_16 {dimension_numbers = #tpu.dot_dimension_numbers<[2], [1], [1], [2], [0, 0, 0, 1, 1, 2], [0], [0]>} : vector<2x8x8xbf16>, vector<2x8x32xbf16>, vector<2x8x32xf32> -> vector<2x8x32xf32>
    "tpu.trace_stop"() : () -> ()
    %42 = vector.shape_cast %41 : vector<2x8x32xf32> to vector<16x32xf32>
    %43 = arith.truncf %42 : vector<16x32xf32> to vector<16x32xbf16>
    %44 = vector.extract_strided_slice %18 {offsets = [0, 0], sizes = [32, 128], strides = [1, 1]} : vector<128x128xbf16> to vector<32x128xbf16>
    %cst_17 = arith.constant dense<0.000000e+00> : vector<16x128xf32>
    %45 = tpu.matmul %43, %44, %cst_17 {dimension_numbers = #tpu.dot_dimension_numbers<[1], [0], [0], [1], [0, 0, 1, 1], [], []>} : vector<16x32xbf16>, vector<32x128xbf16>, vector<16x128xf32> -> vector<16x128xf32>
    %46 = vector.extract_strided_slice %20 {offsets = [0, 0, 32], sizes = [2, 8, 32], strides = [1, 1, 1]} : vector<2x8x128xf32> to vector<2x8x32xf32>
    %47 = arith.truncf %46 : vector<2x8x32xf32> to vector<2x8x32xbf16>
    %48 = vector.extract_strided_slice %21 {offsets = [0, 0, 32], sizes = [2, 8, 32], strides = [1, 1, 1]} : vector<2x8x128xf32> to vector<2x8x32xf32>
    %49 = arith.truncf %48 : vector<2x8x32xf32> to vector<2x8x32xbf16>
    "tpu.trace_start"() <{level = 10 : i32, message = "bqd,bkd->bqk"}> : () -> ()
    %cst_18 = arith.constant dense<0.000000e+00> : vector<2x8x8xf32>
    %50 = tpu.matmul %47, %49, %cst_18 {dimension_numbers = #tpu.dot_dimension_numbers<[2], [2], [1], [1], [0, 0, 0, 1, 1, 1], [0], [0]>} : vector<2x8x32xbf16>, vector<2x8x32xbf16>, vector<2x8x8xf32> -> vector<2x8x8xf32>
    "tpu.trace_stop"() : () -> ()
    %cst_19 = arith.constant dense<0xFF800000> : vector<2x8xf32>
    %51 = vector.multi_reduction <maximumf>, %50, %cst_19 [2] : vector<2x8x8xf32> to vector<2x8xf32>
    %52 = vector.shape_cast %51 : vector<2x8xf32> to vector<2x8x1xf32>
    %53 = vector.broadcast %52 : vector<2x8x1xf32> to vector<2x8x8xf32>
    %54 = arith.subf %50, %53 : vector<2x8x8xf32>
    %55 = math.exp %54 : vector<2x8x8xf32>
    %cst_20 = arith.constant dense<0.000000e+00> : vector<2x8xf32>
    %56 = vector.multi_reduction <add>, %55, %cst_20 [2] : vector<2x8x8xf32> to vector<2x8xf32>
    %57 = vector.shape_cast %56 : vector<2x8xf32> to vector<2x8x1xf32>
    %58 = tpu.reciprocal %57 {approx = true} : vector<2x8x1xf32> -> vector<2x8x1xf32>
    %59 = vector.broadcast %58 : vector<2x8x1xf32> to vector<2x8x8xf32>
    %60 = arith.mulf %55, %59 : vector<2x8x8xf32>
    %61 = arith.truncf %60 : vector<2x8x8xf32> to vector<2x8x8xbf16>
    %62 = vector.extract_strided_slice %22 {offsets = [0, 0, 32], sizes = [2, 8, 32], strides = [1, 1, 1]} : vector<2x8x128xf32> to vector<2x8x32xf32>
    %63 = arith.truncf %62 : vector<2x8x32xf32> to vector<2x8x32xbf16>
    "tpu.trace_start"() <{level = 10 : i32, message = "bqk,bkd->bqd"}> : () -> ()
    %cst_21 = arith.constant dense<0.000000e+00> : vector<2x8x32xf32>
    %64 = tpu.matmul %61, %63, %cst_21 {dimension_numbers = #tpu.dot_dimension_numbers<[2], [1], [1], [2], [0, 0, 0, 1, 1, 2], [0], [0]>} : vector<2x8x8xbf16>, vector<2x8x32xbf16>, vector<2x8x32xf32> -> vector<2x8x32xf32>
    "tpu.trace_stop"() : () -> ()
    %65 = vector.shape_cast %64 : vector<2x8x32xf32> to vector<16x32xf32>
    %66 = arith.truncf %65 : vector<16x32xf32> to vector<16x32xbf16>
    %67 = vector.extract_strided_slice %18 {offsets = [32, 0], sizes = [32, 128], strides = [1, 1]} : vector<128x128xbf16> to vector<32x128xbf16>
    %cst_22 = arith.constant dense<0.000000e+00> : vector<16x128xf32>
    %68 = tpu.matmul %66, %67, %cst_22 {dimension_numbers = #tpu.dot_dimension_numbers<[1], [0], [0], [1], [0, 0, 1, 1], [], []>} : vector<16x32xbf16>, vector<32x128xbf16>, vector<16x128xf32> -> vector<16x128xf32>
    %69 = arith.addf %45, %68 : vector<16x128xf32>
    %70 = vector.extract_strided_slice %20 {offsets = [0, 0, 64], sizes = [2, 8, 32], strides = [1, 1, 1]} : vector<2x8x128xf32> to vector<2x8x32xf32>
    %71 = arith.truncf %70 : vector<2x8x32xf32> to vector<2x8x32xbf16>
    %72 = vector.extract_strided_slice %21 {offsets = [0, 0, 64], sizes = [2, 8, 32], strides = [1, 1, 1]} : vector<2x8x128xf32> to vector<2x8x32xf32>
    %73 = arith.truncf %72 : vector<2x8x32xf32> to vector<2x8x32xbf16>
    "tpu.trace_start"() <{level = 10 : i32, message = "bqd,bkd->bqk"}> : () -> ()
    %cst_23 = arith.constant dense<0.000000e+00> : vector<2x8x8xf32>
    %74 = tpu.matmul %71, %73, %cst_23 {dimension_numbers = #tpu.dot_dimension_numbers<[2], [2], [1], [1], [0, 0, 0, 1, 1, 1], [0], [0]>} : vector<2x8x32xbf16>, vector<2x8x32xbf16>, vector<2x8x8xf32> -> vector<2x8x8xf32>
    "tpu.trace_stop"() : () -> ()
    %cst_24 = arith.constant dense<0xFF800000> : vector<2x8xf32>
    %75 = vector.multi_reduction <maximumf>, %74, %cst_24 [2] : vector<2x8x8xf32> to vector<2x8xf32>
    %76 = vector.shape_cast %75 : vector<2x8xf32> to vector<2x8x1xf32>
    %77 = vector.broadcast %76 : vector<2x8x1xf32> to vector<2x8x8xf32>
    %78 = arith.subf %74, %77 : vector<2x8x8xf32>
    %79 = math.exp %78 : vector<2x8x8xf32>
    %cst_25 = arith.constant dense<0.000000e+00> : vector<2x8xf32>
    %80 = vector.multi_reduction <add>, %79, %cst_25 [2] : vector<2x8x8xf32> to vector<2x8xf32>
    %81 = vector.shape_cast %80 : vector<2x8xf32> to vector<2x8x1xf32>
    %82 = tpu.reciprocal %81 {approx = true} : vector<2x8x1xf32> -> vector<2x8x1xf32>
    %83 = vector.broadcast %82 : vector<2x8x1xf32> to vector<2x8x8xf32>
    %84 = arith.mulf %79, %83 : vector<2x8x8xf32>
    %85 = arith.truncf %84 : vector<2x8x8xf32> to vector<2x8x8xbf16>
    %86 = vector.extract_strided_slice %22 {offsets = [0, 0, 64], sizes = [2, 8, 32], strides = [1, 1, 1]} : vector<2x8x128xf32> to vector<2x8x32xf32>
    %87 = arith.truncf %86 : vector<2x8x32xf32> to vector<2x8x32xbf16>
    "tpu.trace_start"() <{level = 10 : i32, message = "bqk,bkd->bqd"}> : () -> ()
    %cst_26 = arith.constant dense<0.000000e+00> : vector<2x8x32xf32>
    %88 = tpu.matmul %85, %87, %cst_26 {dimension_numbers = #tpu.dot_dimension_numbers<[2], [1], [1], [2], [0, 0, 0, 1, 1, 2], [0], [0]>} : vector<2x8x8xbf16>, vector<2x8x32xbf16>, vector<2x8x32xf32> -> vector<2x8x32xf32>
    "tpu.trace_stop"() : () -> ()
    %89 = vector.shape_cast %88 : vector<2x8x32xf32> to vector<16x32xf32>
    %90 = arith.truncf %89 : vector<16x32xf32> to vector<16x32xbf16>
    %91 = vector.extract_strided_slice %18 {offsets = [64, 0], sizes = [32, 128], strides = [1, 1]} : vector<128x128xbf16> to vector<32x128xbf16>
    %cst_27 = arith.constant dense<0.000000e+00> : vector<16x128xf32>
    %92 = tpu.matmul %90, %91, %cst_27 {dimension_numbers = #tpu.dot_dimension_numbers<[1], [0], [0], [1], [0, 0, 1, 1], [], []>} : vector<16x32xbf16>, vector<32x128xbf16>, vector<16x128xf32> -> vector<16x128xf32>
    %93 = arith.addf %69, %92 : vector<16x128xf32>
    %94 = vector.extract_strided_slice %20 {offsets = [0, 0, 96], sizes = [2, 8, 32], strides = [1, 1, 1]} : vector<2x8x128xf32> to vector<2x8x32xf32>
    %95 = arith.truncf %94 : vector<2x8x32xf32> to vector<2x8x32xbf16>
    %96 = vector.extract_strided_slice %21 {offsets = [0, 0, 96], sizes = [2, 8, 32], strides = [1, 1, 1]} : vector<2x8x128xf32> to vector<2x8x32xf32>
    %97 = arith.truncf %96 : vector<2x8x32xf32> to vector<2x8x32xbf16>
    "tpu.trace_start"() <{level = 10 : i32, message = "bqd,bkd->bqk"}> : () -> ()
    %cst_28 = arith.constant dense<0.000000e+00> : vector<2x8x8xf32>
    %98 = tpu.matmul %95, %97, %cst_28 {dimension_numbers = #tpu.dot_dimension_numbers<[2], [2], [1], [1], [0, 0, 0, 1, 1, 1], [0], [0]>} : vector<2x8x32xbf16>, vector<2x8x32xbf16>, vector<2x8x8xf32> -> vector<2x8x8xf32>
    "tpu.trace_stop"() : () -> ()
    %cst_29 = arith.constant dense<0xFF800000> : vector<2x8xf32>
    %99 = vector.multi_reduction <maximumf>, %98, %cst_29 [2] : vector<2x8x8xf32> to vector<2x8xf32>
    %100 = vector.shape_cast %99 : vector<2x8xf32> to vector<2x8x1xf32>
    %101 = vector.broadcast %100 : vector<2x8x1xf32> to vector<2x8x8xf32>
    %102 = arith.subf %98, %101 : vector<2x8x8xf32>
    %103 = math.exp %102 : vector<2x8x8xf32>
    %cst_30 = arith.constant dense<0.000000e+00> : vector<2x8xf32>
    %104 = vector.multi_reduction <add>, %103, %cst_30 [2] : vector<2x8x8xf32> to vector<2x8xf32>
    %105 = vector.shape_cast %104 : vector<2x8xf32> to vector<2x8x1xf32>
    %106 = tpu.reciprocal %105 {approx = true} : vector<2x8x1xf32> -> vector<2x8x1xf32>
    %107 = vector.broadcast %106 : vector<2x8x1xf32> to vector<2x8x8xf32>
    %108 = arith.mulf %103, %107 : vector<2x8x8xf32>
    %109 = arith.truncf %108 : vector<2x8x8xf32> to vector<2x8x8xbf16>
    %110 = vector.extract_strided_slice %22 {offsets = [0, 0, 96], sizes = [2, 8, 32], strides = [1, 1, 1]} : vector<2x8x128xf32> to vector<2x8x32xf32>
    %111 = arith.truncf %110 : vector<2x8x32xf32> to vector<2x8x32xbf16>
    "tpu.trace_start"() <{level = 10 : i32, message = "bqk,bkd->bqd"}> : () -> ()
    %cst_31 = arith.constant dense<0.000000e+00> : vector<2x8x32xf32>
    %112 = tpu.matmul %109, %111, %cst_31 {dimension_numbers = #tpu.dot_dimension_numbers<[2], [1], [1], [2], [0, 0, 0, 1, 1, 2], [0], [0]>} : vector<2x8x8xbf16>, vector<2x8x32xbf16>, vector<2x8x32xf32> -> vector<2x8x32xf32>
    "tpu.trace_stop"() : () -> ()
    %113 = vector.shape_cast %112 : vector<2x8x32xf32> to vector<16x32xf32>
    %114 = arith.truncf %113 : vector<16x32xf32> to vector<16x32xbf16>
    %115 = vector.extract_strided_slice %18 {offsets = [96, 0], sizes = [32, 128], strides = [1, 1]} : vector<128x128xbf16> to vector<32x128xbf16>
    %cst_32 = arith.constant dense<0.000000e+00> : vector<16x128xf32>
    %116 = tpu.matmul %114, %115, %cst_32 {dimension_numbers = #tpu.dot_dimension_numbers<[1], [0], [0], [1], [0, 0, 1, 1], [], []>} : vector<16x32xbf16>, vector<32x128xbf16>, vector<16x128xf32> -> vector<16x128xf32>
    %117 = arith.addf %93, %116 : vector<16x128xf32>
    %118 = vector.broadcast %19 : vector<1x128xf32> to vector<16x128xf32>
    %119 = arith.addf %117, %118 : vector<16x128xf32>
    %120 = arith.addf %3, %119 : vector<16x128xf32>
    %121 = vector.extract_strided_slice %6 {offsets = [1, 128], sizes = [1, 128], strides = [1, 1]} : vector<8x384xf32> to vector<1x128xf32>
    %122 = vector.extract_strided_slice %6 {offsets = [1, 256], sizes = [1, 128], strides = [1, 1]} : vector<8x384xf32> to vector<1x128xf32>
    %cst_33 = arith.constant dense<0.000000e+00> : vector<16xf32>
    %123 = vector.multi_reduction <add>, %120, %cst_33 [1] : vector<16x128xf32> to vector<16xf32>
    %124 = vector.shape_cast %123 : vector<16xf32> to vector<16x1xf32>
    %cst_34 = arith.constant 1.280000e+02 : f32
    %125 = vector.broadcast %cst_34 : f32 to vector<16x1xf32>
    %126 = arith.divf %124, %125 : vector<16x1xf32>
    %127 = vector.broadcast %126 : vector<16x1xf32> to vector<16x128xf32>
    %128 = arith.subf %120, %127 : vector<16x128xf32>
    %129 = arith.mulf %128, %128 : vector<16x128xf32>
    %cst_35 = arith.constant dense<0.000000e+00> : vector<16xf32>
    %130 = vector.multi_reduction <add>, %129, %cst_35 [1] : vector<16x128xf32> to vector<16xf32>
    %131 = vector.shape_cast %130 : vector<16xf32> to vector<16x1xf32>
    %cst_36 = arith.constant 1.280000e+02 : f32
    %132 = vector.broadcast %cst_36 : f32 to vector<16x1xf32>
    %133 = arith.divf %131, %132 : vector<16x1xf32>
    %cst_37 = arith.constant 9.99999974E-6 : f32
    %134 = vector.broadcast %cst_37 : f32 to vector<16x1xf32>
    %135 = arith.addf %133, %134 : vector<16x1xf32>
    %136 = math.rsqrt %135 : vector<16x1xf32>
    %137 = vector.broadcast %136 : vector<16x1xf32> to vector<16x128xf32>
    %138 = arith.mulf %128, %137 : vector<16x128xf32>
    %139 = vector.broadcast %121 : vector<1x128xf32> to vector<16x128xf32>
    %140 = arith.mulf %138, %139 : vector<16x128xf32>
    %141 = vector.broadcast %122 : vector<1x128xf32> to vector<16x128xf32>
    %142 = arith.addf %140, %141 : vector<16x128xf32>
    %143 = arith.truncf %142 : vector<16x128xf32> to vector<16x128xbf16>
    %c0_38 = arith.constant 0 : index
    %c0_39 = arith.constant 0 : index
    %c0_40 = arith.constant 0 : index
    %144 = vector.load %arg6[%c0_38, %c0_39, %c0_40] : memref<1x128x128xbf16, #tpu.memory_space<vmem>>, vector<1x128x128xbf16>
    %145 = vector.shape_cast %144 : vector<1x128x128xbf16> to vector<128x128xbf16>
    %cst_41 = arith.constant dense<0.000000e+00> : vector<16x128xf32>
    %146 = tpu.matmul %143, %145, %cst_41 {dimension_numbers = #tpu.dot_dimension_numbers<[1], [0], [0], [1], [0, 0, 1, 1], [], []>} : vector<16x128xbf16>, vector<128x128xbf16>, vector<16x128xf32> -> vector<16x128xf32>
    %147 = vector.extract_strided_slice %6 {offsets = [2, 0], sizes = [1, 128], strides = [1, 1]} : vector<8x384xf32> to vector<1x128xf32>
    %148 = vector.broadcast %147 : vector<1x128xf32> to vector<16x128xf32>
    %149 = arith.addf %146, %148 : vector<16x128xf32>
    %150 = arith.truncf %4 : vector<16x128xf32> to vector<16x128xbf16>
    %c0_42 = arith.constant 0 : index
    %c0_43 = arith.constant 0 : index
    %c0_44 = arith.constant 0 : index
    %151 = vector.load %arg7[%c0_42, %c0_43, %c0_44] : memref<1x128x256xbf16, #tpu.memory_space<vmem>>, vector<1x128x256xbf16>
    %152 = vector.shape_cast %151 : vector<1x128x256xbf16> to vector<128x256xbf16>
    %cst_45 = arith.constant dense<0.000000e+00> : vector<16x256xf32>
    %153 = tpu.matmul %150, %152, %cst_45 {dimension_numbers = #tpu.dot_dimension_numbers<[1], [0], [0], [1], [0, 0, 1, 1], [], []>} : vector<16x128xbf16>, vector<128x256xbf16>, vector<16x256xf32> -> vector<16x256xf32>
    %154 = vector.extract_strided_slice %6 {offsets = [2, 128], sizes = [1, 256], strides = [1, 1]} : vector<8x384xf32> to vector<1x256xf32>
    %155 = vector.broadcast %154 : vector<1x256xf32> to vector<16x256xf32>
    %156 = arith.addf %153, %155 : vector<16x256xf32>
    %157 = vector.extract_strided_slice %156 {offsets = [0, 0], sizes = [16, 128], strides = [1, 1]} : vector<16x256xf32> to vector<16x128xf32>
    %158 = vector.extract_strided_slice %156 {offsets = [0, 128], sizes = [16, 128], strides = [1, 1]} : vector<16x256xf32> to vector<16x128xf32>
    %c0_46 = arith.constant 0 : index
    %c0_47 = arith.constant 0 : index
    %c0_48 = arith.constant 0 : index
    %159 = vector.load %arg8[%c0_46, %c0_47, %c0_48] : memref<1x128x128xbf16, #tpu.memory_space<vmem>>, vector<1x128x128xbf16>
    %160 = vector.shape_cast %159 : vector<1x128x128xbf16> to vector<128x128xbf16>
    %161 = vector.extract_strided_slice %6 {offsets = [3, 0], sizes = [1, 128], strides = [1, 1]} : vector<8x384xf32> to vector<1x128xf32>
    %162 = vector.shape_cast %149 : vector<16x128xf32> to vector<2x8x128xf32>
    %163 = vector.shape_cast %157 : vector<16x128xf32> to vector<2x8x128xf32>
    %164 = vector.shape_cast %158 : vector<16x128xf32> to vector<2x8x128xf32>
    %165 = vector.extract_strided_slice %162 {offsets = [0, 0, 0], sizes = [2, 8, 32], strides = [1, 1, 1]} : vector<2x8x128xf32> to vector<2x8x32xf32>
    %166 = arith.truncf %165 : vector<2x8x32xf32> to vector<2x8x32xbf16>
    %167 = vector.extract_strided_slice %163 {offsets = [0, 0, 0], sizes = [2, 8, 32], strides = [1, 1, 1]} : vector<2x8x128xf32> to vector<2x8x32xf32>
    %168 = arith.truncf %167 : vector<2x8x32xf32> to vector<2x8x32xbf16>
    "tpu.trace_start"() <{level = 10 : i32, message = "bqd,bkd->bqk"}> : () -> ()
    %cst_49 = arith.constant dense<0.000000e+00> : vector<2x8x8xf32>
    %169 = tpu.matmul %166, %168, %cst_49 {dimension_numbers = #tpu.dot_dimension_numbers<[2], [2], [1], [1], [0, 0, 0, 1, 1, 1], [0], [0]>} : vector<2x8x32xbf16>, vector<2x8x32xbf16>, vector<2x8x8xf32> -> vector<2x8x8xf32>
    "tpu.trace_stop"() : () -> ()
    %cst_50 = arith.constant dense<0xFF800000> : vector<2x8xf32>
    %170 = vector.multi_reduction <maximumf>, %169, %cst_50 [2] : vector<2x8x8xf32> to vector<2x8xf32>
    %171 = vector.shape_cast %170 : vector<2x8xf32> to vector<2x8x1xf32>
    %172 = vector.broadcast %171 : vector<2x8x1xf32> to vector<2x8x8xf32>
    %173 = arith.subf %169, %172 : vector<2x8x8xf32>
    %174 = math.exp %173 : vector<2x8x8xf32>
    %cst_51 = arith.constant dense<0.000000e+00> : vector<2x8xf32>
    %175 = vector.multi_reduction <add>, %174, %cst_51 [2] : vector<2x8x8xf32> to vector<2x8xf32>
    %176 = vector.shape_cast %175 : vector<2x8xf32> to vector<2x8x1xf32>
    %177 = tpu.reciprocal %176 {approx = true} : vector<2x8x1xf32> -> vector<2x8x1xf32>
    %178 = vector.broadcast %177 : vector<2x8x1xf32> to vector<2x8x8xf32>
    %179 = arith.mulf %174, %178 : vector<2x8x8xf32>
    %180 = arith.truncf %179 : vector<2x8x8xf32> to vector<2x8x8xbf16>
    %181 = vector.extract_strided_slice %164 {offsets = [0, 0, 0], sizes = [2, 8, 32], strides = [1, 1, 1]} : vector<2x8x128xf32> to vector<2x8x32xf32>
    %182 = arith.truncf %181 : vector<2x8x32xf32> to vector<2x8x32xbf16>
    "tpu.trace_start"() <{level = 10 : i32, message = "bqk,bkd->bqd"}> : () -> ()
    %cst_52 = arith.constant dense<0.000000e+00> : vector<2x8x32xf32>
    %183 = tpu.matmul %180, %182, %cst_52 {dimension_numbers = #tpu.dot_dimension_numbers<[2], [1], [1], [2], [0, 0, 0, 1, 1, 2], [0], [0]>} : vector<2x8x8xbf16>, vector<2x8x32xbf16>, vector<2x8x32xf32> -> vector<2x8x32xf32>
    "tpu.trace_stop"() : () -> ()
    %184 = vector.shape_cast %183 : vector<2x8x32xf32> to vector<16x32xf32>
    %185 = arith.truncf %184 : vector<16x32xf32> to vector<16x32xbf16>
    %186 = vector.extract_strided_slice %160 {offsets = [0, 0], sizes = [32, 128], strides = [1, 1]} : vector<128x128xbf16> to vector<32x128xbf16>
    %cst_53 = arith.constant dense<0.000000e+00> : vector<16x128xf32>
    %187 = tpu.matmul %185, %186, %cst_53 {dimension_numbers = #tpu.dot_dimension_numbers<[1], [0], [0], [1], [0, 0, 1, 1], [], []>} : vector<16x32xbf16>, vector<32x128xbf16>, vector<16x128xf32> -> vector<16x128xf32>
    %188 = vector.extract_strided_slice %162 {offsets = [0, 0, 32], sizes = [2, 8, 32], strides = [1, 1, 1]} : vector<2x8x128xf32> to vector<2x8x32xf32>
    %189 = arith.truncf %188 : vector<2x8x32xf32> to vector<2x8x32xbf16>
    %190 = vector.extract_strided_slice %163 {offsets = [0, 0, 32], sizes = [2, 8, 32], strides = [1, 1, 1]} : vector<2x8x128xf32> to vector<2x8x32xf32>
    %191 = arith.truncf %190 : vector<2x8x32xf32> to vector<2x8x32xbf16>
    "tpu.trace_start"() <{level = 10 : i32, message = "bqd,bkd->bqk"}> : () -> ()
    %cst_54 = arith.constant dense<0.000000e+00> : vector<2x8x8xf32>
    %192 = tpu.matmul %189, %191, %cst_54 {dimension_numbers = #tpu.dot_dimension_numbers<[2], [2], [1], [1], [0, 0, 0, 1, 1, 1], [0], [0]>} : vector<2x8x32xbf16>, vector<2x8x32xbf16>, vector<2x8x8xf32> -> vector<2x8x8xf32>
    "tpu.trace_stop"() : () -> ()
    %cst_55 = arith.constant dense<0xFF800000> : vector<2x8xf32>
    %193 = vector.multi_reduction <maximumf>, %192, %cst_55 [2] : vector<2x8x8xf32> to vector<2x8xf32>
    %194 = vector.shape_cast %193 : vector<2x8xf32> to vector<2x8x1xf32>
    %195 = vector.broadcast %194 : vector<2x8x1xf32> to vector<2x8x8xf32>
    %196 = arith.subf %192, %195 : vector<2x8x8xf32>
    %197 = math.exp %196 : vector<2x8x8xf32>
    %cst_56 = arith.constant dense<0.000000e+00> : vector<2x8xf32>
    %198 = vector.multi_reduction <add>, %197, %cst_56 [2] : vector<2x8x8xf32> to vector<2x8xf32>
    %199 = vector.shape_cast %198 : vector<2x8xf32> to vector<2x8x1xf32>
    %200 = tpu.reciprocal %199 {approx = true} : vector<2x8x1xf32> -> vector<2x8x1xf32>
    %201 = vector.broadcast %200 : vector<2x8x1xf32> to vector<2x8x8xf32>
    %202 = arith.mulf %197, %201 : vector<2x8x8xf32>
    %203 = arith.truncf %202 : vector<2x8x8xf32> to vector<2x8x8xbf16>
    %204 = vector.extract_strided_slice %164 {offsets = [0, 0, 32], sizes = [2, 8, 32], strides = [1, 1, 1]} : vector<2x8x128xf32> to vector<2x8x32xf32>
    %205 = arith.truncf %204 : vector<2x8x32xf32> to vector<2x8x32xbf16>
    "tpu.trace_start"() <{level = 10 : i32, message = "bqk,bkd->bqd"}> : () -> ()
    %cst_57 = arith.constant dense<0.000000e+00> : vector<2x8x32xf32>
    %206 = tpu.matmul %203, %205, %cst_57 {dimension_numbers = #tpu.dot_dimension_numbers<[2], [1], [1], [2], [0, 0, 0, 1, 1, 2], [0], [0]>} : vector<2x8x8xbf16>, vector<2x8x32xbf16>, vector<2x8x32xf32> -> vector<2x8x32xf32>
    "tpu.trace_stop"() : () -> ()
    %207 = vector.shape_cast %206 : vector<2x8x32xf32> to vector<16x32xf32>
    %208 = arith.truncf %207 : vector<16x32xf32> to vector<16x32xbf16>
    %209 = vector.extract_strided_slice %160 {offsets = [32, 0], sizes = [32, 128], strides = [1, 1]} : vector<128x128xbf16> to vector<32x128xbf16>
    %cst_58 = arith.constant dense<0.000000e+00> : vector<16x128xf32>
    %210 = tpu.matmul %208, %209, %cst_58 {dimension_numbers = #tpu.dot_dimension_numbers<[1], [0], [0], [1], [0, 0, 1, 1], [], []>} : vector<16x32xbf16>, vector<32x128xbf16>, vector<16x128xf32> -> vector<16x128xf32>
    %211 = arith.addf %187, %210 : vector<16x128xf32>
    %212 = vector.extract_strided_slice %162 {offsets = [0, 0, 64], sizes = [2, 8, 32], strides = [1, 1, 1]} : vector<2x8x128xf32> to vector<2x8x32xf32>
    %213 = arith.truncf %212 : vector<2x8x32xf32> to vector<2x8x32xbf16>
    %214 = vector.extract_strided_slice %163 {offsets = [0, 0, 64], sizes = [2, 8, 32], strides = [1, 1, 1]} : vector<2x8x128xf32> to vector<2x8x32xf32>
    %215 = arith.truncf %214 : vector<2x8x32xf32> to vector<2x8x32xbf16>
    "tpu.trace_start"() <{level = 10 : i32, message = "bqd,bkd->bqk"}> : () -> ()
    %cst_59 = arith.constant dense<0.000000e+00> : vector<2x8x8xf32>
    %216 = tpu.matmul %213, %215, %cst_59 {dimension_numbers = #tpu.dot_dimension_numbers<[2], [2], [1], [1], [0, 0, 0, 1, 1, 1], [0], [0]>} : vector<2x8x32xbf16>, vector<2x8x32xbf16>, vector<2x8x8xf32> -> vector<2x8x8xf32>
    "tpu.trace_stop"() : () -> ()
    %cst_60 = arith.constant dense<0xFF800000> : vector<2x8xf32>
    %217 = vector.multi_reduction <maximumf>, %216, %cst_60 [2] : vector<2x8x8xf32> to vector<2x8xf32>
    %218 = vector.shape_cast %217 : vector<2x8xf32> to vector<2x8x1xf32>
    %219 = vector.broadcast %218 : vector<2x8x1xf32> to vector<2x8x8xf32>
    %220 = arith.subf %216, %219 : vector<2x8x8xf32>
    %221 = math.exp %220 : vector<2x8x8xf32>
    %cst_61 = arith.constant dense<0.000000e+00> : vector<2x8xf32>
    %222 = vector.multi_reduction <add>, %221, %cst_61 [2] : vector<2x8x8xf32> to vector<2x8xf32>
    %223 = vector.shape_cast %222 : vector<2x8xf32> to vector<2x8x1xf32>
    %224 = tpu.reciprocal %223 {approx = true} : vector<2x8x1xf32> -> vector<2x8x1xf32>
    %225 = vector.broadcast %224 : vector<2x8x1xf32> to vector<2x8x8xf32>
    %226 = arith.mulf %221, %225 : vector<2x8x8xf32>
    %227 = arith.truncf %226 : vector<2x8x8xf32> to vector<2x8x8xbf16>
    %228 = vector.extract_strided_slice %164 {offsets = [0, 0, 64], sizes = [2, 8, 32], strides = [1, 1, 1]} : vector<2x8x128xf32> to vector<2x8x32xf32>
    %229 = arith.truncf %228 : vector<2x8x32xf32> to vector<2x8x32xbf16>
    "tpu.trace_start"() <{level = 10 : i32, message = "bqk,bkd->bqd"}> : () -> ()
    %cst_62 = arith.constant dense<0.000000e+00> : vector<2x8x32xf32>
    %230 = tpu.matmul %227, %229, %cst_62 {dimension_numbers = #tpu.dot_dimension_numbers<[2], [1], [1], [2], [0, 0, 0, 1, 1, 2], [0], [0]>} : vector<2x8x8xbf16>, vector<2x8x32xbf16>, vector<2x8x32xf32> -> vector<2x8x32xf32>
    "tpu.trace_stop"() : () -> ()
    %231 = vector.shape_cast %230 : vector<2x8x32xf32> to vector<16x32xf32>
    %232 = arith.truncf %231 : vector<16x32xf32> to vector<16x32xbf16>
    %233 = vector.extract_strided_slice %160 {offsets = [64, 0], sizes = [32, 128], strides = [1, 1]} : vector<128x128xbf16> to vector<32x128xbf16>
    %cst_63 = arith.constant dense<0.000000e+00> : vector<16x128xf32>
    %234 = tpu.matmul %232, %233, %cst_63 {dimension_numbers = #tpu.dot_dimension_numbers<[1], [0], [0], [1], [0, 0, 1, 1], [], []>} : vector<16x32xbf16>, vector<32x128xbf16>, vector<16x128xf32> -> vector<16x128xf32>
    %235 = arith.addf %211, %234 : vector<16x128xf32>
    %236 = vector.extract_strided_slice %162 {offsets = [0, 0, 96], sizes = [2, 8, 32], strides = [1, 1, 1]} : vector<2x8x128xf32> to vector<2x8x32xf32>
    %237 = arith.truncf %236 : vector<2x8x32xf32> to vector<2x8x32xbf16>
    %238 = vector.extract_strided_slice %163 {offsets = [0, 0, 96], sizes = [2, 8, 32], strides = [1, 1, 1]} : vector<2x8x128xf32> to vector<2x8x32xf32>
    %239 = arith.truncf %238 : vector<2x8x32xf32> to vector<2x8x32xbf16>
    "tpu.trace_start"() <{level = 10 : i32, message = "bqd,bkd->bqk"}> : () -> ()
    %cst_64 = arith.constant dense<0.000000e+00> : vector<2x8x8xf32>
    %240 = tpu.matmul %237, %239, %cst_64 {dimension_numbers = #tpu.dot_dimension_numbers<[2], [2], [1], [1], [0, 0, 0, 1, 1, 1], [0], [0]>} : vector<2x8x32xbf16>, vector<2x8x32xbf16>, vector<2x8x8xf32> -> vector<2x8x8xf32>
    "tpu.trace_stop"() : () -> ()
    %cst_65 = arith.constant dense<0xFF800000> : vector<2x8xf32>
    %241 = vector.multi_reduction <maximumf>, %240, %cst_65 [2] : vector<2x8x8xf32> to vector<2x8xf32>
    %242 = vector.shape_cast %241 : vector<2x8xf32> to vector<2x8x1xf32>
    %243 = vector.broadcast %242 : vector<2x8x1xf32> to vector<2x8x8xf32>
    %244 = arith.subf %240, %243 : vector<2x8x8xf32>
    %245 = math.exp %244 : vector<2x8x8xf32>
    %cst_66 = arith.constant dense<0.000000e+00> : vector<2x8xf32>
    %246 = vector.multi_reduction <add>, %245, %cst_66 [2] : vector<2x8x8xf32> to vector<2x8xf32>
    %247 = vector.shape_cast %246 : vector<2x8xf32> to vector<2x8x1xf32>
    %248 = tpu.reciprocal %247 {approx = true} : vector<2x8x1xf32> -> vector<2x8x1xf32>
    %249 = vector.broadcast %248 : vector<2x8x1xf32> to vector<2x8x8xf32>
    %250 = arith.mulf %245, %249 : vector<2x8x8xf32>
    %251 = arith.truncf %250 : vector<2x8x8xf32> to vector<2x8x8xbf16>
    %252 = vector.extract_strided_slice %164 {offsets = [0, 0, 96], sizes = [2, 8, 32], strides = [1, 1, 1]} : vector<2x8x128xf32> to vector<2x8x32xf32>
    %253 = arith.truncf %252 : vector<2x8x32xf32> to vector<2x8x32xbf16>
    "tpu.trace_start"() <{level = 10 : i32, message = "bqk,bkd->bqd"}> : () -> ()
    %cst_67 = arith.constant dense<0.000000e+00> : vector<2x8x32xf32>
    %254 = tpu.matmul %251, %253, %cst_67 {dimension_numbers = #tpu.dot_dimension_numbers<[2], [1], [1], [2], [0, 0, 0, 1, 1, 2], [0], [0]>} : vector<2x8x8xbf16>, vector<2x8x32xbf16>, vector<2x8x32xf32> -> vector<2x8x32xf32>
    "tpu.trace_stop"() : () -> ()
    %255 = vector.shape_cast %254 : vector<2x8x32xf32> to vector<16x32xf32>
    %256 = arith.truncf %255 : vector<16x32xf32> to vector<16x32xbf16>
    %257 = vector.extract_strided_slice %160 {offsets = [96, 0], sizes = [32, 128], strides = [1, 1]} : vector<128x128xbf16> to vector<32x128xbf16>
    %cst_68 = arith.constant dense<0.000000e+00> : vector<16x128xf32>
    %258 = tpu.matmul %256, %257, %cst_68 {dimension_numbers = #tpu.dot_dimension_numbers<[1], [0], [0], [1], [0, 0, 1, 1], [], []>} : vector<16x32xbf16>, vector<32x128xbf16>, vector<16x128xf32> -> vector<16x128xf32>
    %259 = arith.addf %235, %258 : vector<16x128xf32>
    %260 = vector.broadcast %161 : vector<1x128xf32> to vector<16x128xf32>
    %261 = arith.addf %259, %260 : vector<16x128xf32>
    %262 = arith.addf %142, %261 : vector<16x128xf32>
    %263 = vector.extract_strided_slice %6 {offsets = [3, 128], sizes = [1, 128], strides = [1, 1]} : vector<8x384xf32> to vector<1x128xf32>
    %264 = vector.extract_strided_slice %6 {offsets = [3, 256], sizes = [1, 128], strides = [1, 1]} : vector<8x384xf32> to vector<1x128xf32>
    %cst_69 = arith.constant dense<0.000000e+00> : vector<16xf32>
    %265 = vector.multi_reduction <add>, %262, %cst_69 [1] : vector<16x128xf32> to vector<16xf32>
    %266 = vector.shape_cast %265 : vector<16xf32> to vector<16x1xf32>
    %cst_70 = arith.constant 1.280000e+02 : f32
    %267 = vector.broadcast %cst_70 : f32 to vector<16x1xf32>
    %268 = arith.divf %266, %267 : vector<16x1xf32>
    %269 = vector.broadcast %268 : vector<16x1xf32> to vector<16x128xf32>
    %270 = arith.subf %262, %269 : vector<16x128xf32>
    %271 = arith.mulf %270, %270 : vector<16x128xf32>
    %cst_71 = arith.constant dense<0.000000e+00> : vector<16xf32>
    %272 = vector.multi_reduction <add>, %271, %cst_71 [1] : vector<16x128xf32> to vector<16xf32>
    %273 = vector.shape_cast %272 : vector<16xf32> to vector<16x1xf32>
    %cst_72 = arith.constant 1.280000e+02 : f32
    %274 = vector.broadcast %cst_72 : f32 to vector<16x1xf32>
    %275 = arith.divf %273, %274 : vector<16x1xf32>
    %cst_73 = arith.constant 9.99999974E-6 : f32
    %276 = vector.broadcast %cst_73 : f32 to vector<16x1xf32>
    %277 = arith.addf %275, %276 : vector<16x1xf32>
    %278 = math.rsqrt %277 : vector<16x1xf32>
    %279 = vector.broadcast %278 : vector<16x1xf32> to vector<16x128xf32>
    %280 = arith.mulf %270, %279 : vector<16x128xf32>
    %281 = vector.broadcast %263 : vector<1x128xf32> to vector<16x128xf32>
    %282 = arith.mulf %280, %281 : vector<16x128xf32>
    %283 = vector.broadcast %264 : vector<1x128xf32> to vector<16x128xf32>
    %284 = arith.addf %282, %283 : vector<16x128xf32>
    %285 = arith.truncf %284 : vector<16x128xf32> to vector<16x128xbf16>
    %c0_74 = arith.constant 0 : index
    %c0_75 = arith.constant 0 : index
    %c0_76 = arith.constant 0 : index
    %286 = vector.load %arg9[%c0_74, %c0_75, %c0_76] : memref<1x128x256xbf16, #tpu.memory_space<vmem>>, vector<1x128x256xbf16>
    %287 = vector.shape_cast %286 : vector<1x128x256xbf16> to vector<128x256xbf16>
    %cst_77 = arith.constant dense<0.000000e+00> : vector<16x256xf32>
    %288 = tpu.matmul %285, %287, %cst_77 {dimension_numbers = #tpu.dot_dimension_numbers<[1], [0], [0], [1], [0, 0, 1, 1], [], []>} : vector<16x128xbf16>, vector<128x256xbf16>, vector<16x256xf32> -> vector<16x256xf32>
    %289 = vector.extract_strided_slice %6 {offsets = [4, 0], sizes = [1, 256], strides = [1, 1]} : vector<8x384xf32> to vector<1x256xf32>
    %290 = vector.broadcast %289 : vector<1x256xf32> to vector<16x256xf32>
    %291 = arith.addf %288, %290 : vector<16x256xf32>
    %cst_78 = arith.constant 0.000000e+00 : f32
    %292 = vector.broadcast %cst_78 : f32 to vector<16x256xf32>
    %293 = arith.maximumf %291, %292 : vector<16x256xf32>
    %294 = arith.truncf %293 : vector<16x256xf32> to vector<16x256xbf16>
    %c0_79 = arith.constant 0 : index
    %c0_80 = arith.constant 0 : index
    %c0_81 = arith.constant 0 : index
    %295 = vector.load %arg10[%c0_79, %c0_80, %c0_81] : memref<1x256x128xbf16, #tpu.memory_space<vmem>>, vector<1x256x128xbf16>
    %296 = vector.shape_cast %295 : vector<1x256x128xbf16> to vector<256x128xbf16>
    %cst_82 = arith.constant dense<0.000000e+00> : vector<16x128xf32>
    %297 = tpu.matmul %294, %296, %cst_82 {dimension_numbers = #tpu.dot_dimension_numbers<[1], [0], [0], [1], [0, 0, 1, 1], [], []>} : vector<16x256xbf16>, vector<256x128xbf16>, vector<16x128xf32> -> vector<16x128xf32>
    %298 = vector.extract_strided_slice %6 {offsets = [5, 0], sizes = [1, 128], strides = [1, 1]} : vector<8x384xf32> to vector<1x128xf32>
    %299 = vector.broadcast %298 : vector<1x128xf32> to vector<16x128xf32>
    %300 = arith.addf %297, %299 : vector<16x128xf32>
    %301 = arith.addf %284, %300 : vector<16x128xf32>
    %302 = vector.extract_strided_slice %6 {offsets = [5, 128], sizes = [1, 128], strides = [1, 1]} : vector<8x384xf32> to vector<1x128xf32>
    %303 = vector.extract_strided_slice %6 {offsets = [5, 256], sizes = [1, 128], strides = [1, 1]} : vector<8x384xf32> to vector<1x128xf32>
    %cst_83 = arith.constant dense<0.000000e+00> : vector<16xf32>
    %304 = vector.multi_reduction <add>, %301, %cst_83 [1] : vector<16x128xf32> to vector<16xf32>
    %305 = vector.shape_cast %304 : vector<16xf32> to vector<16x1xf32>
    %cst_84 = arith.constant 1.280000e+02 : f32
    %306 = vector.broadcast %cst_84 : f32 to vector<16x1xf32>
    %307 = arith.divf %305, %306 : vector<16x1xf32>
    %308 = vector.broadcast %307 : vector<16x1xf32> to vector<16x128xf32>
    %309 = arith.subf %301, %308 : vector<16x128xf32>
    %310 = arith.mulf %309, %309 : vector<16x128xf32>
    %cst_85 = arith.constant dense<0.000000e+00> : vector<16xf32>
    %311 = vector.multi_reduction <add>, %310, %cst_85 [1] : vector<16x128xf32> to vector<16xf32>
    %312 = vector.shape_cast %311 : vector<16xf32> to vector<16x1xf32>
    %cst_86 = arith.constant 1.280000e+02 : f32
    %313 = vector.broadcast %cst_86 : f32 to vector<16x1xf32>
    %314 = arith.divf %312, %313 : vector<16x1xf32>
    %cst_87 = arith.constant 9.99999974E-6 : f32
    %315 = vector.broadcast %cst_87 : f32 to vector<16x1xf32>
    %316 = arith.addf %314, %315 : vector<16x1xf32>
    %317 = math.rsqrt %316 : vector<16x1xf32>
    %318 = vector.broadcast %317 : vector<16x1xf32> to vector<16x128xf32>
    %319 = arith.mulf %309, %318 : vector<16x128xf32>
    %320 = vector.broadcast %302 : vector<1x128xf32> to vector<16x128xf32>
    %321 = arith.mulf %319, %320 : vector<16x128xf32>
    %322 = vector.broadcast %303 : vector<1x128xf32> to vector<16x128xf32>
    %323 = arith.addf %321, %322 : vector<16x128xf32>
    %c0_88 = arith.constant 0 : index
    %c0_89 = arith.constant 0 : index
    %324 = vector.load %arg15[%c0_88, %c0_89] : memref<16x128xf32, #tpu.memory_space<vmem>>, vector<16x128xf32>
    tpu.vector_store %arg15[%c0_88, %c0_89], %323 {strides = array<i32>} : memref<16x128xf32, #tpu.memory_space<vmem>>, vector<16x128xf32>,
    %c1_i32 = arith.constant 1 : i32
    %325 = arith.cmpi eq, %arg0, %c1_i32 : i32
    %326 = arith.extui %325 : i1 to i32
    %c0_i32_90 = arith.constant 0 : i32
    %327 = arith.cmpi ne, %326, %c0_i32_90 : i32
    scf.if %327 {
      %328 = arith.truncf %323 : vector<16x128xf32> to vector<16x128xbf16>
      %c0_91 = arith.constant 0 : index
      %c0_92 = arith.constant 0 : index
      %329 = vector.load %arg12[%c0_91, %c0_92] : memref<128x512xbf16, #tpu.memory_space<vmem>>, vector<128x512xbf16>
      %cst_93 = arith.constant dense<0.000000e+00> : vector<16x512xf32>
      %330 = tpu.matmul %328, %329, %cst_93 {dimension_numbers = #tpu.dot_dimension_numbers<[1], [0], [0], [1], [0, 0, 1, 1], [], []>} : vector<16x128xbf16>, vector<128x512xbf16>, vector<16x512xf32> -> vector<16x512xf32>
      %c0_94 = arith.constant 0 : index
      %c0_95 = arith.constant 0 : index
      %331 = vector.load %arg13[%c0_94, %c0_95] : memref<1x512xf32, #tpu.memory_space<vmem>>, vector<1x512xf32>
      %332 = vector.broadcast %331 : vector<1x512xf32> to vector<16x512xf32>
      %333 = arith.addf %330, %332 : vector<16x512xf32>
      %c0_96 = arith.constant 0 : index
      %c0_97 = arith.constant 0 : index
      %334 = vector.load %arg14[%c0_96, %c0_97] : memref<16x512xf32, #tpu.memory_space<vmem>>, vector<16x512xf32>
      tpu.vector_store %arg14[%c0_96, %c0_97], %333 {strides = array<i32>} : memref<16x512xf32, #tpu.memory_space<vmem>>, vector<16x512xf32>,
    } else {
    }
    return
  }
  func.func @transform_0(%arg0: i32) -> (i32, i32) {
    %c0_i32 = arith.constant 0 : i32
    %c0_i32_0 = arith.constant 0 : i32
    %c0_i32_1 = arith.constant 0 : i32
    return %c0_i32, %c0_i32_0 : i32, i32
  }
  func.func @transform_1(%arg0: i32) -> (i32, i32) {
    %c0_i32 = arith.constant 0 : i32
    %c0_i32_0 = arith.constant 0 : i32
    %c0_i32_1 = arith.constant 0 : i32
    return %c0_i32, %c0_i32_0 : i32, i32
  }
  func.func @transform_2(%arg0: i32) -> (i32, i32) {
    %c0_i32 = arith.constant 0 : i32
    %c0_i32_0 = arith.constant 0 : i32
    %c0_i32_1 = arith.constant 0 : i32
    return %c0_i32, %c0_i32_0 : i32, i32
  }
  func.func @transform_3(%arg0: i32) -> (i32, i32, i32) {
    %c0_i32 = arith.constant 0 : i32
    %c0_i32_0 = arith.constant 0 : i32
    %c0_i32_1 = arith.constant 0 : i32
    return %arg0, %c0_i32, %c0_i32_0 : i32, i32, i32
  }
  func.func @transform_4(%arg0: i32) -> (i32, i32, i32) {
    %c0_i32 = arith.constant 0 : i32
    %c0_i32_0 = arith.constant 0 : i32
    %c0_i32_1 = arith.constant 0 : i32
    return %arg0, %c0_i32, %c0_i32_0 : i32, i32, i32
  }
  func.func @transform_5(%arg0: i32) -> (i32, i32, i32) {
    %c0_i32 = arith.constant 0 : i32
    %c0_i32_0 = arith.constant 0 : i32
    %c0_i32_1 = arith.constant 0 : i32
    return %arg0, %c0_i32, %c0_i32_0 : i32, i32, i32
  }
  func.func @transform_6(%arg0: i32) -> (i32, i32, i32) {
    %c0_i32 = arith.constant 0 : i32
    %c0_i32_0 = arith.constant 0 : i32
    %c0_i32_1 = arith.constant 0 : i32
    return %arg0, %c0_i32, %c0_i32_0 : i32, i32, i32
  }
  func.func @transform_7(%arg0: i32) -> (i32, i32, i32) {
    %c0_i32 = arith.constant 0 : i32
    %c0_i32_0 = arith.constant 0 : i32
    %c0_i32_1 = arith.constant 0 : i32
    return %arg0, %c0_i32, %c0_i32_0 : i32, i32, i32
  }
  func.func @transform_8(%arg0: i32) -> (i32, i32, i32) {
    %c0_i32 = arith.constant 0 : i32
    %c0_i32_0 = arith.constant 0 : i32
    %c0_i32_1 = arith.constant 0 : i32
    return %arg0, %c0_i32, %c0_i32_0 : i32, i32, i32
  }
  func.func @transform_9(%arg0: i32) -> (i32, i32, i32) {
    %c0_i32 = arith.constant 0 : i32
    %c0_i32_0 = arith.constant 0 : i32
    %c0_i32_1 = arith.constant 0 : i32
    return %arg0, %c0_i32, %c0_i32_0 : i32, i32, i32
  }
  func.func @transform_10(%arg0: i32) -> (i32, i32, i32) {
    %c0_i32 = arith.constant 0 : i32
    %c0_i32_0 = arith.constant 0 : i32
    %c0_i32_1 = arith.constant 0 : i32
    return %arg0, %c0_i32, %c0_i32_0 : i32, i32, i32
  }
  func.func @transform_11(%arg0: i32) -> (i32, i32) {
    %c0_i32 = arith.constant 0 : i32
    %c0_i32_0 = arith.constant 0 : i32
    %c0_i32_1 = arith.constant 0 : i32
    return %c0_i32, %c0_i32_0 : i32, i32
  }
  func.func @transform_12(%arg0: i32) -> (i32, i32) {
    %c0_i32 = arith.constant 0 : i32
    %c0_i32_0 = arith.constant 0 : i32
    %c0_i32_1 = arith.constant 0 : i32
    return %c0_i32, %c0_i32_0 : i32, i32
  }
  func.func @transform_13(%arg0: i32) -> (i32, i32) {
    %c0_i32 = arith.constant 0 : i32
    %c0_i32_0 = arith.constant 0 : i32
    %c0_i32_1 = arith.constant 0 : i32
    return %c0_i32, %c0_i32_0 : i32, i32
  }
}

module attributes {stable_mosaic.version = 11 : i64} {
  func.func @_enc_stack_kernel(%arg0: i32, %arg1: memref<16x128xf32, #tpu.memory_space<vmem>>, %arg2: memref<16x128xf32, #tpu.memory_space<vmem>>, %arg3: memref<1x128x384xbf16, #tpu.memory_space<vmem>>, %arg4: memref<1x128x128xbf16, #tpu.memory_space<vmem>>, %arg5: memref<1x128x256xbf16, #tpu.memory_space<vmem>>, %arg6: memref<1x256x128xbf16, #tpu.memory_space<vmem>>, %arg7: memref<1x8x384xf32, #tpu.memory_space<vmem>>, %arg8: memref<16x128xf32, #tpu.memory_space<vmem>>, %arg9: memref<16x128xf32, #tpu.memory_space<vmem>>) attributes {dimension_semantics = [#tpu.dimension_semantics<arbitrary>], iteration_bounds = array<i64: 2>, scalar_prefetch = 0 : i64, scratch_operands = 1 : i64, tpu.core_type = #tpu.core_type<tc>, window_params = [{pipeline_mode = #tpu.pipeline_mode<synchronous>, transform_indices = @transform_0, window_bounds = array<i64: 16, 128>}, {pipeline_mode = #tpu.pipeline_mode<synchronous>, transform_indices = @transform_1, window_bounds = array<i64: 16, 128>}, {transform_indices = @transform_2, window_bounds = array<i64: 1, 128, 384>}, {transform_indices = @transform_3, window_bounds = array<i64: 1, 128, 128>}, {transform_indices = @transform_4, window_bounds = array<i64: 1, 128, 256>}, {transform_indices = @transform_5, window_bounds = array<i64: 1, 256, 128>}, {transform_indices = @transform_6, window_bounds = array<i64: 1, 8, 384>}, {pipeline_mode = #tpu.pipeline_mode<synchronous>, transform_indices = @transform_7, window_bounds = array<i64: 16, 128>}]} {
    %c0_i32 = arith.constant 0 : i32
    %0 = arith.cmpi eq, %arg0, %c0_i32 : i32
    %1 = arith.extui %0 : i1 to i32
    %c0_i32_0 = arith.constant 0 : i32
    %2 = arith.cmpi ne, %1, %c0_i32_0 : i32
    scf.if %2 {
      %c0_53 = arith.constant 0 : index
      %c0_54 = arith.constant 0 : index
      %185 = vector.load %arg1[%c0_53, %c0_54] : memref<16x128xf32, #tpu.memory_space<vmem>>, vector<16x128xf32>
      %cst_55 = arith.constant 11.3137083 : f32
      %186 = vector.broadcast %cst_55 : f32 to vector<16x128xf32>
      %187 = arith.mulf %185, %186 : vector<16x128xf32>
      %c0_56 = arith.constant 0 : index
      %c0_57 = arith.constant 0 : index
      %188 = vector.load %arg2[%c0_56, %c0_57] : memref<16x128xf32, #tpu.memory_space<vmem>>, vector<16x128xf32>
      %189 = arith.addf %187, %188 : vector<16x128xf32>
      %c0_58 = arith.constant 0 : index
      %c0_59 = arith.constant 0 : index
      %190 = vector.load %arg9[%c0_58, %c0_59] : memref<16x128xf32, #tpu.memory_space<vmem>>, vector<16x128xf32>
      tpu.vector_store %arg9[%c0_58, %c0_59], %189 {strides = array<i32>} : memref<16x128xf32, #tpu.memory_space<vmem>>, vector<16x128xf32>,
    } else {
    }
    %c0 = arith.constant 0 : index
    %c0_1 = arith.constant 0 : index
    %3 = vector.load %arg9[%c0, %c0_1] : memref<16x128xf32, #tpu.memory_space<vmem>>, vector<16x128xf32>
    %c0_2 = arith.constant 0 : index
    %c0_3 = arith.constant 0 : index
    %c0_4 = arith.constant 0 : index
    %4 = vector.load %arg7[%c0_2, %c0_3, %c0_4] : memref<1x8x384xf32, #tpu.memory_space<vmem>>, vector<1x8x384xf32>
    %5 = vector.shape_cast %4 : vector<1x8x384xf32> to vector<8x384xf32>
    %6 = arith.truncf %3 : vector<16x128xf32> to vector<16x128xbf16>
    %c0_5 = arith.constant 0 : index
    %c0_6 = arith.constant 0 : index
    %c0_7 = arith.constant 0 : index
    %7 = vector.load %arg3[%c0_5, %c0_6, %c0_7] : memref<1x128x384xbf16, #tpu.memory_space<vmem>>, vector<1x128x384xbf16>
    %8 = vector.shape_cast %7 : vector<1x128x384xbf16> to vector<128x384xbf16>
    %cst = arith.constant dense<0.000000e+00> : vector<16x384xf32>
    %9 = tpu.matmul %6, %8, %cst {dimension_numbers = #tpu.dot_dimension_numbers<[1], [0], [0], [1], [0, 0, 1, 1], [], []>} : vector<16x128xbf16>, vector<128x384xbf16>, vector<16x384xf32> -> vector<16x384xf32>
    %10 = vector.extract_strided_slice %5 {offsets = [0, 0], sizes = [1, 384], strides = [1, 1]} : vector<8x384xf32> to vector<1x384xf32>
    %11 = vector.broadcast %10 : vector<1x384xf32> to vector<16x384xf32>
    %12 = arith.addf %9, %11 : vector<16x384xf32>
    %13 = vector.extract_strided_slice %12 {offsets = [0, 0], sizes = [16, 128], strides = [1, 1]} : vector<16x384xf32> to vector<16x128xf32>
    %14 = vector.extract_strided_slice %12 {offsets = [0, 128], sizes = [16, 128], strides = [1, 1]} : vector<16x384xf32> to vector<16x128xf32>
    %15 = vector.extract_strided_slice %12 {offsets = [0, 256], sizes = [16, 128], strides = [1, 1]} : vector<16x384xf32> to vector<16x128xf32>
    %c0_8 = arith.constant 0 : index
    %c0_9 = arith.constant 0 : index
    %c0_10 = arith.constant 0 : index
    %16 = vector.load %arg4[%c0_8, %c0_9, %c0_10] : memref<1x128x128xbf16, #tpu.memory_space<vmem>>, vector<1x128x128xbf16>
    %17 = vector.shape_cast %16 : vector<1x128x128xbf16> to vector<128x128xbf16>
    %18 = vector.extract_strided_slice %5 {offsets = [1, 0], sizes = [1, 128], strides = [1, 1]} : vector<8x384xf32> to vector<1x128xf32>
    %19 = vector.shape_cast %13 : vector<16x128xf32> to vector<2x8x128xf32>
    %20 = vector.shape_cast %14 : vector<16x128xf32> to vector<2x8x128xf32>
    %21 = vector.shape_cast %15 : vector<16x128xf32> to vector<2x8x128xf32>
    %22 = vector.extract_strided_slice %19 {offsets = [0, 0, 0], sizes = [2, 8, 32], strides = [1, 1, 1]} : vector<2x8x128xf32> to vector<2x8x32xf32>
    %23 = arith.truncf %22 : vector<2x8x32xf32> to vector<2x8x32xbf16>
    %24 = vector.extract_strided_slice %20 {offsets = [0, 0, 0], sizes = [2, 8, 32], strides = [1, 1, 1]} : vector<2x8x128xf32> to vector<2x8x32xf32>
    %25 = arith.truncf %24 : vector<2x8x32xf32> to vector<2x8x32xbf16>
    "tpu.trace_start"() <{level = 10 : i32, message = "bqd,bkd->bqk"}> : () -> ()
    %cst_11 = arith.constant dense<0.000000e+00> : vector<2x8x8xf32>
    %26 = tpu.matmul %23, %25, %cst_11 {dimension_numbers = #tpu.dot_dimension_numbers<[2], [2], [1], [1], [0, 0, 0, 1, 1, 1], [0], [0]>} : vector<2x8x32xbf16>, vector<2x8x32xbf16>, vector<2x8x8xf32> -> vector<2x8x8xf32>
    "tpu.trace_stop"() : () -> ()
    %cst_12 = arith.constant dense<0xFF800000> : vector<2x8xf32>
    %27 = vector.multi_reduction <maximumf>, %26, %cst_12 [2] : vector<2x8x8xf32> to vector<2x8xf32>
    %28 = vector.shape_cast %27 : vector<2x8xf32> to vector<2x8x1xf32>
    %29 = vector.broadcast %28 : vector<2x8x1xf32> to vector<2x8x8xf32>
    %30 = arith.subf %26, %29 : vector<2x8x8xf32>
    %31 = math.exp %30 : vector<2x8x8xf32>
    %cst_13 = arith.constant dense<0.000000e+00> : vector<2x8xf32>
    %32 = vector.multi_reduction <add>, %31, %cst_13 [2] : vector<2x8x8xf32> to vector<2x8xf32>
    %33 = vector.shape_cast %32 : vector<2x8xf32> to vector<2x8x1xf32>
    %34 = tpu.reciprocal %33 {approx = true} : vector<2x8x1xf32> -> vector<2x8x1xf32>
    %35 = vector.broadcast %34 : vector<2x8x1xf32> to vector<2x8x8xf32>
    %36 = arith.mulf %31, %35 : vector<2x8x8xf32>
    %37 = arith.truncf %36 : vector<2x8x8xf32> to vector<2x8x8xbf16>
    %38 = vector.extract_strided_slice %21 {offsets = [0, 0, 0], sizes = [2, 8, 32], strides = [1, 1, 1]} : vector<2x8x128xf32> to vector<2x8x32xf32>
    %39 = arith.truncf %38 : vector<2x8x32xf32> to vector<2x8x32xbf16>
    "tpu.trace_start"() <{level = 10 : i32, message = "bqk,bkd->bqd"}> : () -> ()
    %cst_14 = arith.constant dense<0.000000e+00> : vector<2x8x32xf32>
    %40 = tpu.matmul %37, %39, %cst_14 {dimension_numbers = #tpu.dot_dimension_numbers<[2], [1], [1], [2], [0, 0, 0, 1, 1, 2], [0], [0]>} : vector<2x8x8xbf16>, vector<2x8x32xbf16>, vector<2x8x32xf32> -> vector<2x8x32xf32>
    "tpu.trace_stop"() : () -> ()
    %41 = vector.shape_cast %40 : vector<2x8x32xf32> to vector<16x32xf32>
    %42 = arith.truncf %41 : vector<16x32xf32> to vector<16x32xbf16>
    %43 = vector.extract_strided_slice %17 {offsets = [0, 0], sizes = [32, 128], strides = [1, 1]} : vector<128x128xbf16> to vector<32x128xbf16>
    %cst_15 = arith.constant dense<0.000000e+00> : vector<16x128xf32>
    %44 = tpu.matmul %42, %43, %cst_15 {dimension_numbers = #tpu.dot_dimension_numbers<[1], [0], [0], [1], [0, 0, 1, 1], [], []>} : vector<16x32xbf16>, vector<32x128xbf16>, vector<16x128xf32> -> vector<16x128xf32>
    %45 = vector.extract_strided_slice %19 {offsets = [0, 0, 32], sizes = [2, 8, 32], strides = [1, 1, 1]} : vector<2x8x128xf32> to vector<2x8x32xf32>
    %46 = arith.truncf %45 : vector<2x8x32xf32> to vector<2x8x32xbf16>
    %47 = vector.extract_strided_slice %20 {offsets = [0, 0, 32], sizes = [2, 8, 32], strides = [1, 1, 1]} : vector<2x8x128xf32> to vector<2x8x32xf32>
    %48 = arith.truncf %47 : vector<2x8x32xf32> to vector<2x8x32xbf16>
    "tpu.trace_start"() <{level = 10 : i32, message = "bqd,bkd->bqk"}> : () -> ()
    %cst_16 = arith.constant dense<0.000000e+00> : vector<2x8x8xf32>
    %49 = tpu.matmul %46, %48, %cst_16 {dimension_numbers = #tpu.dot_dimension_numbers<[2], [2], [1], [1], [0, 0, 0, 1, 1, 1], [0], [0]>} : vector<2x8x32xbf16>, vector<2x8x32xbf16>, vector<2x8x8xf32> -> vector<2x8x8xf32>
    "tpu.trace_stop"() : () -> ()
    %cst_17 = arith.constant dense<0xFF800000> : vector<2x8xf32>
    %50 = vector.multi_reduction <maximumf>, %49, %cst_17 [2] : vector<2x8x8xf32> to vector<2x8xf32>
    %51 = vector.shape_cast %50 : vector<2x8xf32> to vector<2x8x1xf32>
    %52 = vector.broadcast %51 : vector<2x8x1xf32> to vector<2x8x8xf32>
    %53 = arith.subf %49, %52 : vector<2x8x8xf32>
    %54 = math.exp %53 : vector<2x8x8xf32>
    %cst_18 = arith.constant dense<0.000000e+00> : vector<2x8xf32>
    %55 = vector.multi_reduction <add>, %54, %cst_18 [2] : vector<2x8x8xf32> to vector<2x8xf32>
    %56 = vector.shape_cast %55 : vector<2x8xf32> to vector<2x8x1xf32>
    %57 = tpu.reciprocal %56 {approx = true} : vector<2x8x1xf32> -> vector<2x8x1xf32>
    %58 = vector.broadcast %57 : vector<2x8x1xf32> to vector<2x8x8xf32>
    %59 = arith.mulf %54, %58 : vector<2x8x8xf32>
    %60 = arith.truncf %59 : vector<2x8x8xf32> to vector<2x8x8xbf16>
    %61 = vector.extract_strided_slice %21 {offsets = [0, 0, 32], sizes = [2, 8, 32], strides = [1, 1, 1]} : vector<2x8x128xf32> to vector<2x8x32xf32>
    %62 = arith.truncf %61 : vector<2x8x32xf32> to vector<2x8x32xbf16>
    "tpu.trace_start"() <{level = 10 : i32, message = "bqk,bkd->bqd"}> : () -> ()
    %cst_19 = arith.constant dense<0.000000e+00> : vector<2x8x32xf32>
    %63 = tpu.matmul %60, %62, %cst_19 {dimension_numbers = #tpu.dot_dimension_numbers<[2], [1], [1], [2], [0, 0, 0, 1, 1, 2], [0], [0]>} : vector<2x8x8xbf16>, vector<2x8x32xbf16>, vector<2x8x32xf32> -> vector<2x8x32xf32>
    "tpu.trace_stop"() : () -> ()
    %64 = vector.shape_cast %63 : vector<2x8x32xf32> to vector<16x32xf32>
    %65 = arith.truncf %64 : vector<16x32xf32> to vector<16x32xbf16>
    %66 = vector.extract_strided_slice %17 {offsets = [32, 0], sizes = [32, 128], strides = [1, 1]} : vector<128x128xbf16> to vector<32x128xbf16>
    %cst_20 = arith.constant dense<0.000000e+00> : vector<16x128xf32>
    %67 = tpu.matmul %65, %66, %cst_20 {dimension_numbers = #tpu.dot_dimension_numbers<[1], [0], [0], [1], [0, 0, 1, 1], [], []>} : vector<16x32xbf16>, vector<32x128xbf16>, vector<16x128xf32> -> vector<16x128xf32>
    %68 = arith.addf %44, %67 : vector<16x128xf32>
    %69 = vector.extract_strided_slice %19 {offsets = [0, 0, 64], sizes = [2, 8, 32], strides = [1, 1, 1]} : vector<2x8x128xf32> to vector<2x8x32xf32>
    %70 = arith.truncf %69 : vector<2x8x32xf32> to vector<2x8x32xbf16>
    %71 = vector.extract_strided_slice %20 {offsets = [0, 0, 64], sizes = [2, 8, 32], strides = [1, 1, 1]} : vector<2x8x128xf32> to vector<2x8x32xf32>
    %72 = arith.truncf %71 : vector<2x8x32xf32> to vector<2x8x32xbf16>
    "tpu.trace_start"() <{level = 10 : i32, message = "bqd,bkd->bqk"}> : () -> ()
    %cst_21 = arith.constant dense<0.000000e+00> : vector<2x8x8xf32>
    %73 = tpu.matmul %70, %72, %cst_21 {dimension_numbers = #tpu.dot_dimension_numbers<[2], [2], [1], [1], [0, 0, 0, 1, 1, 1], [0], [0]>} : vector<2x8x32xbf16>, vector<2x8x32xbf16>, vector<2x8x8xf32> -> vector<2x8x8xf32>
    "tpu.trace_stop"() : () -> ()
    %cst_22 = arith.constant dense<0xFF800000> : vector<2x8xf32>
    %74 = vector.multi_reduction <maximumf>, %73, %cst_22 [2] : vector<2x8x8xf32> to vector<2x8xf32>
    %75 = vector.shape_cast %74 : vector<2x8xf32> to vector<2x8x1xf32>
    %76 = vector.broadcast %75 : vector<2x8x1xf32> to vector<2x8x8xf32>
    %77 = arith.subf %73, %76 : vector<2x8x8xf32>
    %78 = math.exp %77 : vector<2x8x8xf32>
    %cst_23 = arith.constant dense<0.000000e+00> : vector<2x8xf32>
    %79 = vector.multi_reduction <add>, %78, %cst_23 [2] : vector<2x8x8xf32> to vector<2x8xf32>
    %80 = vector.shape_cast %79 : vector<2x8xf32> to vector<2x8x1xf32>
    %81 = tpu.reciprocal %80 {approx = true} : vector<2x8x1xf32> -> vector<2x8x1xf32>
    %82 = vector.broadcast %81 : vector<2x8x1xf32> to vector<2x8x8xf32>
    %83 = arith.mulf %78, %82 : vector<2x8x8xf32>
    %84 = arith.truncf %83 : vector<2x8x8xf32> to vector<2x8x8xbf16>
    %85 = vector.extract_strided_slice %21 {offsets = [0, 0, 64], sizes = [2, 8, 32], strides = [1, 1, 1]} : vector<2x8x128xf32> to vector<2x8x32xf32>
    %86 = arith.truncf %85 : vector<2x8x32xf32> to vector<2x8x32xbf16>
    "tpu.trace_start"() <{level = 10 : i32, message = "bqk,bkd->bqd"}> : () -> ()
    %cst_24 = arith.constant dense<0.000000e+00> : vector<2x8x32xf32>
    %87 = tpu.matmul %84, %86, %cst_24 {dimension_numbers = #tpu.dot_dimension_numbers<[2], [1], [1], [2], [0, 0, 0, 1, 1, 2], [0], [0]>} : vector<2x8x8xbf16>, vector<2x8x32xbf16>, vector<2x8x32xf32> -> vector<2x8x32xf32>
    "tpu.trace_stop"() : () -> ()
    %88 = vector.shape_cast %87 : vector<2x8x32xf32> to vector<16x32xf32>
    %89 = arith.truncf %88 : vector<16x32xf32> to vector<16x32xbf16>
    %90 = vector.extract_strided_slice %17 {offsets = [64, 0], sizes = [32, 128], strides = [1, 1]} : vector<128x128xbf16> to vector<32x128xbf16>
    %cst_25 = arith.constant dense<0.000000e+00> : vector<16x128xf32>
    %91 = tpu.matmul %89, %90, %cst_25 {dimension_numbers = #tpu.dot_dimension_numbers<[1], [0], [0], [1], [0, 0, 1, 1], [], []>} : vector<16x32xbf16>, vector<32x128xbf16>, vector<16x128xf32> -> vector<16x128xf32>
    %92 = arith.addf %68, %91 : vector<16x128xf32>
    %93 = vector.extract_strided_slice %19 {offsets = [0, 0, 96], sizes = [2, 8, 32], strides = [1, 1, 1]} : vector<2x8x128xf32> to vector<2x8x32xf32>
    %94 = arith.truncf %93 : vector<2x8x32xf32> to vector<2x8x32xbf16>
    %95 = vector.extract_strided_slice %20 {offsets = [0, 0, 96], sizes = [2, 8, 32], strides = [1, 1, 1]} : vector<2x8x128xf32> to vector<2x8x32xf32>
    %96 = arith.truncf %95 : vector<2x8x32xf32> to vector<2x8x32xbf16>
    "tpu.trace_start"() <{level = 10 : i32, message = "bqd,bkd->bqk"}> : () -> ()
    %cst_26 = arith.constant dense<0.000000e+00> : vector<2x8x8xf32>
    %97 = tpu.matmul %94, %96, %cst_26 {dimension_numbers = #tpu.dot_dimension_numbers<[2], [2], [1], [1], [0, 0, 0, 1, 1, 1], [0], [0]>} : vector<2x8x32xbf16>, vector<2x8x32xbf16>, vector<2x8x8xf32> -> vector<2x8x8xf32>
    "tpu.trace_stop"() : () -> ()
    %cst_27 = arith.constant dense<0xFF800000> : vector<2x8xf32>
    %98 = vector.multi_reduction <maximumf>, %97, %cst_27 [2] : vector<2x8x8xf32> to vector<2x8xf32>
    %99 = vector.shape_cast %98 : vector<2x8xf32> to vector<2x8x1xf32>
    %100 = vector.broadcast %99 : vector<2x8x1xf32> to vector<2x8x8xf32>
    %101 = arith.subf %97, %100 : vector<2x8x8xf32>
    %102 = math.exp %101 : vector<2x8x8xf32>
    %cst_28 = arith.constant dense<0.000000e+00> : vector<2x8xf32>
    %103 = vector.multi_reduction <add>, %102, %cst_28 [2] : vector<2x8x8xf32> to vector<2x8xf32>
    %104 = vector.shape_cast %103 : vector<2x8xf32> to vector<2x8x1xf32>
    %105 = tpu.reciprocal %104 {approx = true} : vector<2x8x1xf32> -> vector<2x8x1xf32>
    %106 = vector.broadcast %105 : vector<2x8x1xf32> to vector<2x8x8xf32>
    %107 = arith.mulf %102, %106 : vector<2x8x8xf32>
    %108 = arith.truncf %107 : vector<2x8x8xf32> to vector<2x8x8xbf16>
    %109 = vector.extract_strided_slice %21 {offsets = [0, 0, 96], sizes = [2, 8, 32], strides = [1, 1, 1]} : vector<2x8x128xf32> to vector<2x8x32xf32>
    %110 = arith.truncf %109 : vector<2x8x32xf32> to vector<2x8x32xbf16>
    "tpu.trace_start"() <{level = 10 : i32, message = "bqk,bkd->bqd"}> : () -> ()
    %cst_29 = arith.constant dense<0.000000e+00> : vector<2x8x32xf32>
    %111 = tpu.matmul %108, %110, %cst_29 {dimension_numbers = #tpu.dot_dimension_numbers<[2], [1], [1], [2], [0, 0, 0, 1, 1, 2], [0], [0]>} : vector<2x8x8xbf16>, vector<2x8x32xbf16>, vector<2x8x32xf32> -> vector<2x8x32xf32>
    "tpu.trace_stop"() : () -> ()
    %112 = vector.shape_cast %111 : vector<2x8x32xf32> to vector<16x32xf32>
    %113 = arith.truncf %112 : vector<16x32xf32> to vector<16x32xbf16>
    %114 = vector.extract_strided_slice %17 {offsets = [96, 0], sizes = [32, 128], strides = [1, 1]} : vector<128x128xbf16> to vector<32x128xbf16>
    %cst_30 = arith.constant dense<0.000000e+00> : vector<16x128xf32>
    %115 = tpu.matmul %113, %114, %cst_30 {dimension_numbers = #tpu.dot_dimension_numbers<[1], [0], [0], [1], [0, 0, 1, 1], [], []>} : vector<16x32xbf16>, vector<32x128xbf16>, vector<16x128xf32> -> vector<16x128xf32>
    %116 = arith.addf %92, %115 : vector<16x128xf32>
    %117 = vector.broadcast %18 : vector<1x128xf32> to vector<16x128xf32>
    %118 = arith.addf %116, %117 : vector<16x128xf32>
    %119 = arith.addf %3, %118 : vector<16x128xf32>
    %120 = vector.extract_strided_slice %5 {offsets = [1, 128], sizes = [1, 128], strides = [1, 1]} : vector<8x384xf32> to vector<1x128xf32>
    %121 = vector.extract_strided_slice %5 {offsets = [1, 256], sizes = [1, 128], strides = [1, 1]} : vector<8x384xf32> to vector<1x128xf32>
    %cst_31 = arith.constant dense<0.000000e+00> : vector<16xf32>
    %122 = vector.multi_reduction <add>, %119, %cst_31 [1] : vector<16x128xf32> to vector<16xf32>
    %123 = vector.shape_cast %122 : vector<16xf32> to vector<16x1xf32>
    %cst_32 = arith.constant 1.280000e+02 : f32
    %124 = vector.broadcast %cst_32 : f32 to vector<16x1xf32>
    %125 = arith.divf %123, %124 : vector<16x1xf32>
    %126 = vector.broadcast %125 : vector<16x1xf32> to vector<16x128xf32>
    %127 = arith.subf %119, %126 : vector<16x128xf32>
    %128 = arith.mulf %127, %127 : vector<16x128xf32>
    %cst_33 = arith.constant dense<0.000000e+00> : vector<16xf32>
    %129 = vector.multi_reduction <add>, %128, %cst_33 [1] : vector<16x128xf32> to vector<16xf32>
    %130 = vector.shape_cast %129 : vector<16xf32> to vector<16x1xf32>
    %cst_34 = arith.constant 1.280000e+02 : f32
    %131 = vector.broadcast %cst_34 : f32 to vector<16x1xf32>
    %132 = arith.divf %130, %131 : vector<16x1xf32>
    %cst_35 = arith.constant 9.99999974E-6 : f32
    %133 = vector.broadcast %cst_35 : f32 to vector<16x1xf32>
    %134 = arith.addf %132, %133 : vector<16x1xf32>
    %135 = math.rsqrt %134 : vector<16x1xf32>
    %136 = vector.broadcast %135 : vector<16x1xf32> to vector<16x128xf32>
    %137 = arith.mulf %127, %136 : vector<16x128xf32>
    %138 = vector.broadcast %120 : vector<1x128xf32> to vector<16x128xf32>
    %139 = arith.mulf %137, %138 : vector<16x128xf32>
    %140 = vector.broadcast %121 : vector<1x128xf32> to vector<16x128xf32>
    %141 = arith.addf %139, %140 : vector<16x128xf32>
    %142 = arith.truncf %141 : vector<16x128xf32> to vector<16x128xbf16>
    %c0_36 = arith.constant 0 : index
    %c0_37 = arith.constant 0 : index
    %c0_38 = arith.constant 0 : index
    %143 = vector.load %arg5[%c0_36, %c0_37, %c0_38] : memref<1x128x256xbf16, #tpu.memory_space<vmem>>, vector<1x128x256xbf16>
    %144 = vector.shape_cast %143 : vector<1x128x256xbf16> to vector<128x256xbf16>
    %cst_39 = arith.constant dense<0.000000e+00> : vector<16x256xf32>
    %145 = tpu.matmul %142, %144, %cst_39 {dimension_numbers = #tpu.dot_dimension_numbers<[1], [0], [0], [1], [0, 0, 1, 1], [], []>} : vector<16x128xbf16>, vector<128x256xbf16>, vector<16x256xf32> -> vector<16x256xf32>
    %146 = vector.extract_strided_slice %5 {offsets = [2, 0], sizes = [1, 256], strides = [1, 1]} : vector<8x384xf32> to vector<1x256xf32>
    %147 = vector.broadcast %146 : vector<1x256xf32> to vector<16x256xf32>
    %148 = arith.addf %145, %147 : vector<16x256xf32>
    %cst_40 = arith.constant 0.000000e+00 : f32
    %149 = vector.broadcast %cst_40 : f32 to vector<16x256xf32>
    %150 = arith.maximumf %148, %149 : vector<16x256xf32>
    %151 = arith.truncf %150 : vector<16x256xf32> to vector<16x256xbf16>
    %c0_41 = arith.constant 0 : index
    %c0_42 = arith.constant 0 : index
    %c0_43 = arith.constant 0 : index
    %152 = vector.load %arg6[%c0_41, %c0_42, %c0_43] : memref<1x256x128xbf16, #tpu.memory_space<vmem>>, vector<1x256x128xbf16>
    %153 = vector.shape_cast %152 : vector<1x256x128xbf16> to vector<256x128xbf16>
    %cst_44 = arith.constant dense<0.000000e+00> : vector<16x128xf32>
    %154 = tpu.matmul %151, %153, %cst_44 {dimension_numbers = #tpu.dot_dimension_numbers<[1], [0], [0], [1], [0, 0, 1, 1], [], []>} : vector<16x256xbf16>, vector<256x128xbf16>, vector<16x128xf32> -> vector<16x128xf32>
    %155 = vector.extract_strided_slice %5 {offsets = [3, 0], sizes = [1, 128], strides = [1, 1]} : vector<8x384xf32> to vector<1x128xf32>
    %156 = vector.broadcast %155 : vector<1x128xf32> to vector<16x128xf32>
    %157 = arith.addf %154, %156 : vector<16x128xf32>
    %158 = arith.addf %141, %157 : vector<16x128xf32>
    %159 = vector.extract_strided_slice %5 {offsets = [3, 128], sizes = [1, 128], strides = [1, 1]} : vector<8x384xf32> to vector<1x128xf32>
    %160 = vector.extract_strided_slice %5 {offsets = [3, 256], sizes = [1, 128], strides = [1, 1]} : vector<8x384xf32> to vector<1x128xf32>
    %cst_45 = arith.constant dense<0.000000e+00> : vector<16xf32>
    %161 = vector.multi_reduction <add>, %158, %cst_45 [1] : vector<16x128xf32> to vector<16xf32>
    %162 = vector.shape_cast %161 : vector<16xf32> to vector<16x1xf32>
    %cst_46 = arith.constant 1.280000e+02 : f32
    %163 = vector.broadcast %cst_46 : f32 to vector<16x1xf32>
    %164 = arith.divf %162, %163 : vector<16x1xf32>
    %165 = vector.broadcast %164 : vector<16x1xf32> to vector<16x128xf32>
    %166 = arith.subf %158, %165 : vector<16x128xf32>
    %167 = arith.mulf %166, %166 : vector<16x128xf32>
    %cst_47 = arith.constant dense<0.000000e+00> : vector<16xf32>
    %168 = vector.multi_reduction <add>, %167, %cst_47 [1] : vector<16x128xf32> to vector<16xf32>
    %169 = vector.shape_cast %168 : vector<16xf32> to vector<16x1xf32>
    %cst_48 = arith.constant 1.280000e+02 : f32
    %170 = vector.broadcast %cst_48 : f32 to vector<16x1xf32>
    %171 = arith.divf %169, %170 : vector<16x1xf32>
    %cst_49 = arith.constant 9.99999974E-6 : f32
    %172 = vector.broadcast %cst_49 : f32 to vector<16x1xf32>
    %173 = arith.addf %171, %172 : vector<16x1xf32>
    %174 = math.rsqrt %173 : vector<16x1xf32>
    %175 = vector.broadcast %174 : vector<16x1xf32> to vector<16x128xf32>
    %176 = arith.mulf %166, %175 : vector<16x128xf32>
    %177 = vector.broadcast %159 : vector<1x128xf32> to vector<16x128xf32>
    %178 = arith.mulf %176, %177 : vector<16x128xf32>
    %179 = vector.broadcast %160 : vector<1x128xf32> to vector<16x128xf32>
    %180 = arith.addf %178, %179 : vector<16x128xf32>
    %c0_50 = arith.constant 0 : index
    %c0_51 = arith.constant 0 : index
    %181 = vector.load %arg9[%c0_50, %c0_51] : memref<16x128xf32, #tpu.memory_space<vmem>>, vector<16x128xf32>
    tpu.vector_store %arg9[%c0_50, %c0_51], %180 {strides = array<i32>} : memref<16x128xf32, #tpu.memory_space<vmem>>, vector<16x128xf32>,
    %c1_i32 = arith.constant 1 : i32
    %182 = arith.cmpi eq, %arg0, %c1_i32 : i32
    %183 = arith.extui %182 : i1 to i32
    %c0_i32_52 = arith.constant 0 : i32
    %184 = arith.cmpi ne, %183, %c0_i32_52 : i32
    scf.if %184 {
      %c0_53 = arith.constant 0 : index
      %c0_54 = arith.constant 0 : index
      %185 = vector.load %arg8[%c0_53, %c0_54] : memref<16x128xf32, #tpu.memory_space<vmem>>, vector<16x128xf32>
      tpu.vector_store %arg8[%c0_53, %c0_54], %180 {strides = array<i32>} : memref<16x128xf32, #tpu.memory_space<vmem>>, vector<16x128xf32>,
    } else {
    }
    return
  }
  func.func @transform_0(%arg0: i32) -> (i32, i32) {
    %c0_i32 = arith.constant 0 : i32
    %c0_i32_0 = arith.constant 0 : i32
    %c0_i32_1 = arith.constant 0 : i32
    return %c0_i32, %c0_i32_0 : i32, i32
  }
  func.func @transform_1(%arg0: i32) -> (i32, i32) {
    %c0_i32 = arith.constant 0 : i32
    %c0_i32_0 = arith.constant 0 : i32
    %c0_i32_1 = arith.constant 0 : i32
    return %c0_i32, %c0_i32_0 : i32, i32
  }
  func.func @transform_2(%arg0: i32) -> (i32, i32, i32) {
    %c0_i32 = arith.constant 0 : i32
    %c0_i32_0 = arith.constant 0 : i32
    %c0_i32_1 = arith.constant 0 : i32
    return %arg0, %c0_i32, %c0_i32_0 : i32, i32, i32
  }
  func.func @transform_3(%arg0: i32) -> (i32, i32, i32) {
    %c0_i32 = arith.constant 0 : i32
    %c0_i32_0 = arith.constant 0 : i32
    %c0_i32_1 = arith.constant 0 : i32
    return %arg0, %c0_i32, %c0_i32_0 : i32, i32, i32
  }
  func.func @transform_4(%arg0: i32) -> (i32, i32, i32) {
    %c0_i32 = arith.constant 0 : i32
    %c0_i32_0 = arith.constant 0 : i32
    %c0_i32_1 = arith.constant 0 : i32
    return %arg0, %c0_i32, %c0_i32_0 : i32, i32, i32
  }
  func.func @transform_5(%arg0: i32) -> (i32, i32, i32) {
    %c0_i32 = arith.constant 0 : i32
    %c0_i32_0 = arith.constant 0 : i32
    %c0_i32_1 = arith.constant 0 : i32
    return %arg0, %c0_i32, %c0_i32_0 : i32, i32, i32
  }
  func.func @transform_6(%arg0: i32) -> (i32, i32, i32) {
    %c0_i32 = arith.constant 0 : i32
    %c0_i32_0 = arith.constant 0 : i32
    %c0_i32_1 = arith.constant 0 : i32
    return %arg0, %c0_i32, %c0_i32_0 : i32, i32, i32
  }
  func.func @transform_7(%arg0: i32) -> (i32, i32) {
    %c0_i32 = arith.constant 0 : i32
    %c0_i32_0 = arith.constant 0 : i32
    %c0_i32_1 = arith.constant 0 : i32
    return %c0_i32, %c0_i32_0 : i32, i32
  }
}

</mosaic_0001>

<bundles_post_ra>
// kernel: transformer_forward.2
= control target key start
LH: loop header
LB: loop body
LE: loop exit
PB: predicated region body
PF: predicated region fallthrough
CT: control target
= control target key end

     0   :  { %s3568_s0 = inlined_call_operand.vmem [shape: f32[16,128], index: 0, kind: input, shape index: {}]   ;;  %s3569_s1 = inlined_call_operand.vmem [shape: f32[16,128], index: 1, kind: input, shape index: {}]   ;;  %s3570_s2 = inlined_call_operand.vmem [shape: bf16[2,128,384], index: 2, kind: input, shape index: {}]   ;;  %s3571_s3 = inlined_call_operand.hbm [shape: bf16[2,128,128], index: 3, kind: input, shape index: {}]   ;;  %s3572_s4 = inlined_call_operand.hbm [shape: bf16[2,128,256], index: 4, kind: input, shape index: {}]   ;;  %s3573_s5 = inlined_call_operand.hbm [shape: bf16[2,256,128], index: 5, kind: input, shape index: {}]   ;;  %s3574_s6 = inlined_call_operand.vmem [shape: f32[2,8,384], index: 6, kind: input, shape index: {}]   ;;  %s3575_s7 = inlined_call_operand.vmem [shape: f32[16,128], index: 7, kind: output, shape index: {}]  }
   0x1   :  { %3577 = sst [smem:[#allocation10_spill]] %s3572_s4 }
   0x2   :  { %12 = vsyncpa [#allocation4], 0 }
   0x3   :  { %14 = vsyncpa [#allocation4 + $0x1], 0 }
   0x4   :  { %15 = vsyncpa [#allocation6], 0 }
   0x5   :  { %17 = vsyncpa [#allocation6 + $0x1], 0  ;;  %s3026_s24 = smov 0   ;;  %s3028_s25 = smov 0  }
   0x6   :  { %s3030_s26 = smov 0   ;;  %s3032_s27 = smov 0  }
   0x7 LB: > { %s3045_s28 = sadd.s32 4294967295, %s2971_s27   ;;  %s3048_s29 = sadd.s32 1, %s2971_s27   ;;  %s2971_s27 = sphi %s3032_s27, %s3588_s27   ;;  %s2967_s26 = sphi %s3030_s26, %s3587_s26   ;;  %s2963_s25 = sphi %s3028_s25, %s3586_s25   ;;  %s2959_s24 = sphi %s3026_s24, %s3585_s24  }
   0x8   : > { %s95_s30 = ssub.s32 %s2971_s27, %s3048_s29  ;;  %s98_s8 = sadd.s32 1, %s2967_s26 }
   0x9   : > { %p96_p0 = scmp.eq.s32.totalorder %s95_s30, 0  ;;  %p105_p1 = scmp.ne.s32.totalorder %s2967_s26, %s2963_s25 }
   0xa   : > { %p106_p2 = scmp.eq.s32.totalorder %s2971_s27, 0  ;;  %p111_p3 = scmp.ne.s32.totalorder %s2963_s25, %s2959_s24 }
   0xb   : > { %s3058_s9 = scalar_select %p96_p0, %s2967_s26, %s98_s8  }
   0xc   : > { %p107_p4 = por %p106_p2, %p105_p1  ;;  %p112_p5 = scmp.eq.s32.totalorder %s3045_s28, 0 }
   0xd   : > { %p2679_p6 = scmp.lt.s32.totalorder %s2971_s27, 2  ;;  %s3067_s11 = sand.u32 1, %s2967_s26  }
   0xe   : > { %p3062_p7 = por %p112_p5, %p111_p3  ;;  %s269_s13 = sand.u32 1, %s2971_s27  }
   0xf   : > { %p3069_p8 = pnand %p2679_p6, %p107_p4  ;;  %s2335_s14 = sshll.u32 %s3067_s11, 7 }
  0x10   : > { %s3578_s10 = scalar_select %p3062_p7, 1, 0 }
  0x11   : > { %s2436_s15 = sshll.u32 %s2971_s27, 11  ;;  %s273_s16 = scalar_lea.vmem [#allocation5], %s2335_s14 }
  0x12   : > { %s280_s17 = sshll.u32 %s273_s16, 4  ;;  %s3580_s4 = sld [smem:[#allocation10_spill]]  ;;  %s3085_s17 = int_to_ptr.vmem [resolvable:$true] %s280_s17 }
  0x13   : > { %s3087_s21 = scalar_lea.sflag [#allocation6], %s269_s13  ;;  %p3093_p10 = pneg %p3069_p8 }
  0x18   : > { %s3083_s20 = scalar_lea.hbm %s3580_s4, %s2436_s15  ;;  %s2848_s8 = scalar_lea.hbm %s3580_s4, 4096 }
  0x19   : > { %s2843_s22 = scalar_lea.hbm %s3083_s20, 2048  ;;  %p2849_p13 = scmp.lt.u32.totalorder %s3083_s20, %s3580_s4 }
  0x1a   : > { %p2844_p9 = scmp.ne.s32.totalorder %s3083_s20, %s2843_s22  ;;  %p2850_p0 = scmp.lt.u32.totalorder %s2848_s8, %s2843_s22 }
  0x1b   : > { %p2852_p2 = scmp.lt.u32.totalorder %s2843_s22, %s3083_s20 }
  0x1c   : > { %p2846_p11 = pnand %p3093_p10, %p2844_p9  ;;  %p2851_p1 = por %p2850_p0, %p2849_p13 }
  0x1e   : > { %p2847_p12 = pneg %p2846_p11  ;;  %p2853_p3 = por %p2852_p2, %p2851_p1 }
  0x20   : > { %p2854_p4 = pnand %p2853_p3, %p2847_p12 }
  0x22   : > { %2857 = shalt.err (!%p2854_p4)
}
  0x23   : > { %s2858_s13 = scalar_lea.vmem %s3085_s17, 2048  ;;  %s2973_s19 = smov [#allocation5]  }
  0x24   : > { %p2859_p5 = scmp.ne.s32.totalorder %s3085_s17, %s2858_s13  ;;  %s2863_s24 = sshll.u32 %s2973_s19, 4  ;;  %s2864_s24 = int_to_ptr.vmem [resolvable:$false] %s2863_s24 }
  0x25   : > { %s2865_s30 = scalar_lea.vmem %s2864_s24, 4096  ;;  %p2866_p11 = scmp.lt.s32.totalorder %s3085_s17, %s2864_s24 }
  0x26   : > { %p2861_p6 = pnand %p2859_p5, %p3093_p10  ;;  %p2867_p7 = scmp.lt.s32.totalorder %s2865_s30, %s2858_s13 }
  0x28   : > { %p2862_p9 = pneg %p2861_p6  ;;  %p2868_p13 = por %p2867_p7, %p2866_p11 }
  0x2a   : > { %p2869_p0 = pnand %p2868_p13, %p2862_p9 }
  0x2c   : > { %2872 = shalt.err (!%p2869_p0)
}
  0x2d   : > { %s2974_s22 = smov 128   ;;  %s2975_s8 = smov 8  }
  0x2e   : > { %2675 = dma.hbm_to_vmem [thread:$0]  (!%p3069_p8), %s3083_s20, 2048, %s3085_s17, %s3087_s21, %s2974_s22, %s2974_s22, %s2975_s8  }
  0x2f   : > { %s3122_s13 = scalar_lea.hbm %s3573_s5, %s2436_s15  ;;  %s294_s19 = scalar_lea.vmem [#allocation7], %s2335_s14 }
  0x30   : > { %s301_s24 = sshll.u32 %s294_s19, 4  ;;  %p2341_p7 = scmp.ge.s32.totalorder %s2971_s27, 1  ;;  %s3127_s24 = int_to_ptr.vmem [resolvable:$true] %s301_s24 }
  0x31   : > { %p317_p12 = scmp.lt.s32.totalorder %s2971_s27, 3  ;;  %s2332_s30 = sshll.u32 %s3067_s11, 6 }
  0x32   : > { %s2435_s17 = sshll.u32 %s2971_s27, 10  ;;  %s252_s20 = scalar_lea.vmem [#allocation3], %s2332_s30 }
  0x33   : > { %p3131_p1 = pnand %p2341_p7, %p317_p12  ;;  %s259_s22 = sshll.u32 %s252_s20, 4  ;;  %s3141_s22 = int_to_ptr.vmem [resolvable:$true] %s259_s22 }
  0x34   : > { %s3139_s15 = scalar_lea.hbm %s3571_s3, %s2435_s17  ;;  %s249_s14 = scalar_lea.sflag [#allocation4], %s3067_s11 }
  0x35   : > { %s3582_s4 = scalar_select %p3131_p1, 1, 0 }
  0x36   : > { %s2873_s18 = scalar_lea.hbm %s3139_s15, 1024  ;;  %s2878_s30 = scalar_lea.hbm %s3571_s3, 2048 }
  0x37   : > { %p2874_p2 = scmp.ne.s32.totalorder %s3139_s15, %s2873_s18  ;;  %p2879_p5 = scmp.lt.u32.totalorder %s3139_s15, %s3571_s3 }
  0x38   : > { %p2880_p6 = scmp.lt.u32.totalorder %s2878_s30, %s2873_s18  ;;  %p2882_p11 = scmp.lt.u32.totalorder %s2873_s18, %s3139_s15 }
  0x39   : > { %p2876_p3 = pnand %p2874_p2, %p3093_p10 }
  0x3a   : > { %p2881_p9 = por %p2880_p6, %p2879_p5 }
  0x3b   : > { %p2877_p4 = pneg %p2876_p3 }
  0x3c   : > { %p2883_p13 = por %p2882_p11, %p2881_p9 }
  0x3e   : > { %p2884_p0 = pnand %p2883_p13, %p2877_p4 }
  0x40   : > { %2887 = shalt.err (!%p2884_p0)
}
  0x41   : > { %s2888_s17 = scalar_lea.vmem %s3141_s22, 1024  ;;  %s2976_s16 = smov [#allocation3]  }
  0x42   : > { %p2889_p7 = scmp.ne.s32.totalorder %s3141_s22, %s2888_s17  ;;  %s2893_s27 = sshll.u32 %s2976_s16, 4  ;;  %s2894_s27 = int_to_ptr.vmem [resolvable:$false] %s2893_s27 }
  0x43   : > { %s2895_s19 = scalar_lea.vmem %s2894_s27, 2048  ;;  %p2896_p3 = scmp.lt.s32.totalorder %s3141_s22, %s2894_s27 }
  0x44   : > { %p2891_p12 = pnand %p2889_p7, %p3093_p10  ;;  %p2897_p1 = scmp.lt.s32.totalorder %s2895_s19, %s2888_s17 }
  0x46   : > { %p2892_p2 = pneg %p2891_p12  ;;  %p2898_p5 = por %p2897_p1, %p2896_p3 }
  0x48   : > { %p2899_p6 = pnand %p2898_p5, %p2892_p2 }
  0x4a   : > { %2902 = shalt.err (!%p2899_p6)
}
  0x4b   : > { %s2977_s18 = smov 64   ;;  %s2978_s30 = smov 4  }
  0x4c   : > { %2672 = dma.hbm_to_vmem [thread:$0]  (!%p3069_p8), %s3139_s15, 1024, %s3141_s22, %s249_s14, %s2977_s18, %s2977_s18, %s2978_s30  }
  0x4d   : > { %s2903_s20 = scalar_lea.hbm %s3122_s13, 2048  ;;  %s2908_s16 = scalar_lea.hbm %s3573_s5, 4096 }
  0x4e   : > { %p2904_p1 = scmp.ne.s32.totalorder %s3122_s13, %s2903_s20  ;;  %p2909_p11 = scmp.lt.u32.totalorder %s3122_s13, %s3573_s5 }
  0x4f   : > { %p2910_p13 = scmp.lt.u32.totalorder %s2908_s16, %s2903_s20  ;;  %p2912_p7 = scmp.lt.u32.totalorder %s2903_s20, %s3122_s13 }
  0x50   : > { %p2906_p4 = pnand %p2904_p1, %p3093_p10 }
  0x51   : > { %p2911_p0 = por %p2910_p13, %p2909_p11 }
  0x52   : > { %p2907_p9 = pneg %p2906_p4 }
  0x53   : > { %p2913_p12 = por %p2912_p7, %p2911_p0 }
  0x55   : > { %p2914_p2 = pnand %p2913_p12, %p2907_p9 }
  0x57   : > { %2917 = shalt.err (!%p2914_p2)
}
  0x58   : > { %s2918_s11 = scalar_lea.vmem %s3127_s24, 2048  ;;  %s2979_s22 = smov [#allocation7]  }
  0x59   : > { %p2919_p3 = scmp.ne.s32.totalorder %s3127_s24, %s2918_s11  ;;  %s2923_s15 = sshll.u32 %s2979_s22, 4  ;;  %s2924_s15 = int_to_ptr.vmem [resolvable:$false] %s2923_s15 }
  0x5a   : > { %s2925_s14 = scalar_lea.vmem %s2924_s15, 4096  ;;  %p2926_p1 = scmp.lt.s32.totalorder %s3127_s24, %s2924_s15 }
  0x5b   : > { %p2921_p5 = pnand %p2919_p3, %p3093_p10  ;;  %p2927_p4 = scmp.lt.s32.totalorder %s2925_s14, %s2918_s11 }
  0x5d   : > { %p2922_p6 = pneg %p2921_p5  ;;  %p2928_p11 = por %p2927_p4, %p2926_p1 }
  0x5f   : > { %p2929_p13 = pnand %p2928_p11, %p2922_p6 }
  0x61   : > { %2932 = shalt.err (!%p2929_p13)
}
  0x62   : > { %2678 = dma.hbm_to_vmem [thread:$0]  (!%p3069_p8), %s3122_s13, 2048, %s3127_s24, %s3087_s21, %s2977_s18, %s2977_s18, %s2978_s30  }
  0x63   : > { %p3583_p10 = scmp.ne.s32.totalorder %s3582_s4, 0 }
  0x64   : > { %s323_s23 = sand.u32 (!%p3583_p10), 1, %s2963_s25   ;;  %p3584_p9 = scmp.ne.s32.totalorder (!%p3583_p10), %s3578_s10, 0 }
  0x65   : > { %321 = sbr.rel (%p3583_p10) target bundleno = 4451 (0x1163), region = 48  ;;  %s2342_s20 = sshll.u32 (!%p3583_p10), %s323_s23, 6 }
  0x66   : > { %s324_s8 = scalar_lea.sflag (!%p3583_p10), [#allocation4], %s323_s23  ;;  %s3198_s17 = scalar_lea.vmem (!%p3583_p10), [#allocation3], %s2342_s20 }
  0x6c   : > { %2950 = dma.done.wait (%p3584_p9), %s324_s8, 1024  }
  0x6d   : > { %2952 = vsyncadd (%p3584_p9), %s324_s8, 4294966272  ;;  %s332_s12 = sand.u32 1, %s3045_s28   ;;  %s2343_s16 = sshll.u32 %s323_s23, 7 }
  0x6e   : > { %s333_s21 = scalar_lea.sflag [#allocation6], %s332_s12  ;;  %s3205_s13 = scalar_lea.vmem [#allocation5], %s2343_s16 }
  0x6f   : > { %2954 = dma.done.wait (%p3584_p9), %s333_s21, 4096  }
  0x70   : > { %2956 = vsyncadd (%p3584_p9), %s333_s21, 4294963200  ;;  %p391_p8 = scmp.lt.s32.totalorder %s3045_s28, 1  ;;  %s3223_s14 = scalar_lea.vmem [#allocation7], %s2343_s16 }
  0x71   : > { %p2347_p0 = scmp.ne.s32.totalorder %s3045_s28, 0 }
  0x72   : > { %s392_s4 = scalar_select %p391_p8, %s3045_s28, 1 }
  0x73   : > { %405 = sbr.rel (%p2347_p0) target bundleno = 122 (0x7a), region = 64  ;;  %v406_v0 = vld [vmem:[%s3568_s0] sm:$0xff] (!%p2347_p0)  ;;  %v407_v2 = vld [vmem:[%s3568_s0 + $0x8] sm:$0xff] (!%p2347_p0) }
  0x74   : > { %s2661_s24 = smul.u32 192, %s392_s4  ;;  %v410_v1 = vld [vmem:[%s3569_s1] sm:$0xff] (!%p2347_p0)  ;;  %v408_v3 = vmul.f32 (!%p2347_p0), 11.313708, %v406_v0  ;;  %v409_v4 = vmul.f32 (!%p2347_p0), 11.313708, %v407_v2 }
  0x75   : > { %s2662_s18 = smul.u32 24, %s392_s4  ;;  %v411_v5 = vld [vmem:[%s3569_s1 + $0x8] sm:$0xff] (!%p2347_p0) }
  0x76   : > { %s3216_s19 = scalar_lea.vmem %s3570_s2, %s2661_s24  ;;  %v412_v6 = vadd.f32 (!%p2347_p0), %v410_v1, %v408_v3  ;;  %v413_v7 = vadd.f32 (!%p2347_p0), %v411_v5, %v409_v4 }
  0x77   : > { %s3221_s15 = scalar_lea.vmem %s3574_s6, %s2662_s18 }
  0x78   : > { %414 = vst [vmem:[#allocation2] sm:$0xff] (!%p2347_p0), %v412_v6  ;;  %415 = vst [vmem:[#allocation2 + $0x8] sm:$0xff] (!%p2347_p0), %v413_v7 }
  0x7a PF: > { %v2722_v8 = vld [vmem:[%s3216_s19 + $0x4] ss:$12 sps:$4 sm:$0xff]   ;;  %v2724_v9 = vld [vmem:[%s3216_s19] ss:$12 sps:$4 sm:$0xff]   ;;  %v2980_v10 = vmov 0   ;;  %v2981_v11 = vmov 0.0   ;;  %v454_v37 = vlaneseq }
  0x7b   : > { %626 = vmatprep.mubr.bf16.mxu0 %v2980_v10  ;;  %2513 = vmatprep.subr.bf16.mxu1 %v2981_v11  ;;  %v2725_v12 = vld [vmem:[%s3216_s19 + $0x1c] ss:$12 sps:$4 sm:$0xff]   ;;  %v2727_v13 = vld [vmem:[%s3216_s19 + $0x18] ss:$12 sps:$4 sm:$0xff]   ;;  %v2728_v14 = vld [vmem:[%s3216_s19 + $0x34] ss:$12 sps:$4 sm:$0xff]  }
  0x7c   : > { %594 = vmatprep.subr.bf16.mxu0 %v2722_v8  ;;  %v2730_v15 = vld [vmem:[%s3216_s19 + $0x30] ss:$12 sps:$4 sm:$0xff]   ;;  %v2731_v16 = vld [vmem:[%s3216_s19 + $0x4c] ss:$12 sps:$4 sm:$0xff]   ;;  %v2733_v17 = vld [vmem:[%s3216_s19 + $0x48] ss:$12 sps:$4 sm:$0xff]  }
  0x7d   : > { %595 = vmatpush1.bf16.msra.mxu0 %v2724_v9  ;;  %v2734_v18 = vld [vmem:[%s3216_s19 + $0x64] ss:$12 sps:$4 sm:$0xff]   ;;  %v2746_v19 = vld [vmem:[%s3216_s19 + $0x8] ss:$12 sps:$4 sm:$0xff]   ;;  %v2747_v20 = vld [vmem:[%s3216_s19 + $0x20] ss:$12 sps:$4 sm:$0xff]  }
  0x7e   : > { %596 = vmatprep.subr.bf16.mxu0 %v2725_v12  ;;  %2514 = vmatpush3.bf16.msra.mxu1 %v2746_v19  ;;  %v2736_v21 = vld [vmem:[%s3216_s19 + $0x60] ss:$12 sps:$4 sm:$0xff]   ;;  %v2737_v22 = vld [vmem:[%s3216_s19 + $0x7c] ss:$12 sps:$4 sm:$0xff]   ;;  %v2739_v23 = vld [vmem:[%s3216_s19 + $0x78] ss:$12 sps:$4 sm:$0xff]  }
  0x7f   : > { %2515 = vmatprep.subr.bf16.mxu1 %v2981_v11  ;;  %v2740_v24 = vld [vmem:[%s3216_s19 + $0x94] ss:$12 sps:$4 sm:$0xff]   ;;  %v2748_v25 = vld [vmem:[%s3216_s19 + $0x38] ss:$12 sps:$4 sm:$0xff]   ;;  %v2749_v26 = vld [vmem:[%s3216_s19 + $0x50] ss:$12 sps:$4 sm:$0xff]  }
  0x80   : > { %v2742_v27 = vld [vmem:[%s3216_s19 + $0x90] ss:$12 sps:$4 sm:$0xff]   ;;  %v2743_v28 = vld [vmem:[%s3216_s19 + $0xac] ss:$12 sps:$4 sm:$0xff]   ;;  %v2750_v29 = vld [vmem:[%s3216_s19 + $0x68] ss:$12 sps:$4 sm:$0xff]  }
  0x81   : > { %597 = vmatpush1.bf16.msra.mxu0 %v2727_v13  ;;  %v2745_v30 = vld [vmem:[%s3216_s19 + $0xa8] ss:$12 sps:$4 sm:$0xff]   ;;  %v3264_v31 = vld [vmem:[#allocation2] sm:$0xff]  ;;  %v2753_v36 = vld [vmem:[%s3216_s19 + $0xb0] ss:$12 sps:$4 sm:$0xff]   ;;  %vm2982_vm0 = vmmov 0  }
  0x82   : > { %598 = vmatprep.subr.bf16.mxu0 %v2728_v14  ;;  %2516 = vmatpush3.bf16.msra.mxu1 %v2747_v20  ;;  %v3266_v32 = vld [vmem:[#allocation2 + $0x8] sm:$0xff]  ;;  %v2752_v35 = vld [vmem:[%s3216_s19 + $0x98] ss:$12 sps:$4 sm:$0xff]   ;;  %v3285_v38 = vshrl.u32 %v454_v37, 7  ;;  %vm698_vm1 = vcmask 261120   ;;  %s2983_s24 = smov 96  }
  0x83   : > { %2517 = vmatprep.subr.bf16.mxu1 %v2981_v11  ;;  %v2751_v33 = vld [vmem:[%s3216_s19 + $0x80] ss:$12 sps:$4 sm:$0xff]   ;;  %v421_v34 = vpack.c.bf16 %v3266_v32, %v3264_v31  ;;  %2529 = vmatprep.mubr.msk.bf16.mxu1 %vm2982_vm0, %v2981_v11  ;;  %v3321_v58 = vld [vmem:[%s3221_s15 + $0x10] sm:$0xff]  ;;  %vm821_vm2 = vcmask 1043456   ;;  %vm791_vm3 = vcmask 64512   ;;  %s2984_s18 = smov 64  }
  0x84   : > { %v456_v39 = vsub.s32 0, %v3285_v38  ;;  %v3289_v40 = vld [vmem:[%s3221_s15 + $0x8] sm:$0xff]  ;;  %v3293_v43 = vld [vmem:[%s3221_s15] sm:$0xff]  ;;  %s2985_s30 = smov 32   ;;  %p2432_p7 = scmp.ne.s32.totalorder %s3045_s28, 1 }
  0x85   : > { %599 = vmatpush1.bf16.msra.mxu0 %v2730_v15 }
  0x86   : > { %600 = vmatprep.subr.bf16.mxu0 %v2731_v16  ;;  %2518 = vmatpush3.bf16.msra.mxu1 %v2748_v25  ;;  %v461_v41 = vrot.slane %v3289_v40, %v456_v39  ;;  %v457_v48 = vrot.slane %v3293_v43, %v456_v39  ;;  %v465_v59 = vrot.slane %v3321_v58, %v456_v39 }
  0x87   : > { %2519 = vmatprep.subr.bf16.mxu1 %v2981_v11 }
  0x89   : > { %601 = vmatpush1.bf16.msra.mxu0 %v2733_v17 }
  0x8a   : > { %602 = vmatprep.subr.bf16.mxu0 %v2734_v18  ;;  %2520 = vmatpush3.bf16.msra.mxu1 %v2749_v26 }
  0x8b   : > { %2521 = vmatprep.subr.bf16.mxu1 %v2981_v11 }
  0x8d   : > { %603 = vmatpush1.bf16.msra.mxu0 %v2736_v21 }
  0x8e   : > { %604 = vmatprep.subr.bf16.mxu0 %v2737_v22  ;;  %2522 = vmatpush3.bf16.msra.mxu1 %v2750_v29 }
  0x8f   : > { %2523 = vmatprep.subr.bf16.mxu1 %v2981_v11 }
  0x91   : > { %605 = vmatpush1.bf16.msra.mxu0 %v2739_v23 }
  0x92   : > { %606 = vmatprep.subr.bf16.mxu0 %v2740_v24  ;;  %2524 = vmatpush3.bf16.msra.mxu1 %v2751_v33 }
  0x93   : > { %2525 = vmatprep.subr.bf16.mxu1 %v2981_v11 }
  0x95   : > { %607 = vmatpush1.bf16.msra.mxu0 %v2742_v27 }
  0x96   : > { %608 = vmatprep.subr.bf16.mxu0 %v2743_v28  ;;  %2526 = vmatpush3.bf16.msra.mxu1 %v2752_v35 }
  0x97   : > { %2527 = vmatprep.subr.bf16.mxu1 %v2981_v11 }
  0x99   : > { %609 = vmatpush1.bf16.msra.mxu0 %v2745_v30 }
  0x9a   : > { %2533 = vmatprep.subr.bf16.mxu0 %v2981_v11  ;;  %2528 = vmatpush3.bf16.msra.mxu1 %v2753_v36 }
  0x9b   : > { %2539 = vmatprep.subr.bf16.mxu1 %v2981_v11 }
  0x9c   : > { %627 = vmatmul.mubr.bf16.vlgmr.msra.gmra.mrb[0].mxu0 %v421_v34 }
  0x9d   : > { %2535 = vmatprep.mubr.msk.bf16.mxu0 %vm2982_vm0, %v2981_v11  ;;  %2530 = vmatmul.mubr.bf16.vlgmr.msra.gmra.mrb[0].mxu1 %v421_v34 }
  0x9e   : > { %2541 = vmatprep.mubr.msk.bf16.mxu1 %vm2982_vm0, %v2981_v11 }
 0x16f   : > { %v628_v42 = vpop.f32.mrb[0].mxu0 }
 0x170   : > { %v630_v44 = vpop.f32.mrb[1].mxu0  ;;  %v629_v53 = vadd.f32 %v628_v42, %v457_v48  ;;  %v671_v60 = vpop.f32.mrb[0].mxu1 }
 0x171   : > { %v631_v45 = vadd.f32 %v630_v44, %v461_v41  ;;  %v632_v46 = vpop.f32.mrb[2].mxu0  ;;  %v672_v61 = vadd.f32 %v671_v60, %v465_v59  ;;  %v2531_v62 = vpop.f32.mrb[1].mxu1 }
 0x172   : > { %v634_v47 = vpop.f32.mrb[3].mxu0  ;;  %v633_v55 = vadd.f32 %v632_v46, %v457_v48  ;;  %v3308_v56 = vpack.c.bf16 %v629_v53, %v629_v53  ;;  %v674_v63 = vpop.f32.mrb[2].mxu1 }
 0x173   : > { %v3296_v49 = vpack.c.bf16 %v631_v45, %v631_v45  ;;  %v635_v50 = vadd.f32 %v634_v47, %v461_v41  ;;  %v675_v0 = vadd.f32 %v674_v63, %v465_v59  ;;  %v2532_v1 = vpop.f32.mrb[3].mxu1  ;;  %v3324_v2 = vpack.c.bf16 %v672_v61, %v672_v61 }
 0x174   : > { %v3310_v57 = vpack.c.bf16 %v633_v55, %v633_v55 }
 0x175   : > { %v3298_v51 = vpack.c.bf16 %v635_v50, %v635_v50  ;;  %v703_v52 = vsel %vm698_vm1, %v3296_v49, 0  ;;  %v3326_v3 = vpack.c.bf16 %v675_v0, %v675_v0  ;;  %v823_v4 = vsel %vm821_vm2, %v3324_v2, 0 }
 0x176   : > { %2534 = vmatpush3.bf16.xpose.msra.mxu0 %v703_v52 }
 0x177   : > { %968 = vrot.lane.b32.xlu1 %v3298_v51, %s2983_s24  ;;  %v749_v54 = vsel %vm698_vm1, %v3298_v51, 0  ;;  %2545 = vmatprep.subr.bf16.mxu0 %v2981_v11  ;;  %v869_v5 = vsel %vm821_vm2, %v3326_v3, 0 }
 0x178   : > { %2540 = vmatpush3.bf16.xpose.msra.mxu1 %v749_v54 }
 0x179   : > { %2551 = vmatprep.subr.bf16.mxu1 %v2981_v11 }
 0x17d   : > { %2536 = vmatmul.mubr.msk.bf16.vlgmr.msra.gmra.mrb[4].mxu0 %vm698_vm1, %v3308_v56 }
 0x17e   : > { %2547 = vmatprep.mubr.msk.bf16.mxu0 %vm2982_vm0, %v2981_v11  ;;  %2546 = vmatpush3.bf16.msra.mxu0 %v823_v4 }
 0x17f   : > { %2542 = vmatmul.mubr.msk.bf16.vlgmr.msra.gmra.mrb[4].mxu1 %vm698_vm1, %v3310_v57  ;;  %2557 = vmatprep.subr.bf16.mxu0 %v2981_v11 }
 0x180   : > { %2553 = vmatprep.mubr.msk.bf16.mxu1 %vm2982_vm0, %v2981_v11  ;;  %2552 = vmatpush3.bf16.msra.mxu1 %v869_v5 }
 0x181   : > { %2563 = vmatprep.subr.bf16.mxu1 %v2981_v11 }
 0x1e9   : > { %v969_v28 = vpop.permute.xlu1 %968 }
 0x1ea   : > { %v974_v44 = vsel %vm698_vm1, %v969_v28, 0 }
 0x250   : > { %v739_v6 = vpop.f32.mrb[4].mxu0 }
 0x251   : > { %v2537_v7 = vpop.f32.mrb[5].mxu0  ;;  %v792_v8 = vsel %vm791_vm3, %v739_v6, -inf }
 0x252   : > { %v785_v9 = vpop.f32.mrb[4].mxu1  ;;  %793 = vmax.xlane.f32.xlu0 %v792_v8  ;;  %v742_v12 = vpop.f32.mrb[6].mxu0 }
 0x253   : > { %v2538_v13 = vpop.f32.mrb[7].mxu0  ;;  %v2543_v14 = vpop.f32.mrb[5].mxu1  ;;  %v795_v17 = vsel %vm791_vm3, %v785_v9, -inf }
 0x254   : > { %v788_v15 = vpop.f32.mrb[6].mxu1 }
 0x255   : > { %v2544_v16 = vpop.f32.mrb[7].mxu1 }
 0x256   : > { %796 = vmax.xlane.f32.xlu0 %v795_v17 }
 0x26c   : > { %916 = vrot.lane.b32.xlu0 %v3296_v49, %s2983_s24 }
 0x2df   : > { %v794_v18 = vpop.xlane.xlu0 %793 }
 0x2e0   : > { %v798_v19 = vsub.f32 %v739_v6, %v794_v18 }
 0x2e2   : > { %v800_v20 = vmul.f32 1.442695, %v798_v19 }
 0x2e3   : > { %v797_v21 = vpop.xlane.xlu0 %796 }
 0x2e4   : > { %2802 = vpow2.f32 %v800_v20  ;;  %v799_v22 = vsub.f32 %v785_v9, %v797_v21 }
 0x2e6   : > { %v802_v23 = vmul.f32 1.442695, %v799_v22 }
 0x2e7   : > { %v917_v35 = vpop.permute.xlu0 %916 }
 0x2e8   : > { %2804 = vpow2.f32 %v802_v23  ;;  %v922_v39 = vsel %vm698_vm1, %v917_v35, 0  ;;  %v2754_v35 = vld [vmem:[%s3198_s17] sm:$0xff]  }
 0x2ee   : > { %v2803_v24 = vpop.eup %2802 }
 0x2ef   : > { %v804_v25 = vsel %vm791_vm3, %v2803_v24, 0.0 }
 0x2f0   : > { %805 = vadd.xlane.f32.xlu1 %v804_v25 }
 0x2f2   : > { %v2805_v26 = vpop.eup %2804 }
 0x2f3   : > { %v807_v27 = vsel %vm791_vm3, %v2805_v26, 0.0 }
 0x2f4   : > { %808 = vadd.xlane.f32.xlu1 %v807_v27 }
 0x305   : > { %913 = vrot.lane.b32.xlu1 %v3308_v56, %s2983_s24 }
 0x309   : > { %965 = vrot.lane.b32.xlu1 %v3310_v57, %s2983_s24 }
 0x37d   : > { %v806_v29 = vpop.xlane.xlu1 %805 }
 0x37e   : > { %2806 = vrcp.f32 %v806_v29  ;;  %v2756_v29 = vld [vmem:[%s3198_s17 + $0x10] sm:$0xff]  }
 0x381   : > { %v809_v30 = vpop.xlane.xlu1 %808 }
 0x382   : > { %2808 = vrcp.f32 %v809_v30 }
 0x385   : > { %v914_v45 = vpop.permute.xlu1 %913 }
 0x388   : > { %v2807_v33 = vpop.eup %2806 }
 0x389   : > { %v812_v34 = vmul.f32 %v2807_v33, %v2803_v24  ;;  %v966_v46 = vpop.permute.xlu1 %965 }
 0x38b   : > { %v814_v36 = vpack.c.bf16 %v812_v34, %v812_v34 }
 0x38c   : > { %v2809_v37 = vpop.eup %2808 }
 0x38d   : > { %v813_v41 = vmul.f32 %v2809_v37, %v2805_v26  ;;  %2548 = vmatmul.mubr.msk.bf16.vlgmr.msra.gmra.mrb[8].mxu0 %vm791_vm3, %v814_v36  ;;  %v2757_v37 = vld [vmem:[%s3198_s17 + $0x18] sm:$0xff]  }
 0x38e   : > { %2558 = vmatpush3.bf16.xpose.msra.mxu0 %v922_v39  ;;  %2559 = vmatprep.mubr.msk.bf16.mxu0 %vm2982_vm0, %v2981_v11  ;;  %v2755_v39 = vld [vmem:[%s3198_s17 + $0x8] sm:$0xff]  }
 0x38f   : > { %v815_v42 = vpack.c.bf16 %v813_v41, %v813_v41  ;;  %2569 = vmatprep.subr.bf16.mxu0 %v2981_v11 }
 0x391   : > { %2554 = vmatmul.mubr.msk.bf16.vlgmr.msra.gmra.mrb[8].mxu1 %vm791_vm3, %v815_v42 }
 0x392   : > { %2564 = vmatpush3.bf16.xpose.msra.mxu1 %v974_v44  ;;  %2565 = vmatprep.mubr.msk.bf16.mxu1 %vm2982_vm0, %v2981_v11 }
 0x393   : > { %2575 = vmatprep.subr.bf16.mxu1 %v2981_v11 }
 0x395   : > { %2560 = vmatmul.mubr.msk.bf16.vlgmr.msra.gmra.mrb[12].mxu0 %vm698_vm1, %v914_v45 }
 0x396   : > { %2571 = vmatprep.mubr.msk.bf16.mxu0 %vm2982_vm0, %v2981_v11 }
 0x399   : > { %2566 = vmatmul.mubr.msk.bf16.vlgmr.msra.gmra.mrb[12].mxu1 %vm698_vm1, %v966_v46 }
 0x39a   : > { %2577 = vmatprep.mubr.msk.bf16.mxu1 %vm2982_vm0, %v2981_v11 }
 0x460   : > { %v3360_v47 = vpop.f32.mrb[8].mxu0 }
 0x461   : > { %v2549_v48 = vpop.f32.mrb[9].mxu0 }
 0x462   : > { %v862_v50 = vpop.f32.mrb[10].mxu0 }
 0x463   : > { %v2550_v52 = vpop.f32.mrb[11].mxu0 }
 0x464   : > { %v3362_v53 = vpop.f32.mrb[8].mxu1 }
 0x465   : > { %v911_v54 = vpack.c.bf16 %v3362_v53, %v3360_v47  ;;  %v2555_v55 = vpop.f32.mrb[9].mxu1 }
 0x466   : > { %v908_v59 = vpop.f32.mrb[10].mxu1 }
 0x467   : > { %v2556_v60 = vpop.f32.mrb[11].mxu1 }
 0x468   : > { %v958_v61 = vpop.f32.mrb[12].mxu0 }
 0x469   : > { %v2561_v62 = vpop.f32.mrb[13].mxu0  ;;  %v1016_v63 = vsel %vm791_vm3, %v958_v61, -inf }
 0x46a   : > { %1017 = vmax.xlane.f32.xlu0 %v1016_v63  ;;  %v961_v0 = vpop.f32.mrb[14].mxu0 }
 0x46b   : > { %v2562_v1 = vpop.f32.mrb[15].mxu0 }
 0x46c   : > { %v1010_v4 = vpop.f32.mrb[12].mxu1 }
 0x46d   : > { %v2567_v5 = vpop.f32.mrb[13].mxu1  ;;  %v1019_v6 = vsel %vm791_vm3, %v1010_v4, -inf }
 0x46e   : > { %1020 = vmax.xlane.f32.xlu1 %v1019_v6  ;;  %v1013_v7 = vpop.f32.mrb[14].mxu1 }
 0x46f   : > { %v2568_v8 = vpop.f32.mrb[15].mxu1 }
 0x47f   : > { %1090 = vrot.lane.b32.xlu1 %v3326_v3, %s2983_s24 }
 0x483   : > { %1253 = vrot.lane.b32.xlu1 %v3296_v49, %s2984_s18 }
 0x487   : > { %1303 = vrot.lane.b32.xlu1 %v3298_v51, %s2984_s18 }
 0x48b   : > { %1301 = vrot.lane.b32.xlu1 %v3310_v57, %s2984_s18 }
 0x4f7   : > { %v1018_v9 = vpop.xlane.xlu0 %1017 }
 0x4f8   : > { %v1022_v12 = vsub.f32 %v958_v61, %v1018_v9 }
 0x4fa   : > { %v1024_v13 = vmul.f32 1.442695, %v1022_v12 }
 0x4fb   : > { %v1021_v14 = vpop.xlane.xlu1 %1020 }
 0x4fc   : > { %2810 = vpow2.f32 %v1024_v13  ;;  %v1023_v15 = vsub.f32 %v1010_v4, %v1021_v14 }
 0x4fe   : > { %v1026_v16 = vmul.f32 1.442695, %v1023_v15 }
 0x4ff   : > { %v1091_v17 = vpop.permute.xlu1 %1090 }
 0x500   : > { %2812 = vpow2.f32 %v1026_v16  ;;  %v1096_v18 = vsel %vm821_vm2, %v1091_v17, 0 }
 0x501   : > { %2576 = vmatpush3.bf16.msra.mxu1 %v1096_v18 }
 0x502   : > { %2589 = vmatprep.subr.bf16.mxu1 %v2981_v11 }
 0x503   : > { %v1254_v41 = vpop.permute.xlu1 %1253 }
 0x504   : > { %v1259_v59 = vsel %vm698_vm1, %v1254_v41, 0 }
 0x506   : > { %v2811_v19 = vpop.eup %2810 }
 0x507   : > { %v1028_v20 = vsel %vm791_vm3, %v2811_v19, 0.0  ;;  %v1304_v42 = vpop.permute.xlu1 %1303 }
 0x508   : > { %1029 = vadd.xlane.f32.xlu0 %v1028_v20  ;;  %v1309_v44 = vsel %vm698_vm1, %v1304_v42, 0 }
 0x50a   : > { %v2813_v21 = vpop.eup %2812 }
 0x50b   : > { %v1031_v22 = vsel %vm791_vm3, %v2813_v21, 0.0  ;;  %v1302_v45 = vpop.permute.xlu1 %1301 }
 0x50c   : > { %1032 = vadd.xlane.f32.xlu0 %v1031_v22 }
 0x522   : > { %1041 = vrot.lane.b32.xlu0 %v3324_v2, %s2983_s24 }
 0x526   : > { %1251 = vrot.lane.b32.xlu0 %v3308_v56, %s2984_s18 }
 0x595   : > { %v1030_v23 = vpop.xlane.xlu0 %1029 }
 0x596   : > { %2814 = vrcp.f32 %v1030_v23 }
 0x599   : > { %v1033_v24 = vpop.xlane.xlu0 %1032 }
 0x59a   : > { %2816 = vrcp.f32 %v1033_v24 }
 0x59d   : > { %v1042_v25 = vpop.permute.xlu0 %1041 }
 0x59e   : > { %v1047_v26 = vsel %vm821_vm2, %v1042_v25, 0 }
 0x59f   : > { %2570 = vmatpush3.bf16.msra.mxu0 %v1047_v26 }
 0x5a0   : > { %v2815_v27 = vpop.eup %2814  ;;  %2581 = vmatprep.subr.bf16.mxu0 %v2981_v11 }
 0x5a1   : > { %v1036_v28 = vmul.f32 %v2815_v27, %v2811_v19  ;;  %v1252_v63 = vpop.permute.xlu0 %1251 }
 0x5a3   : > { %v1038_v30 = vpack.c.bf16 %v1036_v28, %v1036_v28 }
 0x5a4   : > { %v2817_v33 = vpop.eup %2816 }
 0x5a5   : > { %v1037_v34 = vmul.f32 %v2817_v33, %v2813_v21  ;;  %2572 = vmatmul.mubr.msk.bf16.vlgmr.msra.gmra.mrb[16].mxu0 %vm791_vm3, %v1038_v30 }
 0x5a6   : > { %2582 = vmatpush3.bf16.msra.mxu0 %v2756_v29  ;;  %2585 = vmatprep.mubr.msk.bf16.mxu0 %vm2982_vm0, %v2981_v11 }
 0x5a7   : > { %v1039_v36 = vpack.c.bf16 %v1037_v34, %v1037_v34  ;;  %2583 = vmatprep.subr.bf16.mxu0 %v2981_v11 }
 0x5a9   : > { %2578 = vmatmul.mubr.msk.bf16.vlgmr.msra.gmra.mrb[16].mxu1 %vm791_vm3, %v1039_v36 }
 0x5aa   : > { %2590 = vmatpush3.bf16.msra.mxu1 %v2754_v35  ;;  %2593 = vmatprep.mubr.msk.bf16.mxu1 %vm2982_vm0, %v2981_v11 }
 0x5ab   : > { %2591 = vmatprep.subr.bf16.mxu1 %v2981_v11  ;;  %2584 = vmatpush3.bf16.msra.mxu0 %v2757_v37 }
 0x5ac   : > { %2597 = vmatprep.subr.bf16.mxu0 %v2981_v11 }
 0x5ae   : > { %2592 = vmatpush3.bf16.msra.mxu1 %v2755_v39 }
 0x5af   : > { %2603 = vmatprep.subr.bf16.mxu1 %v2981_v11 }
 0x5b1   : > { %2594 = vmatmul.mubr.msk.bf16.vlgmr.msra.gmra.mrb[20].mxu1 %vm698_vm1, %v911_v54 }
 0x5b2   : > { %2605 = vmatprep.mubr.msk.bf16.mxu1 %vm2982_vm0, %v2981_v11 }
 0x5b7   : > { %2604 = vmatpush3.bf16.xpose.msra.mxu1 %v1309_v44 }
 0x5b8   : > { %2615 = vmatprep.subr.bf16.mxu1 %v2981_v11 }
 0x5be   : > { %2606 = vmatmul.mubr.msk.bf16.vlgmr.msra.gmra.mrb[24].mxu1 %vm698_vm1, %v1302_v45 }
 0x5bf   : > { %2617 = vmatprep.mubr.msk.bf16.mxu1 %vm2982_vm0, %v2981_v11 }
 0x678   : > { %v1083_v46 = vpop.f32.mrb[16].mxu0 }
 0x679   : > { %v2573_v48 = vpop.f32.mrb[17].mxu0 }
 0x67a   : > { %v1086_v47 = vpop.f32.mrb[18].mxu0 }
 0x67b   : > { %v2574_v50 = vpop.f32.mrb[19].mxu0  ;;  %v2758_v47 = vld [vmem:[%s3198_s17 + $0x20] sm:$0xff]  }
 0x67c   : > { %v1132_v52 = vpop.f32.mrb[16].mxu1 }
 0x67d   : > { %v1138_v53 = vpack.c.bf16 %v1132_v52, %v1083_v46  ;;  %v2579_v54 = vpop.f32.mrb[17].mxu1 }
 0x67e   : > { %v1135_v55 = vpop.f32.mrb[18].mxu1 }
 0x67f   : > { %v2580_v60 = vpop.f32.mrb[19].mxu1  ;;  %2586 = vmatmul.mubr.msk.bf16.vlgmr.msra.gmra.mrb[20].mxu0 %vm698_vm1, %v1138_v53  ;;  %v2759_v55 = vld [vmem:[%s3198_s17 + $0x28] sm:$0xff]  }
 0x680   : > { %2598 = vmatpush3.bf16.xpose.msra.mxu0 %v1259_v59  ;;  %2599 = vmatprep.mubr.msk.bf16.mxu0 %vm2982_vm0, %v2981_v11 }
 0x681   : > { %2609 = vmatprep.subr.bf16.mxu0 %v2981_v11 }
 0x684   : > { %v1244_v61 = vpop.f32.mrb[20].mxu1 }
 0x685   : > { %v2595_v62 = vpop.f32.mrb[21].mxu1 }
 0x686   : > { %v1247_v0 = vpop.f32.mrb[22].mxu1 }
 0x687   : > { %v2596_v1 = vpop.f32.mrb[23].mxu1  ;;  %2600 = vmatmul.mubr.msk.bf16.vlgmr.msra.gmra.mrb[24].mxu0 %vm698_vm1, %v1252_v63 }
 0x688   : > { %2611 = vmatprep.mubr.msk.bf16.mxu0 %vm2982_vm0, %v2981_v11 }
 0x691   : > { %v1345_v4 = vpop.f32.mrb[24].mxu1 }
 0x692   : > { %v2607_v5 = vpop.f32.mrb[25].mxu1  ;;  %v1354_v6 = vsel %vm791_vm3, %v1345_v4, -inf }
 0x693   : > { %1355 = vmax.xlane.f32.xlu1 %v1354_v6  ;;  %v1348_v7 = vpop.f32.mrb[26].mxu1 }
 0x694   : > { %v2608_v8 = vpop.f32.mrb[27].mxu1 }
 0x6a4   : > { %1423 = vrot.lane.b32.xlu1 %v3326_v3, %s2984_s18 }
 0x6a8   : > { %1532 = vrot.lane.b32.xlu1 %v3296_v49, %s2985_s30 }
 0x6ac   : > { %1582 = vrot.lane.b32.xlu1 %v3298_v51, %s2985_s30 }
 0x6b0   : > { %1580 = vrot.lane.b32.xlu1 %v3310_v57, %s2985_s30 }
 0x720   : > { %v1356_v9 = vpop.xlane.xlu1 %1355 }
 0x721   : > { %v1358_v14 = vsub.f32 %v1345_v4, %v1356_v9 }
 0x723   : > { %v1361_v15 = vmul.f32 1.442695, %v1358_v14 }
 0x724   : > { %v1424_v12 = vpop.permute.xlu1 %1423 }
 0x725   : > { %v1429_v13 = vsel %vm821_vm2, %v1424_v12, 0  ;;  %2818 = vpow2.f32 %v1361_v15 }
 0x726   : > { %2616 = vmatpush3.bf16.msra.mxu1 %v1429_v13 }
 0x727   : > { %2629 = vmatprep.subr.bf16.mxu1 %v2981_v11 }
 0x728   : > { %v1533_v36 = vpop.permute.xlu1 %1532 }
 0x729   : > { %v1538_v39 = vsel %vm698_vm1, %v1533_v36, 0 }
 0x72f   : > { %v2819_v22 = vpop.eup %2818 }
 0x730   : > { %v1366_v25 = vsel %vm791_vm3, %v2819_v22, 0.0 }
 0x752   : > { %v1188_v16 = vpop.f32.mrb[20].mxu0 }
 0x753   : > { %v3430_v17 = vadd.f32 %v1244_v61, %v1188_v16  ;;  %v2587_v49 = vpop.f32.mrb[21].mxu0 }
 0x754   : > { %v1191_v18 = vpop.f32.mrb[22].mxu0 }
 0x755   : > { %v3432_v19 = vadd.f32 %v1247_v0, %v1191_v18  ;;  %v2588_v51 = vpop.f32.mrb[23].mxu0  ;;  %v1583_v0 = vpop.permute.xlu1 %1582 }
 0x756   : > { %v1588_v7 = vsel %vm698_vm1, %v1583_v0, 0 }
 0x759   : > { %v1581_v9 = vpop.permute.xlu1 %1580 }
 0x75a   : > { %v1295_v20 = vpop.f32.mrb[24].mxu0 }
 0x75b   : > { %v2601_v57 = vpop.f32.mrb[25].mxu0  ;;  %v1351_v21 = vsel %vm791_vm3, %v1295_v20, -inf }
 0x75c   : > { %1352 = vmax.xlane.f32.xlu0 %v1351_v21  ;;  %v1298_v23 = vpop.f32.mrb[26].mxu0 }
 0x75d   : > { %v2602_v24 = vpop.f32.mrb[27].mxu0 }
 0x760   : > { %1367 = vadd.xlane.f32.xlu0 %v1366_v25 }
 0x7e9   : > { %v1353_v26 = vpop.xlane.xlu0 %1352 }
 0x7ea   : > { %v1357_v27 = vsub.f32 %v1295_v20, %v1353_v26 }
 0x7ec   : > { %v1359_v28 = vmul.f32 1.442695, %v1357_v27 }
 0x7ed   : > { %v1368_v29 = vpop.xlane.xlu0 %1367 }
 0x7ee   : > { %2820 = vpow2.f32 %v1359_v28 }
 0x7ef   : > { %2822 = vrcp.f32 %v1368_v29 }
 0x7f8   : > { %v2821_v30 = vpop.eup %2820 }
 0x7f9   : > { %v2823_v33 = vpop.eup %2822  ;;  %v1363_v34 = vsel %vm791_vm3, %v2821_v30, 0.0 }
 0x7fa   : > { %v1372_v35 = vmul.f32 %v2823_v33, %v2819_v22  ;;  %1364 = vadd.xlane.f32.xlu0 %v1363_v34 }
 0x7fc   : > { %v1374_v37 = vpack.c.bf16 %v1372_v35, %v1372_v35 }
 0x7fe   : > { %2618 = vmatmul.mubr.msk.bf16.vlgmr.msra.gmra.mrb[28].mxu1 %vm791_vm3, %v1374_v37 }
 0x7ff   : > { %2630 = vmatpush3.bf16.xpose.msra.mxu1 %v1538_v39  ;;  %2631 = vmatprep.mubr.msk.bf16.mxu1 %vm2982_vm0, %v2981_v11 }
 0x800   : > { %2641 = vmatprep.subr.bf16.mxu1 %v2981_v11 }
 0x810   : > { %1375 = vrot.lane.b32.xlu0 %v3324_v2, %s2984_s18 }
 0x814   : > { %1530 = vrot.lane.b32.xlu0 %v3308_v56, %s2985_s30 }
 0x887   : > { %v1365_v41 = vpop.xlane.xlu0 %1364 }
 0x888   : > { %2824 = vrcp.f32 %v1365_v41 }
 0x88b   : > { %v1376_v42 = vpop.permute.xlu0 %1375 }
 0x88c   : > { %v1381_v44 = vsel %vm821_vm2, %v1376_v42, 0 }
 0x88d   : > { %2610 = vmatpush3.bf16.msra.mxu0 %v1381_v44 }
 0x88e   : > { %2621 = vmatprep.subr.bf16.mxu0 %v2981_v11 }
 0x88f   : > { %v1531_v45 = vpop.permute.xlu0 %1530 }
 0x890   : > { %2632 = vmatmul.mubr.msk.bf16.vlgmr.msra.gmra.mrb[32].mxu1 %vm698_vm1, %v1531_v45  ;;  %v2760_v45 = vld [vmem:[%s3198_s17 + $0x30] sm:$0xff]  }
 0x891   : > { %2643 = vmatprep.mubr.msk.bf16.mxu1 %vm2982_vm0, %v2981_v11 }
 0x892   : > { %v2825_v46 = vpop.eup %2824 }
 0x893   : > { %v1371_v48 = vmul.f32 %v2825_v46, %v2821_v30  ;;  %v2761_v46 = vld [vmem:[%s3198_s17 + $0x38] sm:$0xff]  }
 0x895   : > { %v1373_v50 = vpack.c.bf16 %v1371_v48, %v1371_v48 }
 0x897   : > { %2612 = vmatmul.mubr.msk.bf16.vlgmr.msra.gmra.mrb[28].mxu0 %vm791_vm3, %v1373_v50 }
 0x898   : > { %2622 = vmatpush3.bf16.msra.mxu0 %v2758_v47  ;;  %2625 = vmatprep.mubr.msk.bf16.mxu0 %vm2982_vm0, %v2981_v11 }
 0x899   : > { %2623 = vmatprep.subr.bf16.mxu0 %v2981_v11 }
 0x89c   : > { %2624 = vmatpush3.bf16.msra.mxu0 %v2759_v55 }
 0x89d   : > { %2635 = vmatprep.subr.bf16.mxu0 %v2981_v11 }
 0x8d1   : > { %v1465_v56 = vpop.f32.mrb[28].mxu1 }
 0x8d2   : > { %v2619_v52 = vpop.f32.mrb[29].mxu1 }
 0x8d3   : > { %v1468_v53 = vpop.f32.mrb[30].mxu1 }
 0x8d4   : > { %v2620_v54 = vpop.f32.mrb[31].mxu1 }
 0x963   : > { %v1574_v59 = vpop.f32.mrb[32].mxu1 }
 0x964   : > { %v2633_v60 = vpop.f32.mrb[33].mxu1  ;;  %v1630_v61 = vsel %vm791_vm3, %v1574_v59, -inf }
 0x965   : > { %1631 = vmax.xlane.f32.xlu0 %v1630_v61  ;;  %v1577_v62 = vpop.f32.mrb[34].mxu1 }
 0x966   : > { %v2634_v63 = vpop.f32.mrb[35].mxu1 }
 0x96a   : > { %v1417_v1 = vpop.f32.mrb[28].mxu0 }
 0x96b   : > { %v1471_v4 = vpack.c.bf16 %v1465_v56, %v1417_v1  ;;  %v2613_v5 = vpop.f32.mrb[29].mxu0 }
 0x96c   : > { %v1420_v6 = vpop.f32.mrb[30].mxu0 }
 0x96d   : > { %v2614_v8 = vpop.f32.mrb[31].mxu0  ;;  %2626 = vmatmul.mubr.msk.bf16.vlgmr.msra.gmra.mrb[32].mxu0 %vm698_vm1, %v1471_v4 }
 0x96e   : > { %2636 = vmatpush3.bf16.xpose.msra.mxu0 %v1588_v7  ;;  %2637 = vmatprep.mubr.msk.bf16.mxu0 %vm2982_vm0, %v2981_v11  ;;  %v2762_v8 = vld [vmem:[%s3205_s13] ss:$8 sps:$4 sm:$0xff]  }
 0x96f   : > { %2647 = vmatprep.subr.bf16.mxu0 %v2981_v11 }
 0x975   : > { %2638 = vmatmul.mubr.msk.bf16.vlgmr.msra.gmra.mrb[36].mxu0 %vm698_vm1, %v1581_v9  ;;  %v2764_v9 = vld [vmem:[%s3205_s13 + $0x4] ss:$8 sps:$4 sm:$0xff]  }
 0x976   : > { %2649 = vmatprep.mubr.msk.bf16.mxu0 %vm2982_vm0, %v2981_v11 }
 0x9f2   : > { %v1632_v12 = vpop.xlane.xlu0 %1631 }
 0x9f3   : > { %v1636_v13 = vsub.f32 %v1574_v59, %v1632_v12  ;;  %v2767_v12 = vld [vmem:[%s3205_s13 + $0x14] ss:$8 sps:$4 sm:$0xff]  }
 0x9f5   : > { %v1638_v14 = vmul.f32 1.442695, %v1636_v13  ;;  %v2765_v13 = vld [vmem:[%s3205_s13 + $0x10] ss:$8 sps:$4 sm:$0xff]  }
 0x9f7   : > { %2826 = vpow2.f32 %v1638_v14 }
 0xa01   : > { %v2827_v15 = vpop.eup %2826 }
 0xa02   : > { %v1642_v16 = vsel %vm791_vm3, %v2827_v15, 0.0 }
 0xa03   : > { %1643 = vadd.xlane.f32.xlu0 %v1642_v16 }
 0xa40   : > { %v1521_v49 = vpop.f32.mrb[32].mxu0 }
 0xa41   : > { %v1528_v18 = vadd.f32 %v1521_v49, %v3430_v17  ;;  %v2627_v51 = vpop.f32.mrb[33].mxu0 }
 0xa42   : > { %v1524_v20 = vpop.f32.mrb[34].mxu0 }
 0xa43   : > { %v1529_v57 = vadd.f32 %v1524_v20, %v3432_v19  ;;  %v2628_v21 = vpop.f32.mrb[35].mxu0  ;;  %v2770_v20 = vld [vmem:[%s3205_s13 + $0x24] ss:$8 sps:$4 sm:$0xff]  }
 0xa44   : > { %v2773_v21 = vld [vmem:[%s3205_s13 + $0x34] ss:$8 sps:$4 sm:$0xff]  }
 0xa48   : > { %v1624_v22 = vpop.f32.mrb[36].mxu0 }
 0xa49   : > { %v2639_v23 = vpop.f32.mrb[37].mxu0  ;;  %v1633_v24 = vsel %vm791_vm3, %v1624_v22, -inf }
 0xa4a   : > { %1634 = vmax.xlane.f32.xlu1 %v1633_v24  ;;  %v1627_v25 = vpop.f32.mrb[38].mxu0  ;;  %v2776_v23 = vld [vmem:[%s3205_s13 + $0x44] ss:$8 sps:$4 sm:$0xff]   ;;  %v2774_v24 = vld [vmem:[%s3205_s13 + $0x40] ss:$8 sps:$4 sm:$0xff]  }
 0xa4b   : > { %v2640_v26 = vpop.f32.mrb[39].mxu0  ;;  %v2779_v25 = vld [vmem:[%s3205_s13 + $0x54] ss:$8 sps:$4 sm:$0xff]  }
 0xa4c   : > { %v2777_v26 = vld [vmem:[%s3205_s13 + $0x50] ss:$8 sps:$4 sm:$0xff]  }
 0xa5b   : > { %1702 = vrot.lane.b32.xlu1 %v3326_v3, %s2985_s30 }
 0xa90   : > { %v1644_v34 = vpop.xlane.xlu0 %1643 }
 0xad7   : > { %v1635_v27 = vpop.xlane.xlu1 %1634 }
 0xad8   : > { %v1637_v28 = vsub.f32 %v1624_v22, %v1635_v27  ;;  %v2771_v22 = vld [vmem:[%s3205_s13 + $0x30] ss:$8 sps:$4 sm:$0xff]   ;;  %v2780_v27 = vld [vmem:[%s3205_s13 + $0x60] ss:$8 sps:$4 sm:$0xff]  }
 0xada   : > { %v1640_v29 = vmul.f32 1.442695, %v1637_v28  ;;  %v2782_v28 = vld [vmem:[%s3205_s13 + $0x64] ss:$8 sps:$4 sm:$0xff]  }
 0xadb   : > { %v1703_v30 = vpop.permute.xlu1 %1702 }
 0xadc   : > { %2828 = vpow2.f32 %v1640_v29  ;;  %v1708_v17 = vsel %vm821_vm2, %v1703_v30, 0  ;;  %v2785_v29 = vld [vmem:[%s3205_s13 + $0x74] ss:$8 sps:$4 sm:$0xff]   ;;  %v2783_v30 = vld [vmem:[%s3205_s13 + $0x70] ss:$8 sps:$4 sm:$0xff]  }
 0xadd   : > { %2648 = vmatpush3.bf16.msra.mxu0 %v1708_v17  ;;  %2830 = vrcp.f32 %v1644_v34  ;;  %v2786_v17 = vld [vmem:[%s3223_s14 + $0x40] sm:$0xff]   ;;  %v2789_v34 = vld [vmem:[%s3223_s14 + $0x8] sm:$0xff]  }
 0xade   : > { %1957 = vmatprep.subr.bf16.mxu0 %v2764_v9 }
 0xae6   : > { %v2829_v19 = vpop.eup %2828 }
 0xae7   : > { %v1645_v33 = vsel %vm791_vm3, %v2829_v19, 0.0  ;;  %v2831_v35 = vpop.eup %2830 }
 0xae8   : > { %1646 = vadd.xlane.f32.xlu0 %v1645_v33  ;;  %v1650_v36 = vmul.f32 %v2831_v35, %v2827_v15  ;;  %v2788_v33 = vld [vmem:[%s3223_s14 + $0x48] sm:$0xff]   ;;  %v2790_v35 = vld [vmem:[%s3223_s14 + $0x50] sm:$0xff]  }
 0xaea   : > { %v1652_v41 = vpack.c.bf16 %v1650_v36, %v1650_v36  ;;  %v2792_v36 = vld [vmem:[%s3223_s14 + $0x58] sm:$0xff]  }
 0xafe   : > { %1654 = vrot.lane.b32.xlu0 %v3324_v2, %s2985_s30 }
 0xb75   : > { %v1647_v3 = vpop.xlane.xlu0 %1646 }
 0xb76   : > { %2832 = vrcp.f32 %v1647_v3  ;;  %v2791_v3 = vld [vmem:[%s3223_s14 + $0x10] sm:$0xff]  }
 0xb79   : > { %v1655_v37 = vpop.permute.xlu0 %1654 }
 0xb7a   : > { %v1660_v39 = vsel %vm821_vm2, %v1655_v37, 0  ;;  %v2793_v37 = vld [vmem:[%s3223_s14 + $0x18] sm:$0xff]  }
 0xb7b   : > { %2642 = vmatpush3.bf16.msra.mxu1 %v1660_v39  ;;  %v2794_v39 = vld [vmem:[%s3223_s14 + $0x60] sm:$0xff]  }
 0xb7c   : > { %2653 = vmatprep.subr.bf16.mxu1 %v2981_v11 }
 0xb7e   : > { %2644 = vmatmul.mubr.msk.bf16.vlgmr.msra.gmra.mrb[36].mxu1 %vm791_vm3, %v1652_v41  ;;  %v2795_v41 = vld [vmem:[%s3223_s14 + $0x20] sm:$0xff]  }
 0xb7f   : > { %2657 = vmatprep.mubr.msk.bf16.mxu1 %vm2982_vm0, %v2981_v11  ;;  %2654 = vmatpush3.bf16.msra.mxu1 %v2760_v45 }
 0xb80   : > { %v2833_v2 = vpop.eup %2832  ;;  %2655 = vmatprep.subr.bf16.mxu1 %v2981_v11 }
 0xb81   : > { %v1651_v42 = vmul.f32 %v2833_v2, %v2829_v19  ;;  %v2787_v19 = vld [vmem:[%s3223_s14] sm:$0xff]   ;;  %v2796_v2 = vld [vmem:[%s3223_s14 + $0x68] sm:$0xff]  }
 0xb83   : > { %v1653_v44 = vpack.c.bf16 %v1651_v42, %v1651_v42  ;;  %2656 = vmatpush3.bf16.msra.mxu1 %v2761_v46 }
 0xb84   : > { %2491 = vmatprep.subr.bf16.mxu1 %v2786_v17 }
 0xb85   : > { %2650 = vmatmul.mubr.msk.bf16.vlgmr.msra.gmra.mrb[40].mxu0 %vm791_vm3, %v1653_v44 }
 0xb86   : > { %1989 = vmatprep.mubr.bf16.mxu0 %v2980_v10  ;;  %v3489_v10 = vsub.s32 1, %v3285_v38  ;;  %1958 = vmatpush1.bf16.msra.mxu0 %v2762_v8 }
 0xb87   : > { %1959 = vmatprep.subr.bf16.mxu0 %v2767_v12 }
 0xb88   : > { %v1812_v11 = vrot.slane %v3293_v43, %v3489_v10 }
 0xb8a   : > { %1960 = vmatpush1.bf16.msra.mxu0 %v2765_v13 }
 0xb8b   : > { %1961 = vmatprep.subr.bf16.mxu0 %v2770_v20 }
 0xc51   : > { %v1696_v48 = vpop.f32.mrb[36].mxu1 }
 0xc52   : > { %v2645_v47 = vpop.f32.mrb[37].mxu1 }
 0xc53   : > { %v1699_v50 = vpop.f32.mrb[38].mxu1 }
 0xc54   : > { %v2646_v56 = vpop.f32.mrb[39].mxu1  ;;  %v1843_v50 = vrot.slane %v3289_v40, %v3489_v10 }
 0xc58   : > { %v1744_v52 = vpop.f32.mrb[40].mxu0 }
 0xc59   : > { %v1750_v53 = vpack.c.bf16 %v1744_v52, %v1696_v48  ;;  %v2651_v54 = vpop.f32.mrb[41].mxu0 }
 0xc5a   : > { %v1747_v55 = vpop.f32.mrb[42].mxu0  ;;  %v1849_v54 = vrot.slane %v3321_v58, %v3489_v10  ;;  %v1871_v10 = vsub.s32 2, %v3285_v38 }
 0xc5b   : > { %v2652_v59 = vpop.f32.mrb[43].mxu0  ;;  %2658 = vmatmul.mubr.msk.bf16.vlgmr.msra.gmra.mrb[40].mxu1 %vm698_vm1, %v1750_v53 }
 0xc5c   : > { %2492 = vmatpush3.bf16.msra.mxu1 %v2787_v19 }
 0xc5d   : > { %2493 = vmatprep.subr.bf16.mxu1 %v2788_v33 }
 0xc60   : > { %2494 = vmatpush3.bf16.msra.mxu1 %v2789_v34 }
 0xc61   : > { %2495 = vmatprep.subr.bf16.mxu1 %v2790_v35 }
 0xc64   : > { %2496 = vmatpush3.bf16.msra.mxu1 %v2791_v3 }
 0xc65   : > { %2497 = vmatprep.subr.bf16.mxu1 %v2792_v36 }
 0xc68   : > { %2498 = vmatpush3.bf16.msra.mxu1 %v2793_v37 }
 0xc69   : > { %2499 = vmatprep.subr.bf16.mxu1 %v2794_v39 }
 0xc6c   : > { %2500 = vmatpush3.bf16.msra.mxu1 %v2795_v41 }
 0xc6d   : > { %2501 = vmatprep.subr.bf16.mxu1 %v2796_v2 }
 0xd2e   : > { %v1800_v60 = vpop.f32.mrb[40].mxu1 }
 0xd2f   : > { %v1807_v61 = vadd.f32 %v1800_v60, %v1528_v18  ;;  %v2659_v62 = vpop.f32.mrb[41].mxu1 }
 0xd30   : > { %v1803_v63 = vpop.f32.mrb[42].mxu1 }
 0xd31   : > { %v1813_v0 = vadd.f32 %v1812_v11, %v1807_v61  ;;  %v1808_v1 = vadd.f32 %v1803_v63, %v1529_v57  ;;  %v2660_v4 = vpop.f32.mrb[43].mxu1  ;;  %v2768_v57 = vld [vmem:[%s3205_s13 + $0x20] ss:$8 sps:$4 sm:$0xff]  }
 0xd32   : > { %1962 = vmatpush1.bf16.msra.mxu0 %v2768_v57  ;;  %v2797_v63 = vld [vmem:[%s3223_s14 + $0x28] sm:$0xff]   ;;  %v2800_v4 = vld [vmem:[%s3223_s14 + $0x78] sm:$0xff]  }
 0xd33   : > { %v1814_v5 = vadd.f32 %v1812_v11, %v1808_v1  ;;  %v1815_v6 = vadd.f32 %v1813_v0, %v3264_v31  ;;  %1963 = vmatprep.subr.bf16.mxu0 %v2773_v21  ;;  %2502 = vmatpush3.bf16.msra.mxu1 %v2797_v63  ;;  %v2798_v0 = vld [vmem:[%s3223_s14 + $0x70] sm:$0xff]   ;;  %v2040_v21 = vsub.s32 3, %v3285_v38 }
 0xd34   : > { %v2799_v1 = vld [vmem:[%s3223_s14 + $0x30] sm:$0xff]   ;;  %2503 = vmatprep.subr.bf16.mxu1 %v2798_v0 }
 0xd35   : > { %1817 = vadd.xlane.f32.xlu1 %v1815_v6  ;;  %v1816_v7 = vadd.f32 %v1814_v5, %v3266_v32  ;;  %v2801_v5 = vld [vmem:[%s3223_s14 + $0x38] sm:$0xff]  }
 0xd36   : > { %1964 = vmatpush1.bf16.msra.mxu0 %v2771_v22 }
 0xd37   : > { %1819 = vadd.xlane.f32.xlu0 %v1816_v7  ;;  %1965 = vmatprep.subr.bf16.mxu0 %v2776_v23 }
 0xd38   : > { %2504 = vmatpush3.bf16.msra.mxu1 %v2799_v1 }
 0xd39   : > { %2505 = vmatprep.subr.bf16.mxu1 %v2800_v4 }
 0xd3a   : > { %1966 = vmatpush1.bf16.msra.mxu0 %v2774_v24 }
 0xd3b   : > { %1967 = vmatprep.subr.bf16.mxu0 %v2779_v25 }
 0xd3c   : > { %2506 = vmatpush3.bf16.msra.mxu1 %v2801_v5 }
 0xd3e   : > { %1968 = vmatpush1.bf16.msra.mxu0 %v2777_v26 }
 0xd3f   : > { %1969 = vmatprep.subr.bf16.mxu0 %v2782_v28 }
 0xd42   : > { %1970 = vmatpush1.bf16.msra.mxu0 %v2780_v27 }
 0xd43   : > { %1971 = vmatprep.subr.bf16.mxu0 %v2785_v29 }
 0xd46   : > { %1972 = vmatpush1.bf16.msra.mxu0 %v2783_v30 }
 0xdc2   : > { %v1818_v14 = vpop.xlane.xlu1 %1817 }
 0xdc3   : > { %v1822_v15 = vmul.f32 0.0078125, %v1818_v14 }
 0xdc4   : > { %v1820_v16 = vpop.xlane.xlu0 %1819 }
 0xdc5   : > { %v3499_v31 = vsub.f32 %v1815_v6, %v1822_v15  ;;  %v1823_v32 = vmul.f32 0.0078125, %v1820_v16  ;;  %v1872_v6 = vrot.slane %v3293_v43, %v1871_v10 }
 0xdc7   : > { %v3501_v49 = vsub.f32 %v1816_v7, %v1823_v32  ;;  %v1826_v18 = vmul.f32 %v3499_v31, %v3499_v31  ;;  %v1876_v7 = vrot.slane %v3289_v40, %v1871_v10  ;;  %v2041_v40 = vrot.slane %v3293_v43, %v2040_v21 }
 0xdc9   : > { %1828 = vadd.xlane.f32.xlu0 %v1826_v18  ;;  %v1827_v51 = vmul.f32 %v3501_v49, %v3501_v49 }
 0xdcb   : > { %1830 = vadd.xlane.f32.xlu1 %v1827_v51 }
 0xe56   : > { %v1829_v42 = vpop.xlane.xlu0 %1828 }
 0xe57   : > { %v1832_v44 = vmul.f32 0.0078125, %v1829_v42 }
 0xe58   : > { %v1831_v45 = vpop.xlane.xlu1 %1830 }
 0xe59   : > { %v1834_v46 = vadd.f32 1e-05, %v1832_v44  ;;  %v1833_v48 = vmul.f32 0.0078125, %v1831_v45  ;;  %v2842_v45 = vld [vmem:[%s3221_s15 + $0x8] sm:$0xff] }
 0xe5b   : > { %2834 = vrsqrt.f32 %v1834_v46  ;;  %v1835_v47 = vadd.f32 1e-05, %v1833_v48  ;;  %v2206_v46 = vrot.slane %v2842_v45, %v2040_v21 }
 0xe5d   : > { %2836 = vrsqrt.f32 %v1835_v47  ;;  %v2212_v47 = vrot.slane %v3321_v58, %v2040_v21 }
 0xe65   : > { %v2835_v56 = vpop.eup %2834 }
 0xe66   : > { %v1838_v52 = vmul.f32 %v2835_v56, %v3499_v31 }
 0xe67   : > { %v2837_v53 = vpop.eup %2836 }
 0xe68   : > { %v1839_v55 = vmul.f32 %v2837_v53, %v3501_v49  ;;  %v1844_v59 = vmul.f32 %v1843_v50, %v1838_v52 }
 0xe6a   : > { %v1845_v11 = vmul.f32 %v1843_v50, %v1839_v55  ;;  %v1850_v60 = vadd.f32 %v1849_v54, %v1844_v59 }
 0xe6c   : > { %v1851_v61 = vadd.f32 %v1849_v54, %v1845_v11 }
 0xe6e   : > { %v1852_v62 = vpack.c.bf16 %v1851_v61, %v1850_v60 }
 0xe70   : > { %1990 = vmatmul.mubr.bf16.vlgmr.msra.gmra.mrb[44].mxu0 %v1852_v62 }
 0xf43   : > { %v1991_v8 = vpop.f32.mrb[44].mxu0 }
 0xf44   : > { %v1992_v9 = vadd.f32 %v1991_v8, %v1872_v6  ;;  %v1993_v12 = vpop.f32.mrb[45].mxu0 }
 0xf45   : > { %v1994_v13 = vadd.f32 %v1993_v12, %v1876_v7  ;;  %v1995_v14 = vpop.f32.mrb[46].mxu0 }
 0xf46   : > { %v1996_v15 = vadd.f32 %v1995_v14, %v1872_v6  ;;  %v1997_v16 = vpop.f32.mrb[47].mxu0  ;;  %v2000_v32 = vmax.f32 %v1992_v9, 0.0 }
 0xf47   : > { %v1998_v31 = vadd.f32 %v1997_v16, %v1876_v7  ;;  %v2001_v18 = vmax.f32 %v1994_v13, 0.0 }
 0xf48   : > { %v2002_v49 = vmax.f32 %v1996_v15, 0.0 }
 0xf49   : > { %v2003_v51 = vmax.f32 %v1998_v31, 0.0 }
 0xf4a   : > { %v2004_v20 = vpack.c.bf16 %v2002_v49, %v2000_v32 }
 0xf4b   : > { %v2005_v57 = vpack.c.bf16 %v2003_v51, %v2001_v18 }
 0xf4d   : > { %2170 = vmatprep.mubr.bf16.mxu1 %v2005_v57 }
 0xf4e   : > { %2171 = vmatmul.mubr.bf16.vlgmr.msra.gmra.mrb[44].mxu1 %v2004_v20 }
0x1021   : > { %v2507_v22 = vpop.f32.mrb[44].mxu1 }
0x1022   : > { %v2508_v23 = vpop.f32.mrb[45].mxu1 }
0x1023   : > { %v2509_v24 = vadd.f32 %v2508_v23, %v2507_v22  ;;  %v2510_v25 = vpop.f32.mrb[46].mxu1 }
0x1024   : > { %v2511_v26 = vpop.f32.mrb[47].mxu1 }
0x1025   : > { %v2173_v27 = vadd.f32 %v2509_v24, %v2041_v40  ;;  %v2512_v28 = vadd.f32 %v2511_v26, %v2510_v25 }
0x1027   : > { %v2176_v29 = vadd.f32 %v2512_v28, %v2041_v40  ;;  %v2179_v30 = vadd.f32 %v2173_v27, %v1850_v60 }
0x1029   : > { %2181 = vadd.xlane.f32.xlu0 %v2179_v30  ;;  %v2180_v17 = vadd.f32 %v2176_v29, %v1851_v61 }
0x102b   : > { %2183 = vadd.xlane.f32.xlu1 %v2180_v17 }
0x10b6   : > { %v2182_v19 = vpop.xlane.xlu0 %2181 }
0x10b7   : > { %v2185_v33 = vmul.f32 0.0078125, %v2182_v19 }
0x10b8   : > { %v2184_v34 = vpop.xlane.xlu1 %2183 }
0x10b9   : > { %v2187_v35 = vsub.f32 %v2179_v30, %v2185_v33  ;;  %v2186_v38 = vmul.f32 0.0078125, %v2184_v34 }
0x10bb   : > { %v2188_v3 = vsub.f32 %v2180_v17, %v2186_v38  ;;  %v2189_v36 = vmul.f32 %v2187_v35, %v2187_v35 }
0x10bd   : > { %2191 = vadd.xlane.f32.xlu0 %v2189_v36  ;;  %v2190_v43 = vmul.f32 %v2188_v3, %v2188_v3 }
0x10bf   : > { %2193 = vadd.xlane.f32.xlu1 %v2190_v43 }
0x114a   : > { %v2192_v37 = vpop.xlane.xlu0 %2191 }
0x114b   : > { %v2195_v39 = vmul.f32 0.0078125, %v2192_v37 }
0x114c   : > { %v2194_v41 = vpop.xlane.xlu1 %2193 }
0x114d   : > { %v2197_v2 = vadd.f32 1e-05, %v2195_v39  ;;  %v2196_v42 = vmul.f32 0.0078125, %v2194_v41 }
0x114f   : > { %2838 = vrsqrt.f32 %v2197_v2  ;;  %v2198_v44 = vadd.f32 1e-05, %v2196_v42 }
0x1151   : > { %2840 = vrsqrt.f32 %v2198_v44 }
0x1159   : > { %v2839_v48 = vpop.eup %2838 }
0x115a   : > { %v2201_v50 = vmul.f32 %v2839_v48, %v2187_v35 }
0x115b   : > { %v2841_v56 = vpop.eup %2840 }
0x115c   : > { %v2207_v52 = vmul.f32 %v2206_v46, %v2201_v50  ;;  %v2202_v53 = vmul.f32 %v2841_v56, %v2188_v3  ;;  %2220 = sbr.rel (%p2432_p7) target bundleno = 4451 (0x1163), region = 68 }
0x115e   : > { %v2213_v54 = vadd.f32 %v2212_v47, %v2207_v52  ;;  %v2208_v55 = vmul.f32 %v2206_v46, %v2202_v53 }
0x1160   : > { %2215 = vst [vmem:[#allocation2] sm:$0xff] %v2213_v54  ;;  %v2214_v59 = vadd.f32 %v2212_v47, %v2208_v55  ;;  %2221 = vst [vmem:[%s3575_s7] sm:$0xff] (!%p2432_p7), %v2213_v54 }
0x1162   : > { %2216 = vst [vmem:[#allocation2 + $0x8] sm:$0xff] %v2214_v59  ;;  %2222 = vst [vmem:[%s3575_s7 + $0x8] sm:$0xff] (!%p2432_p7), %v2214_v59 }
0x1163 PF: > { %p20_p12 = scmp.ge.s32.totalorder %s3048_s29, 4   ;;  %s3585_s24 = smov %s2963_s25 }
0x1164   : > { %s3586_s25 = smov %s2967_s26  ;;  %s3587_s26 = smov %s3058_s9 }
0x1165   : > { %s3588_s27 = smov %s3048_s29  ;;  %22 = sbr.rel (!%p20_p12) target bundleno = 7 (0x7), region = 122 }
0x116c   :  { %2234 = vsyncpa [#allocation4], 1 }
0x116d   :  { %2236 = vsyncpa [#allocation4 + $0x1], 1 }
0x116e   :  { %2237 = vsyncpa [#allocation6], 1 }
0x116f   :  { %2239 = vsyncpa [#allocation6 + $0x1], 1 }

// kernel: transformer_forward.3
= control target key start
LH: loop header
LB: loop body
LE: loop exit
PB: predicated region body
PF: predicated region fallthrough
CT: control target
= control target key end

     0   :  { %s6454_s0 = inlined_call_operand.vmem [shape: f32[16,128], index: 0, kind: input, shape index: {}]   ;;  %s6455_s1 = inlined_call_operand.vmem [shape: f32[16,128], index: 1, kind: input, shape index: {}]   ;;  %s6456_s2 = inlined_call_operand.vmem [shape: f32[16,128], index: 2, kind: input, shape index: {}]   ;;  %s6457_s3 = inlined_call_operand.vmem [shape: bf16[2,128,384], index: 3, kind: input, shape index: {}]   ;;  %s6458_s4 = inlined_call_operand.hbm [shape: bf16[2,128,128], index: 4, kind: input, shape index: {}]   ;;  %s6459_s5 = inlined_call_operand.hbm [shape: bf16[2,128,128], index: 5, kind: input, shape index: {}]   ;;  %s6460_s6 = inlined_call_operand.vmem [shape: bf16[2,128,256], index: 6, kind: input, shape index: {}]   ;;  %s6461_s7 = inlined_call_operand.hbm [shape: bf16[2,128,128], index: 7, kind: input, shape index: {}]   ;;  %s6462_s8 = inlined_call_operand.vmem [shape: bf16[2,128,256], index: 8, kind: input, shape index: {}]   ;;  %s6463_s9 = inlined_call_operand.vmem [shape: bf16[2,256,128], index: 9, kind: input, shape index: {}]   ;;  %s6464_s10 = inlined_call_operand.vmem [shape: f32[2,8,384], index: 10, kind: input, shape index: {}]   ;;  %s6465_s11 = inlined_call_operand.hbm [shape: bf16[128,512], index: 11, kind: input, shape index: {}]   ;;  %s6466_s12 = inlined_call_operand.vmem [shape: f32[1,512], index: 12, kind: input, shape index: {}]   ;;  %s6467_s13 = inlined_call_operand.vmem [shape: f32[16,512], index: 13, kind: output, shape index: {}]  }
   0x1   :  { %6486 = sst [smem:[#allocation15_spill]] %s6454_s0 }
   0x2   :  { %6487 = sst [smem:[#allocation16_spill]] %s6455_s1 }
   0x3   :  { %6488 = sst [smem:[#allocation17_spill]] %s6456_s2 }
   0x4   :  { %6489 = sst [smem:[#allocation18_spill]] %s6457_s3 }
   0x5   :  { %6490 = sst [smem:[#allocation19_spill]] %s6458_s4 }
   0x6   :  { %6491 = sst [smem:[#allocation20_spill]] %s6459_s5 }
   0x7   :  { %6492 = sst [smem:[#allocation21_spill]] %s6463_s9 }
   0x8   :  { %6493 = sst [smem:[#allocation22_spill]] %s6464_s10 }
   0x9   :  { %6494 = sst [smem:[#allocation23_spill]] %s6466_s12 }
   0xa   :  { %6495 = sst [smem:[#allocation24_spill]] %s6467_s13 }
   0xb   :  { %18 = vsyncpa [#allocation4], 0 }
   0xc   :  { %20 = vsyncpa [#allocation4 + $0x1], 0 }
   0xd   :  { %21 = vsyncpa [#allocation6], 0 }
   0xe   :  { %23 = vsyncpa [#allocation6 + $0x1], 0 }
   0xf   :  { %24 = vsyncpa [#allocation9], 0  ;;  %s5544_s25 = smov 0   ;;  %s5546_s26 = smov 0  }
  0x10   :  { %s5548_s27 = smov 0   ;;  %s5550_s28 = smov 0  }
  0x11 LB: > { %s5565_s29 = sadd.s32 1, %s5457_s28   ;;  %s126_s30 = sadd.s32 1, %s5453_s27  ;;  %s5457_s28 = sphi %s5550_s28, %s6523_s28   ;;  %s5453_s27 = sphi %s5548_s27, %s6527_s27   ;;  %s5449_s26 = sphi %s5546_s26, %s6526_s26   ;;  %s5445_s25 = sphi %s5544_s25, %s6525_s25  }
  0x12   : > { %6496 = sst [smem:[#allocation13_spill]] %s5565_s29  ;;  %s123_s14 = ssub.s32 %s5457_s28, %s5565_s29 }
  0x13   : > { %p133_p0 = scmp.ne.s32.totalorder %s5453_s27, %s5449_s26  ;;  %p124_p1 = scmp.eq.s32.totalorder %s123_s14, 0 }
  0x14   : > { %p134_p2 = scmp.eq.s32.totalorder %s5457_s28, 0  ;;  %p5004_p3 = scmp.lt.s32.totalorder %s5457_s28, 2 }
  0x15   : > { %s5575_s15 = scalar_select %p124_p1, %s5453_s27, %s126_s30  }
  0x16   : > { %p135_p4 = por %p134_p2, %p133_p0  ;;  %s6468_s16 = sand.u32 1, %s5453_s27  }
  0x17   : > { %6497 = sst [smem:[#allocation14_spill]] %s5575_s15  ;;  %s5580_s17 = sshll.u32 %s6468_s16, 6 }
  0x18   : > { %s5583_s18 = sshll.u32 %s5457_s28, 10  ;;  %p5585_p5 = pnand %p5004_p3, %p135_p4 }
  0x19   : > { %s436_s20 = sand.u32 1, %s5457_s28   ;;  %s6499_s5 = sld [smem:[#allocation20_spill]] }
  0x1a   : > { %s6498_s19 = scalar_select %p5585_p5, 1, 0 }
  0x1b   : > { %s440_s24 = scalar_lea.vmem [#allocation5], %s5580_s17  ;;  %s5599_s14 = scalar_lea.sflag [#allocation6], %s436_s20 }
  0x1c   : > { %s447_s30 = sshll.u32 %s440_s24, 4  ;;  %p5605_p7 = pneg %p5585_p5  ;;  %s5597_s30 = int_to_ptr.vmem [resolvable:$true] %s447_s30 }
  0x1e   : > { %s6500_s15 = scalar_select %p5605_p7, 1, 0 }
  0x1f   : > { %s5594_s23 = scalar_lea.hbm %s6499_s5, %s5583_s18  ;;  %s5302_s29 = scalar_lea.hbm %s6499_s5, 2048 }
  0x20   : > { %s5297_s16 = scalar_lea.hbm %s5594_s23, 1024  ;;  %p5303_p10 = scmp.lt.u32.totalorder %s5594_s23, %s6499_s5 }
  0x21   : > { %p5298_p6 = scmp.ne.s32.totalorder %s5594_s23, %s5297_s16  ;;  %p5304_p11 = scmp.lt.u32.totalorder %s5302_s29, %s5297_s16 }
  0x22   : > { %p5306_p13 = scmp.lt.u32.totalorder %s5297_s16, %s5594_s23 }
  0x23   : > { %p5300_p8 = pnand %p5605_p7, %p5298_p6  ;;  %p5305_p12 = por %p5304_p11, %p5303_p10 }
  0x25   : > { %p5301_p9 = pneg %p5300_p8  ;;  %p5307_p0 = por %p5306_p13, %p5305_p12 }
  0x27   : > { %p5308_p1 = pnand %p5307_p0, %p5301_p9 }
  0x29   : > { %5311 = shalt.err (!%p5308_p1)
}
  0x2a   : > { %s5312_s20 = scalar_lea.vmem %s5597_s30, 1024  ;;  %s5459_s21 = smov [#allocation5]  }
  0x2b   : > { %p5313_p2 = scmp.ne.s32.totalorder %s5597_s30, %s5312_s20  ;;  %s5317_s22 = sshll.u32 %s5459_s21, 4  ;;  %s5318_s22 = int_to_ptr.vmem [resolvable:$false] %s5317_s22 }
  0x2c   : > { %s5319_s13 = scalar_lea.vmem %s5318_s22, 2048  ;;  %p5320_p6 = scmp.lt.s32.totalorder %s5597_s30, %s5318_s22 }
  0x2d   : > { %p5315_p3 = pnand %p5313_p2, %p5605_p7  ;;  %p5321_p8 = scmp.lt.s32.totalorder %s5319_s13, %s5312_s20 }
  0x2f   : > { %p5316_p4 = pneg %p5315_p3  ;;  %p5322_p10 = por %p5321_p8, %p5320_p6 }
  0x31   : > { %p5323_p11 = pnand %p5322_p10, %p5316_p4 }
  0x33   : > { %5326 = shalt.err (!%p5323_p11)
}
  0x34   : > { %s6472_s29 = smov 64   ;;  %s6474_s16 = smov 4  }
  0x35   : > { %4999 = dma.hbm_to_vmem [thread:$0]  (!%p5585_p5), %s5594_s23, 1024, %s5597_s30, %s5599_s14, %s6472_s29, %s6472_s29, %s6474_s16  }
  0x36   : > { %s5633_s24 = sadd.s32 4294967295, %s5457_s28   ;;  %p139_p9 = scmp.ne.s32.totalorder %s5449_s26, %s5445_s25 }
  0x37   : > { %p6478_p12 = scmp.eq.s32.totalorder %s5633_s24, 0  ;;  %p4350_p13 = scmp.ge.s32.totalorder %s5457_s28, 1 }
  0x38   : > { %p369_p0 = scmp.lt.s32.totalorder %s5457_s28, 3  ;;  %s5462_s23 = smov [#allocation8]  }
  0x39   : > { %p5643_p2 = por %p6478_p12, %p139_p9  ;;  %s390_s30 = sshll.u32 %s5462_s23, 4  ;;  %s5651_s30 = int_to_ptr.vmem [resolvable:$true] %s390_s30 }
  0x3a   : > { %p5647_p3 = pnand %p4350_p13, %p369_p0  ;;  %s6504_s4 = sld [smem:[#allocation19_spill]] }
  0x3b   : > { %s6501_s20 = scalar_select %p5643_p2, 1, 0 }
  0x3c   : > { %s6502_s21 = scalar_select %p5647_p3, 1, 0 }
  0x3d   : > { %p4989_p4 = pneg %p5647_p3  ;;  %s419_s29 = scalar_lea.vmem [#allocation3], %s5580_s17 }
  0x3e   : > { %s426_s16 = sshll.u32 %s419_s29, 4  ;;  %s5327_s12 = scalar_lea.hbm %s6465_s11, 4096  ;;  %s5668_s16 = int_to_ptr.vmem [resolvable:$true] %s426_s16 }
  0x3f   : > { %p5657_p6 = pnand %p4989_p4, %p6478_p12  ;;  %p5328_p8 = scmp.ne.s32.totalorder %s6465_s11, %s5327_s12 }
  0x40   : > { %s5665_s13 = scalar_lea.hbm %s6504_s4, %s5583_s18  ;;  %p5334_p13 = scmp.lt.u32.totalorder %s5327_s12, %s6465_s11 }
  0x41   : > { %p5329_p10 = pneg %p5657_p6 }
  0x43   : > { %p5330_p11 = pnand %p5329_p10, %p5328_p8 }
  0x45   : > { %p5331_p9 = pneg %p5330_p11 }
  0x47   : > { %p5336_p0 = pnand %p5334_p13, %p5331_p9 }
  0x49   : > { %5339 = shalt.err (!%p5336_p0)
}
  0x4a   : > { %s5340_s29 = scalar_lea.vmem %s5651_s30, 4096  ;;  %p5348_p2 = scmp.lt.s32.totalorder %s5651_s30, %s5651_s30 }
  0x4b   : > { %p5341_p4 = scmp.ne.s32.totalorder %s5651_s30, %s5340_s29  ;;  %p5349_p3 = scmp.lt.s32.totalorder %s5340_s29, %s5340_s29 }
  0x4d   : > { %p5343_p1 = pnand %p5341_p4, %p5329_p10  ;;  %p5350_p5 = por %p5349_p3, %p5348_p2 }
  0x4f   : > { %p5344_p12 = pneg %p5343_p1 }
  0x51   : > { %p5351_p7 = pnand %p5350_p5, %p5344_p12 }
  0x53   : > { %5354 = shalt.err (!%p5351_p7)
}
  0x54   : > { %s5463_s1 = smov 256   ;;  %s5464_s2 = smov 16  }
  0x55   : > { %4992 = dma.hbm_to_vmem [thread:$0]  (!%p5657_p6), %s6465_s11, 4096, %s5651_s30, [#allocation9], %s5463_s1, %s5463_s1, %s5464_s2  }
  0x56   : > { %s6505_s23 = sand.u32 1, %s5453_s27   ;;  %s5355_s22 = scalar_lea.hbm %s5665_s13, 1024 }
  0x57   : > { %s5693_s28 = scalar_lea.sflag [#allocation4], %s6505_s23  ;;  %p5356_p5 = scmp.ne.s32.totalorder %s5665_s13, %s5355_s22 }
  0x58   : > { %p6506_p7 = scmp.ne.s32.totalorder %s6500_s15, 0  ;;  %s5360_s10 = scalar_lea.hbm %s6504_s4, 2048 }
  0x59   : > { %p5361_p2 = scmp.lt.u32.totalorder %s5665_s13, %s6504_s4  ;;  %p5362_p3 = scmp.lt.u32.totalorder %s5360_s10, %s5355_s22 }
  0x5a   : > { %p5358_p12 = pnand %p5356_p5, %p6506_p7  ;;  %p5364_p10 = scmp.lt.u32.totalorder %s5355_s22, %s5665_s13 }
  0x5b   : > { %p5363_p8 = por %p5362_p3, %p5361_p2 }
  0x5c   : > { %p5359_p1 = pneg %p5358_p12 }
  0x5d   : > { %p5365_p6 = por %p5364_p10, %p5363_p8 }
  0x5f   : > { %p5366_p11 = pnand %p5365_p6, %p5359_p1 }
  0x61   : > { %5369 = shalt.err (!%p5366_p11)
}
  0x62   : > { %s5370_s30 = scalar_lea.vmem %s5668_s16, 1024  ;;  %s5465_s0 = smov [#allocation3]  }
  0x63   : > { %p5371_p9 = scmp.ne.s32.totalorder %s5668_s16, %s5370_s30  ;;  %s5375_s25 = sshll.u32 %s5465_s0, 4  ;;  %s5376_s25 = int_to_ptr.vmem [resolvable:$false] %s5375_s25 }
  0x64   : > { %s5377_s3 = scalar_lea.vmem %s5376_s25, 2048  ;;  %p5378_p4 = scmp.lt.s32.totalorder %s5668_s16, %s5376_s25 }
  0x65   : > { %p5373_p13 = pnand %p5371_p9, %p6506_p7  ;;  %p5379_p5 = scmp.lt.s32.totalorder %s5377_s3, %s5370_s30 }
  0x67   : > { %p5374_p0 = pneg %p5373_p13  ;;  %p5380_p12 = por %p5379_p5, %p5378_p4 }
  0x69   : > { %p5381_p2 = pnand %p5380_p12, %p5374_p0 }
  0x6b   : > { %5384 = shalt.err (!%p5381_p2)
}
  0x6c   : > { %p6507_p1 = scmp.ne.s32.totalorder %s6498_s19, 0  ;;  %s6508_s9 = smov 4  }
  0x6d   : > { %s6509_s10 = smov 64   ;;  %s5724_s5 = scalar_lea.hbm %s6461_s7, %s5583_s18 }
  0x6e   : > { %4996 = dma.hbm_to_vmem [thread:$0]  (!%p6507_p1), %s5665_s13, 1024, %s5668_s16, %s5693_s28, %s6509_s10, %s6509_s10, %s6508_s9  }
  0x6f   : > { %s469_s12 = scalar_lea.vmem [#allocation7], %s5580_s17  ;;  %s5385_s22 = scalar_lea.hbm %s5724_s5, 1024 }
  0x70   : > { %s476_s23 = sshll.u32 %s469_s12, 4  ;;  %p5386_p3 = scmp.ne.s32.totalorder %s5724_s5, %s5385_s22  ;;  %s5727_s23 = int_to_ptr.vmem [resolvable:$true] %s476_s23 }
  0x71   : > { %s5390_s13 = scalar_lea.hbm %s6461_s7, 2048  ;;  %p5391_p6 = scmp.lt.u32.totalorder %s5724_s5, %s6461_s7 }
  0x72   : > { %p5388_p8 = pnand %p5386_p3, %p6506_p7  ;;  %p5392_p11 = scmp.lt.u32.totalorder %s5390_s13, %s5385_s22 }
  0x73   : > { %p5394_p13 = scmp.lt.u32.totalorder %s5385_s22, %s5724_s5 }
  0x74   : > { %p5389_p10 = pneg %p5388_p8  ;;  %p5393_p9 = por %p5392_p11, %p5391_p6 }
  0x76   : > { %p5395_p0 = por %p5394_p13, %p5393_p9 }
  0x78   : > { %p5396_p4 = pnand %p5395_p0, %p5389_p10 }
  0x7a   : > { %5399 = shalt.err (!%p5396_p4)
}
  0x7b   : > { %s5400_s17 = scalar_lea.vmem %s5727_s23, 1024  ;;  %s5466_s30 = smov [#allocation7]  }
  0x7c   : > { %p5401_p5 = scmp.ne.s32.totalorder %s5727_s23, %s5400_s17  ;;  %s5405_s0 = sshll.u32 %s5466_s30, 4  ;;  %s5406_s0 = int_to_ptr.vmem [resolvable:$false] %s5405_s0 }
  0x7d   : > { %s5407_s25 = scalar_lea.vmem %s5406_s0, 2048  ;;  %p5408_p3 = scmp.lt.s32.totalorder %s5727_s23, %s5406_s0 }
  0x7e   : > { %p5403_p12 = pnand %p5401_p5, %p6506_p7  ;;  %p5409_p8 = scmp.lt.s32.totalorder %s5407_s25, %s5400_s17 }
  0x80   : > { %p5404_p2 = pneg %p5403_p12  ;;  %p5410_p6 = por %p5409_p8, %p5408_p3 }
  0x82   : > { %p5411_p11 = pnand %p5410_p6, %p5404_p2 }
  0x84   : > { %5414 = shalt.err (!%p5411_p11)
}
  0x85   : > { %5002 = dma.hbm_to_vmem [thread:$0]  (!%p6507_p1), %s5724_s5, 1024, %s5727_s23, %s5599_s14, %s6509_s10, %s6509_s10, %s6508_s9  }
  0x86   : > { %p6510_p7 = scmp.ne.s32.totalorder %s6502_s21, 0 }
  0x87   : > { %s514_s15 = sand.u32 (!%p6510_p7), 1, %s5449_s26   ;;  %p6511_p10 = scmp.ne.s32.totalorder (!%p6510_p7), %s6501_s20, 0 }
  0x88   : > { %512 = sbr.rel (%p6510_p7) target bundleno = 8249 (0x2039), region = 72  ;;  %s4363_s3 = sshll.u32 (!%p6510_p7), %s514_s15, 6 }
  0x89   : > { %s515_s1 = scalar_lea.sflag (!%p6510_p7), [#allocation4], %s514_s15  ;;  %s5757_s2 = scalar_lea.vmem (!%p6510_p7), [#allocation3], %s4363_s3 }
  0x8f   : > { %5432 = dma.done.wait (%p6511_p10), %s515_s1, 1024  }
  0x90   : > { %5434 = vsyncadd (%p6511_p10), %s515_s1, 4294966272  ;;  %s523_s19 = sand.u32 1, %s5633_s24   ;;  %s5764_s14 = scalar_lea.vmem [#allocation5], %s4363_s3 }
  0x91   : > { %s524_s12 = scalar_lea.sflag [#allocation6], %s523_s19 }
  0x92   : > { %5436 = dma.done.wait (%p6511_p10), %s524_s12, 2048  }
  0x93   : > { %5438 = vsyncadd (%p6511_p10), %s524_s12, 4294965248  ;;  %s5770_s21 = scalar_lea.vmem [#allocation7], %s4363_s3  ;;  %p6512_p1 = scmp.eq.s32.totalorder %s5633_s24, 0 }
  0x95   : > { %5440 = dma.done.wait (%p6512_p1), [#allocation9], 4096   ;;  %p6513_p9 = pmov %p6512_p1 }
  0x96   : > { %p613_p13 = scmp.lt.s32.totalorder %s5633_s24, 1  ;;  %s6514_s17 = sld [smem:[#allocation18_spill]] }
  0x97   : > { %5442 = vsyncadd (%p6513_p9), [#allocation9], 4294963200  ;;  %s6515_s15 = sld [smem:[#allocation21_spill]]  ;;  %s6516_s23 = sld [smem:[#allocation22_spill]] }
  0x98   : > { %s614_s9 = scalar_select %p613_p13, %s5633_s24, 1 }
  0x99   : > { %p6517_p0 = scmp.ne.s32.totalorder %s5633_s24, 0 }
  0x9a   : > { %s4977_s10 = smul.u32 192, %s614_s9  ;;  %s4550_s5 = sshll.u32 %s614_s9, 7 }
  0x9b   : > { %s5781_s29 = scalar_lea.vmem %s6460_s6, %s4550_s5  ;;  %s5786_s13 = scalar_lea.vmem %s6462_s8, %s4550_s5 }
  0x9c   : > { %s5791_s30 = scalar_lea.vmem %s6514_s17, %s4977_s10  ;;  %s4978_s1 = smul.u32 24, %s614_s9 }
  0x9d   : > { %s5796_s3 = scalar_lea.vmem %s6515_s15, %s4550_s5  ;;  %642 = sbr.rel (%p6517_p0) target bundleno = 170 (0xaa), region = 92 }
  0x9e   : > { %s5801_s22 = scalar_lea.vmem %s6516_s23, %s4978_s1  ;;  %s6518_s4 = sld [smem:[#allocation15_spill]] (!%p6517_p0) }
  0x9f   : > { %s6519_s18 = sld [smem:[#allocation16_spill]] (!%p6517_p0) }
  0xa4   : > { %v643_v0 = vld [vmem:[%s6518_s4] sm:$0xff]  ;;  %v644_v2 = vld [vmem:[%s6518_s4 + $0x8] sm:$0xff] }
  0xa5   : > { %v647_v1 = vld [vmem:[%s6519_s18] sm:$0xff]  ;;  %v645_v3 = vmul.f32 11.313708, %v643_v0  ;;  %v646_v4 = vmul.f32 11.313708, %v644_v2  ;;  %v648_v5 = vld [vmem:[%s6519_s18 + $0x8] sm:$0xff] }
  0xa7   : > { %v649_v6 = vadd.f32 %v647_v1, %v645_v3  ;;  %v650_v7 = vadd.f32 %v648_v5, %v646_v4 }
  0xa9   : > { %651 = vst [vmem:[#allocation2] sm:$0xff] %v649_v6  ;;  %652 = vst [vmem:[#allocation2 + $0x8] sm:$0xff] %v650_v7 }
  0xaa PF: > { %v5050_v8 = vld [vmem:[%s5791_s30 + $0x4] ss:$12 sps:$4 sm:$0xff]   ;;  %v5052_v9 = vld [vmem:[%s5791_s30] ss:$12 sps:$4 sm:$0xff]   ;;  %v5467_v10 = vmov 0   ;;  %v5468_v11 = vmov 0.0   ;;  %v693_v37 = vlaneseq }
  0xab   : > { %865 = vmatprep.mubr.bf16.mxu0 %v5467_v10  ;;  %4681 = vmatprep.subr.bf16.mxu1 %v5468_v11  ;;  %v5053_v12 = vld [vmem:[%s5791_s30 + $0x1c] ss:$12 sps:$4 sm:$0xff]   ;;  %v5055_v13 = vld [vmem:[%s5791_s30 + $0x18] ss:$12 sps:$4 sm:$0xff]   ;;  %v5056_v14 = vld [vmem:[%s5791_s30 + $0x34] ss:$12 sps:$4 sm:$0xff]  }
  0xac   : > { %833 = vmatprep.subr.bf16.mxu0 %v5050_v8  ;;  %v5058_v15 = vld [vmem:[%s5791_s30 + $0x30] ss:$12 sps:$4 sm:$0xff]   ;;  %v5059_v16 = vld [vmem:[%s5791_s30 + $0x4c] ss:$12 sps:$4 sm:$0xff]   ;;  %v5061_v17 = vld [vmem:[%s5791_s30 + $0x48] ss:$12 sps:$4 sm:$0xff]  }
  0xad   : > { %834 = vmatpush1.bf16.msra.mxu0 %v5052_v9  ;;  %v5062_v18 = vld [vmem:[%s5791_s30 + $0x64] ss:$12 sps:$4 sm:$0xff]   ;;  %v5074_v19 = vld [vmem:[%s5791_s30 + $0x8] ss:$12 sps:$4 sm:$0xff]   ;;  %v5075_v20 = vld [vmem:[%s5791_s30 + $0x20] ss:$12 sps:$4 sm:$0xff]  }
  0xae   : > { %835 = vmatprep.subr.bf16.mxu0 %v5053_v12  ;;  %4682 = vmatpush3.bf16.msra.mxu1 %v5074_v19  ;;  %v5064_v21 = vld [vmem:[%s5791_s30 + $0x60] ss:$12 sps:$4 sm:$0xff]   ;;  %v5065_v22 = vld [vmem:[%s5791_s30 + $0x7c] ss:$12 sps:$4 sm:$0xff]   ;;  %v5067_v23 = vld [vmem:[%s5791_s30 + $0x78] ss:$12 sps:$4 sm:$0xff]  }
  0xaf   : > { %4683 = vmatprep.subr.bf16.mxu1 %v5468_v11  ;;  %v5068_v24 = vld [vmem:[%s5791_s30 + $0x94] ss:$12 sps:$4 sm:$0xff]   ;;  %v5076_v25 = vld [vmem:[%s5791_s30 + $0x38] ss:$12 sps:$4 sm:$0xff]   ;;  %v5077_v26 = vld [vmem:[%s5791_s30 + $0x50] ss:$12 sps:$4 sm:$0xff]  }
  0xb0   : > { %v5070_v27 = vld [vmem:[%s5791_s30 + $0x90] ss:$12 sps:$4 sm:$0xff]   ;;  %v5071_v28 = vld [vmem:[%s5791_s30 + $0xac] ss:$12 sps:$4 sm:$0xff]   ;;  %v5078_v29 = vld [vmem:[%s5791_s30 + $0x68] ss:$12 sps:$4 sm:$0xff]  }
  0xb1   : > { %836 = vmatpush1.bf16.msra.mxu0 %v5055_v13  ;;  %v5073_v30 = vld [vmem:[%s5791_s30 + $0xa8] ss:$12 sps:$4 sm:$0xff]   ;;  %v5843_v31 = vld [vmem:[#allocation2] sm:$0xff]  ;;  %v5081_v36 = vld [vmem:[%s5791_s30 + $0xb0] ss:$12 sps:$4 sm:$0xff]   ;;  %vm5469_vm0 = vmmov 0  }
  0xb2   : > { %837 = vmatprep.subr.bf16.mxu0 %v5056_v14  ;;  %4684 = vmatpush3.bf16.msra.mxu1 %v5075_v20  ;;  %v5845_v32 = vld [vmem:[#allocation2 + $0x8] sm:$0xff]  ;;  %v5080_v35 = vld [vmem:[%s5791_s30 + $0x98] ss:$12 sps:$4 sm:$0xff]   ;;  %v5864_v38 = vshrl.u32 %v693_v37, 7  ;;  %vm937_vm1 = vcmask 261120   ;;  %v5904_v58 = vld [vmem:[%s5801_s22 + $0x10] sm:$0xff] }
  0xb3   : > { %4685 = vmatprep.subr.bf16.mxu1 %v5468_v11  ;;  %v5079_v33 = vld [vmem:[%s5791_s30 + $0x80] ss:$12 sps:$4 sm:$0xff]   ;;  %v660_v34 = vpack.c.bf16 %v5845_v32, %v5843_v31  ;;  %4697 = vmatprep.mubr.msk.bf16.mxu1 %vm5469_vm0, %v5468_v11  ;;  %s5470_s30 = smov 96   ;;  %vm1060_vm2 = vcmask 1043456   ;;  %vm1030_vm3 = vcmask 64512   ;;  %s5471_s25 = smov 64  }
  0xb4   : > { %v5867_v39 = vsub.s32 0, %v5864_v38  ;;  %v5870_v40 = vld [vmem:[%s5801_s22 + $0x8] sm:$0xff]  ;;  %v5875_v43 = vld [vmem:[%s5801_s22] sm:$0xff]  ;;  %s5472_s15 = smov 32   ;;  %s6520_s19 = sld [smem:[#allocation17_spill]] }
  0xb5   : > { %838 = vmatpush1.bf16.msra.mxu0 %v5058_v15  ;;  %p4512_p4 = scmp.ne.s32.totalorder %s5633_s24, 1 }
  0xb6   : > { %839 = vmatprep.subr.bf16.mxu0 %v5059_v16  ;;  %4686 = vmatpush3.bf16.msra.mxu1 %v5076_v25  ;;  %v700_v41 = vrot.slane %v5870_v40, %v5867_v39  ;;  %v696_v48 = vrot.slane %v5875_v43, %v5867_v39  ;;  %v704_v59 = vrot.slane %v5904_v58, %v5867_v39 }
  0xb7   : > { %4687 = vmatprep.subr.bf16.mxu1 %v5468_v11 }
  0xb9   : > { %840 = vmatpush1.bf16.msra.mxu0 %v5061_v17 }
  0xba   : > { %841 = vmatprep.subr.bf16.mxu0 %v5062_v18  ;;  %4688 = vmatpush3.bf16.msra.mxu1 %v5077_v26 }
  0xbb   : > { %4689 = vmatprep.subr.bf16.mxu1 %v5468_v11 }
  0xbd   : > { %842 = vmatpush1.bf16.msra.mxu0 %v5064_v21 }
  0xbe   : > { %843 = vmatprep.subr.bf16.mxu0 %v5065_v22  ;;  %4690 = vmatpush3.bf16.msra.mxu1 %v5078_v29 }
  0xbf   : > { %4691 = vmatprep.subr.bf16.mxu1 %v5468_v11 }
  0xc1   : > { %844 = vmatpush1.bf16.msra.mxu0 %v5067_v23 }
  0xc2   : > { %845 = vmatprep.subr.bf16.mxu0 %v5068_v24  ;;  %4692 = vmatpush3.bf16.msra.mxu1 %v5079_v33 }
  0xc3   : > { %4693 = vmatprep.subr.bf16.mxu1 %v5468_v11 }
  0xc5   : > { %846 = vmatpush1.bf16.msra.mxu0 %v5070_v27 }
  0xc6   : > { %847 = vmatprep.subr.bf16.mxu0 %v5071_v28  ;;  %4694 = vmatpush3.bf16.msra.mxu1 %v5080_v35 }
  0xc7   : > { %4695 = vmatprep.subr.bf16.mxu1 %v5468_v11 }
  0xc9   : > { %848 = vmatpush1.bf16.msra.mxu0 %v5073_v30 }
  0xca   : > { %4701 = vmatprep.subr.bf16.mxu0 %v5468_v11  ;;  %4696 = vmatpush3.bf16.msra.mxu1 %v5081_v36 }
  0xcb   : > { %4707 = vmatprep.subr.bf16.mxu1 %v5468_v11 }
  0xcc   : > { %866 = vmatmul.mubr.bf16.vlgmr.msra.gmra.mrb[0].mxu0 %v660_v34 }
  0xcd   : > { %4703 = vmatprep.mubr.msk.bf16.mxu0 %vm5469_vm0, %v5468_v11  ;;  %4698 = vmatmul.mubr.bf16.vlgmr.msra.gmra.mrb[0].mxu1 %v660_v34 }
  0xce   : > { %4709 = vmatprep.mubr.msk.bf16.mxu1 %vm5469_vm0, %v5468_v11 }
 0x19f   : > { %v867_v42 = vpop.f32.mrb[0].mxu0 }
 0x1a0   : > { %v869_v44 = vpop.f32.mrb[1].mxu0  ;;  %v868_v53 = vadd.f32 %v867_v42, %v696_v48  ;;  %v910_v60 = vpop.f32.mrb[0].mxu1 }
 0x1a1   : > { %v870_v45 = vadd.f32 %v869_v44, %v700_v41  ;;  %v871_v46 = vpop.f32.mrb[2].mxu0  ;;  %v911_v61 = vadd.f32 %v910_v60, %v704_v59  ;;  %v4699_v62 = vpop.f32.mrb[1].mxu1 }
 0x1a2   : > { %v873_v47 = vpop.f32.mrb[3].mxu0  ;;  %v872_v55 = vadd.f32 %v871_v46, %v696_v48  ;;  %v5891_v56 = vpack.c.bf16 %v868_v53, %v868_v53  ;;  %v913_v63 = vpop.f32.mrb[2].mxu1 }
 0x1a3   : > { %v5879_v49 = vpack.c.bf16 %v870_v45, %v870_v45  ;;  %v874_v50 = vadd.f32 %v873_v47, %v700_v41  ;;  %v914_v0 = vadd.f32 %v913_v63, %v704_v59  ;;  %v4700_v1 = vpop.f32.mrb[3].mxu1  ;;  %v5908_v2 = vpack.c.bf16 %v911_v61, %v911_v61 }
 0x1a4   : > { %v5893_v57 = vpack.c.bf16 %v872_v55, %v872_v55 }
 0x1a5   : > { %v5881_v51 = vpack.c.bf16 %v874_v50, %v874_v50  ;;  %v942_v52 = vsel %vm937_vm1, %v5879_v49, 0  ;;  %v5910_v3 = vpack.c.bf16 %v914_v0, %v914_v0  ;;  %v1062_v4 = vsel %vm1060_vm2, %v5908_v2, 0 }
 0x1a6   : > { %4702 = vmatpush3.bf16.xpose.msra.mxu0 %v942_v52 }
 0x1a7   : > { %1207 = vrot.lane.b32.xlu1 %v5881_v51, %s5470_s30  ;;  %v988_v54 = vsel %vm937_vm1, %v5881_v51, 0  ;;  %4713 = vmatprep.subr.bf16.mxu0 %v5468_v11  ;;  %v1108_v5 = vsel %vm1060_vm2, %v5910_v3, 0 }
 0x1a8   : > { %4708 = vmatpush3.bf16.xpose.msra.mxu1 %v988_v54 }
 0x1a9   : > { %4719 = vmatprep.subr.bf16.mxu1 %v5468_v11 }
 0x1ad   : > { %4704 = vmatmul.mubr.msk.bf16.vlgmr.msra.gmra.mrb[4].mxu0 %vm937_vm1, %v5891_v56 }
 0x1ae   : > { %4715 = vmatprep.mubr.msk.bf16.mxu0 %vm5469_vm0, %v5468_v11  ;;  %4714 = vmatpush3.bf16.msra.mxu0 %v1062_v4 }
 0x1af   : > { %4710 = vmatmul.mubr.msk.bf16.vlgmr.msra.gmra.mrb[4].mxu1 %vm937_vm1, %v5893_v57  ;;  %4725 = vmatprep.subr.bf16.mxu0 %v5468_v11 }
 0x1b0   : > { %4721 = vmatprep.mubr.msk.bf16.mxu1 %vm5469_vm0, %v5468_v11  ;;  %4720 = vmatpush3.bf16.msra.mxu1 %v1108_v5 }
 0x1b1   : > { %4731 = vmatprep.subr.bf16.mxu1 %v5468_v11 }
 0x219   : > { %v1208_v28 = vpop.permute.xlu1 %1207 }
 0x21a   : > { %v1213_v45 = vsel %vm937_vm1, %v1208_v28, 0 }
 0x280   : > { %v978_v6 = vpop.f32.mrb[4].mxu0 }
 0x281   : > { %v4705_v7 = vpop.f32.mrb[5].mxu0  ;;  %v1031_v8 = vsel %vm1030_vm3, %v978_v6, -inf }
 0x282   : > { %v1024_v9 = vpop.f32.mrb[4].mxu1  ;;  %1032 = vmax.xlane.f32.xlu0 %v1031_v8  ;;  %v981_v12 = vpop.f32.mrb[6].mxu0 }
 0x283   : > { %v4706_v13 = vpop.f32.mrb[7].mxu0  ;;  %v4711_v14 = vpop.f32.mrb[5].mxu1  ;;  %v1034_v17 = vsel %vm1030_vm3, %v1024_v9, -inf }
 0x284   : > { %v1027_v15 = vpop.f32.mrb[6].mxu1 }
 0x285   : > { %v4712_v16 = vpop.f32.mrb[7].mxu1 }
 0x286   : > { %1035 = vmax.xlane.f32.xlu0 %v1034_v17 }
 0x29c   : > { %1155 = vrot.lane.b32.xlu0 %v5879_v49, %s5470_s30 }
 0x30f   : > { %v1033_v18 = vpop.xlane.xlu0 %1032 }
 0x310   : > { %v1037_v19 = vsub.f32 %v978_v6, %v1033_v18 }
 0x312   : > { %v1039_v20 = vmul.f32 1.442695, %v1037_v19 }
 0x313   : > { %v1036_v21 = vpop.xlane.xlu0 %1035 }
 0x314   : > { %5170 = vpow2.f32 %v1039_v20  ;;  %v1038_v22 = vsub.f32 %v1024_v9, %v1036_v21 }
 0x316   : > { %v1041_v23 = vmul.f32 1.442695, %v1038_v22 }
 0x317   : > { %v1156_v35 = vpop.permute.xlu0 %1155 }
 0x318   : > { %5172 = vpow2.f32 %v1041_v23  ;;  %v1161_v41 = vsel %vm937_vm1, %v1156_v35, 0 }
 0x31e   : > { %v5171_v24 = vpop.eup %5170 }
 0x31f   : > { %v1043_v25 = vsel %vm1030_vm3, %v5171_v24, 0.0 }
 0x320   : > { %1044 = vadd.xlane.f32.xlu1 %v1043_v25 }
 0x322   : > { %v5173_v26 = vpop.eup %5172 }
 0x323   : > { %v1046_v27 = vsel %vm1030_vm3, %v5173_v26, 0.0 }
 0x324   : > { %1047 = vadd.xlane.f32.xlu1 %v1046_v27 }
 0x335   : > { %1152 = vrot.lane.b32.xlu1 %v5891_v56, %s5470_s30 }
 0x339   : > { %1204 = vrot.lane.b32.xlu1 %v5893_v57, %s5470_s30 }
 0x3ad   : > { %v1045_v29 = vpop.xlane.xlu1 %1044 }
 0x3ae   : > { %5174 = vrcp.f32 %v1045_v29 }
 0x3b1   : > { %v1048_v30 = vpop.xlane.xlu1 %1047 }
 0x3b2   : > { %5176 = vrcp.f32 %v1048_v30  ;;  %v5084_v30 = vld [vmem:[%s5757_s2 + $0x10] sm:$0xff]  }
 0x3b5   : > { %v1153_v46 = vpop.permute.xlu1 %1152 }
 0x3b8   : > { %v5175_v33 = vpop.eup %5174 }
 0x3b9   : > { %v1051_v34 = vmul.f32 %v5175_v33, %v5171_v24  ;;  %v1205_v47 = vpop.permute.xlu1 %1204 }
 0x3bb   : > { %v1053_v36 = vpack.c.bf16 %v1051_v34, %v1051_v34 }
 0x3bc   : > { %v5177_v37 = vpop.eup %5176 }
 0x3bd   : > { %v1052_v42 = vmul.f32 %v5177_v37, %v5173_v26  ;;  %4716 = vmatmul.mubr.msk.bf16.vlgmr.msra.gmra.mrb[8].mxu0 %vm1030_vm3, %v1053_v36  ;;  %v5082_v36 = vld [vmem:[%s5757_s2] sm:$0xff]  }
 0x3be   : > { %4726 = vmatpush3.bf16.xpose.msra.mxu0 %v1161_v41  ;;  %4727 = vmatprep.mubr.msk.bf16.mxu0 %vm5469_vm0, %v5468_v11  ;;  %v5085_v41 = vld [vmem:[%s5757_s2 + $0x18] sm:$0xff]  }
 0x3bf   : > { %v1054_v44 = vpack.c.bf16 %v1052_v42, %v1052_v42  ;;  %4737 = vmatprep.subr.bf16.mxu0 %v5468_v11  ;;  %v5083_v42 = vld [vmem:[%s5757_s2 + $0x8] sm:$0xff]  }
 0x3c1   : > { %4722 = vmatmul.mubr.msk.bf16.vlgmr.msra.gmra.mrb[8].mxu1 %vm1030_vm3, %v1054_v44 }
 0x3c2   : > { %4732 = vmatpush3.bf16.xpose.msra.mxu1 %v1213_v45  ;;  %4733 = vmatprep.mubr.msk.bf16.mxu1 %vm5469_vm0, %v5468_v11 }
 0x3c3   : > { %4743 = vmatprep.subr.bf16.mxu1 %v5468_v11 }
 0x3c5   : > { %4728 = vmatmul.mubr.msk.bf16.vlgmr.msra.gmra.mrb[12].mxu0 %vm937_vm1, %v1153_v46 }
 0x3c6   : > { %4739 = vmatprep.mubr.msk.bf16.mxu0 %vm5469_vm0, %v5468_v11 }
 0x3c9   : > { %4734 = vmatmul.mubr.msk.bf16.vlgmr.msra.gmra.mrb[12].mxu1 %vm937_vm1, %v1205_v47 }
 0x3ca   : > { %4745 = vmatprep.mubr.msk.bf16.mxu1 %vm5469_vm0, %v5468_v11 }
 0x490   : > { %v5944_v48 = vpop.f32.mrb[8].mxu0 }
 0x491   : > { %v4717_v50 = vpop.f32.mrb[9].mxu0 }
 0x492   : > { %v1101_v52 = vpop.f32.mrb[10].mxu0 }
 0x493   : > { %v4718_v53 = vpop.f32.mrb[11].mxu0 }
 0x494   : > { %v5946_v54 = vpop.f32.mrb[8].mxu1 }
 0x495   : > { %v1150_v55 = vpack.c.bf16 %v5946_v54, %v5944_v48  ;;  %v4723_v59 = vpop.f32.mrb[9].mxu1 }
 0x496   : > { %v1147_v60 = vpop.f32.mrb[10].mxu1 }
 0x497   : > { %v4724_v61 = vpop.f32.mrb[11].mxu1 }
 0x498   : > { %v1197_v62 = vpop.f32.mrb[12].mxu0 }
 0x499   : > { %v4729_v63 = vpop.f32.mrb[13].mxu0  ;;  %v1255_v0 = vsel %vm1030_vm3, %v1197_v62, -inf }
 0x49a   : > { %1256 = vmax.xlane.f32.xlu0 %v1255_v0  ;;  %v1200_v1 = vpop.f32.mrb[14].mxu0 }
 0x49b   : > { %v4730_v4 = vpop.f32.mrb[15].mxu0 }
 0x49c   : > { %v1249_v5 = vpop.f32.mrb[12].mxu1 }
 0x49d   : > { %v4735_v6 = vpop.f32.mrb[13].mxu1  ;;  %v1258_v7 = vsel %vm1030_vm3, %v1249_v5, -inf }
 0x49e   : > { %1259 = vmax.xlane.f32.xlu1 %v1258_v7  ;;  %v1252_v8 = vpop.f32.mrb[14].mxu1 }
 0x49f   : > { %v4736_v9 = vpop.f32.mrb[15].mxu1 }
 0x4af   : > { %1329 = vrot.lane.b32.xlu1 %v5910_v3, %s5470_s30 }
 0x4b3   : > { %1492 = vrot.lane.b32.xlu1 %v5879_v49, %s5471_s25 }
 0x4b7   : > { %1542 = vrot.lane.b32.xlu1 %v5881_v51, %s5471_s25 }
 0x4bb   : > { %1540 = vrot.lane.b32.xlu1 %v5893_v57, %s5471_s25 }
 0x527   : > { %v1257_v12 = vpop.xlane.xlu0 %1256 }
 0x528   : > { %v1261_v13 = vsub.f32 %v1197_v62, %v1257_v12 }
 0x52a   : > { %v1263_v14 = vmul.f32 1.442695, %v1261_v13 }
 0x52b   : > { %v1260_v15 = vpop.xlane.xlu1 %1259 }
 0x52c   : > { %5178 = vpow2.f32 %v1263_v14  ;;  %v1262_v16 = vsub.f32 %v1249_v5, %v1260_v15 }
 0x52e   : > { %v1265_v17 = vmul.f32 1.442695, %v1262_v16 }
 0x52f   : > { %v1330_v18 = vpop.permute.xlu1 %1329 }
 0x530   : > { %5180 = vpow2.f32 %v1265_v17  ;;  %v1335_v19 = vsel %vm1060_vm2, %v1330_v18, 0 }
 0x531   : > { %4744 = vmatpush3.bf16.msra.mxu1 %v1335_v19 }
 0x532   : > { %4757 = vmatprep.subr.bf16.mxu1 %v5468_v11 }
 0x533   : > { %v1493_v44 = vpop.permute.xlu1 %1492 }
 0x534   : > { %v1498_v61 = vsel %vm937_vm1, %v1493_v44, 0 }
 0x536   : > { %v5179_v20 = vpop.eup %5178 }
 0x537   : > { %v1267_v21 = vsel %vm1030_vm3, %v5179_v20, 0.0  ;;  %v1543_v45 = vpop.permute.xlu1 %1542 }
 0x538   : > { %1268 = vadd.xlane.f32.xlu0 %v1267_v21  ;;  %v1548_v46 = vsel %vm937_vm1, %v1543_v45, 0 }
 0x53a   : > { %v5181_v22 = vpop.eup %5180 }
 0x53b   : > { %v1270_v23 = vsel %vm1030_vm3, %v5181_v22, 0.0  ;;  %v1541_v47 = vpop.permute.xlu1 %1540 }
 0x53c   : > { %1271 = vadd.xlane.f32.xlu0 %v1270_v23 }
 0x552   : > { %1280 = vrot.lane.b32.xlu0 %v5908_v2, %s5470_s30 }
 0x556   : > { %1490 = vrot.lane.b32.xlu0 %v5891_v56, %s5471_s25 }
 0x5c5   : > { %v1269_v24 = vpop.xlane.xlu0 %1268 }
 0x5c6   : > { %5182 = vrcp.f32 %v1269_v24 }
 0x5c9   : > { %v1272_v25 = vpop.xlane.xlu0 %1271 }
 0x5ca   : > { %5184 = vrcp.f32 %v1272_v25 }
 0x5cd   : > { %v1281_v26 = vpop.permute.xlu0 %1280 }
 0x5ce   : > { %v1286_v27 = vsel %vm1060_vm2, %v1281_v26, 0 }
 0x5cf   : > { %4738 = vmatpush3.bf16.msra.mxu0 %v1286_v27 }
 0x5d0   : > { %v5183_v28 = vpop.eup %5182  ;;  %4749 = vmatprep.subr.bf16.mxu0 %v5468_v11 }
 0x5d1   : > { %v1275_v29 = vmul.f32 %v5183_v28, %v5179_v20  ;;  %v1491_v1 = vpop.permute.xlu0 %1490 }
 0x5d3   : > { %v1277_v33 = vpack.c.bf16 %v1275_v29, %v1275_v29 }
 0x5d4   : > { %v5185_v34 = vpop.eup %5184 }
 0x5d5   : > { %v1276_v35 = vmul.f32 %v5185_v34, %v5181_v22  ;;  %4740 = vmatmul.mubr.msk.bf16.vlgmr.msra.gmra.mrb[16].mxu0 %vm1030_vm3, %v1277_v33 }
 0x5d6   : > { %4750 = vmatpush3.bf16.msra.mxu0 %v5084_v30  ;;  %4753 = vmatprep.mubr.msk.bf16.mxu0 %vm5469_vm0, %v5468_v11 }
 0x5d7   : > { %v1278_v37 = vpack.c.bf16 %v1276_v35, %v1276_v35  ;;  %4751 = vmatprep.subr.bf16.mxu0 %v5468_v11 }
 0x5d9   : > { %4746 = vmatmul.mubr.msk.bf16.vlgmr.msra.gmra.mrb[16].mxu1 %vm1030_vm3, %v1278_v37 }
 0x5da   : > { %4758 = vmatpush3.bf16.msra.mxu1 %v5082_v36  ;;  %4761 = vmatprep.mubr.msk.bf16.mxu1 %vm5469_vm0, %v5468_v11 }
 0x5db   : > { %4759 = vmatprep.subr.bf16.mxu1 %v5468_v11  ;;  %4752 = vmatpush3.bf16.msra.mxu0 %v5085_v41 }
 0x5dc   : > { %4765 = vmatprep.subr.bf16.mxu0 %v5468_v11 }
 0x5de   : > { %4760 = vmatpush3.bf16.msra.mxu1 %v5083_v42 }
 0x5df   : > { %4771 = vmatprep.subr.bf16.mxu1 %v5468_v11 }
 0x5e1   : > { %4762 = vmatmul.mubr.msk.bf16.vlgmr.msra.gmra.mrb[20].mxu1 %vm937_vm1, %v1150_v55 }
 0x5e2   : > { %4773 = vmatprep.mubr.msk.bf16.mxu1 %vm5469_vm0, %v5468_v11 }
 0x5e7   : > { %4772 = vmatpush3.bf16.xpose.msra.mxu1 %v1548_v46 }
 0x5e8   : > { %4783 = vmatprep.subr.bf16.mxu1 %v5468_v11 }
 0x5ee   : > { %4774 = vmatmul.mubr.msk.bf16.vlgmr.msra.gmra.mrb[24].mxu1 %vm937_vm1, %v1541_v47 }
 0x5ef   : > { %4785 = vmatprep.mubr.msk.bf16.mxu1 %vm5469_vm0, %v5468_v11 }
 0x6a8   : > { %v1322_v50 = vpop.f32.mrb[16].mxu0 }
 0x6a9   : > { %v4741_v52 = vpop.f32.mrb[17].mxu0 }
 0x6aa   : > { %v1325_v48 = vpop.f32.mrb[18].mxu0 }
 0x6ab   : > { %v4742_v53 = vpop.f32.mrb[19].mxu0 }
 0x6ac   : > { %v1371_v54 = vpop.f32.mrb[16].mxu1  ;;  %v5086_v53 = vld [vmem:[%s5757_s2 + $0x20] sm:$0xff]  }
 0x6ad   : > { %v1377_v55 = vpack.c.bf16 %v1371_v54, %v1322_v50  ;;  %v4747_v59 = vpop.f32.mrb[17].mxu1 }
 0x6ae   : > { %v1374_v60 = vpop.f32.mrb[18].mxu1 }
 0x6af   : > { %v4748_v62 = vpop.f32.mrb[19].mxu1  ;;  %4754 = vmatmul.mubr.msk.bf16.vlgmr.msra.gmra.mrb[20].mxu0 %vm937_vm1, %v1377_v55 }
 0x6b0   : > { %4766 = vmatpush3.bf16.xpose.msra.mxu0 %v1498_v61  ;;  %4767 = vmatprep.mubr.msk.bf16.mxu0 %vm5469_vm0, %v5468_v11  ;;  %v5087_v61 = vld [vmem:[%s5757_s2 + $0x28] sm:$0xff]  }
 0x6b1   : > { %4777 = vmatprep.subr.bf16.mxu0 %v5468_v11 }
 0x6b4   : > { %v1483_v63 = vpop.f32.mrb[20].mxu1 }
 0x6b5   : > { %v4763_v0 = vpop.f32.mrb[21].mxu1 }
 0x6b6   : > { %v1486_v4 = vpop.f32.mrb[22].mxu1 }
 0x6b7   : > { %v4764_v5 = vpop.f32.mrb[23].mxu1  ;;  %4768 = vmatmul.mubr.msk.bf16.vlgmr.msra.gmra.mrb[24].mxu0 %vm937_vm1, %v1491_v1 }
 0x6b8   : > { %4779 = vmatprep.mubr.msk.bf16.mxu0 %vm5469_vm0, %v5468_v11 }
 0x6c1   : > { %v1584_v6 = vpop.f32.mrb[24].mxu1 }
 0x6c2   : > { %v4775_v7 = vpop.f32.mrb[25].mxu1  ;;  %v1593_v8 = vsel %vm1030_vm3, %v1584_v6, -inf }
 0x6c3   : > { %1594 = vmax.xlane.f32.xlu1 %v1593_v8  ;;  %v1587_v9 = vpop.f32.mrb[26].mxu1 }
 0x6c4   : > { %v4776_v12 = vpop.f32.mrb[27].mxu1 }
 0x6d4   : > { %1662 = vrot.lane.b32.xlu1 %v5910_v3, %s5471_s25 }
 0x6d8   : > { %1771 = vrot.lane.b32.xlu1 %v5879_v49, %s5472_s15 }
 0x6dc   : > { %1821 = vrot.lane.b32.xlu1 %v5881_v51, %s5472_s15 }
 0x6e0   : > { %1819 = vrot.lane.b32.xlu1 %v5893_v57, %s5472_s15 }
 0x750   : > { %v1595_v13 = vpop.xlane.xlu1 %1594 }
 0x751   : > { %v1597_v16 = vsub.f32 %v1584_v6, %v1595_v13 }
 0x753   : > { %v1600_v17 = vmul.f32 1.442695, %v1597_v16 }
 0x754   : > { %v1663_v14 = vpop.permute.xlu1 %1662 }
 0x755   : > { %v1668_v15 = vsel %vm1060_vm2, %v1663_v14, 0  ;;  %5186 = vpow2.f32 %v1600_v17 }
 0x756   : > { %4784 = vmatpush3.bf16.msra.mxu1 %v1668_v15 }
 0x757   : > { %4797 = vmatprep.subr.bf16.mxu1 %v5468_v11 }
 0x758   : > { %v1772_v41 = vpop.permute.xlu1 %1771 }
 0x759   : > { %v1777_v44 = vsel %vm937_vm1, %v1772_v41, 0 }
 0x75c   : > { %v1822_v5 = vpop.permute.xlu1 %1821 }
 0x75d   : > { %v1827_v12 = vsel %vm937_vm1, %v1822_v5, 0 }
 0x75f   : > { %v5187_v24 = vpop.eup %5186 }
 0x760   : > { %v1605_v27 = vsel %vm1030_vm3, %v5187_v24, 0.0  ;;  %v1820_v14 = vpop.permute.xlu1 %1819 }
 0x782   : > { %v1427_v18 = vpop.f32.mrb[20].mxu0 }
 0x783   : > { %v6014_v19 = vadd.f32 %v1483_v63, %v1427_v18  ;;  %v4755_v49 = vpop.f32.mrb[21].mxu0 }
 0x784   : > { %v1430_v20 = vpop.f32.mrb[22].mxu0 }
 0x785   : > { %v6016_v21 = vadd.f32 %v1486_v4, %v1430_v20  ;;  %v4756_v51 = vpop.f32.mrb[23].mxu0 }
 0x78a   : > { %v1534_v22 = vpop.f32.mrb[24].mxu0 }
 0x78b   : > { %v4769_v57 = vpop.f32.mrb[25].mxu0  ;;  %v1590_v23 = vsel %vm1030_vm3, %v1534_v22, -inf }
 0x78c   : > { %1591 = vmax.xlane.f32.xlu0 %v1590_v23  ;;  %v1537_v25 = vpop.f32.mrb[26].mxu0 }
 0x78d   : > { %v4770_v26 = vpop.f32.mrb[27].mxu0 }
 0x790   : > { %1606 = vadd.xlane.f32.xlu0 %v1605_v27 }
 0x819   : > { %v1592_v28 = vpop.xlane.xlu0 %1591 }
 0x81a   : > { %v1596_v29 = vsub.f32 %v1534_v22, %v1592_v28 }
 0x81c   : > { %v1598_v30 = vmul.f32 1.442695, %v1596_v29 }
 0x81d   : > { %v1607_v33 = vpop.xlane.xlu0 %1606 }
 0x81e   : > { %5188 = vpow2.f32 %v1598_v30 }
 0x81f   : > { %5190 = vrcp.f32 %v1607_v33 }
 0x828   : > { %v5189_v34 = vpop.eup %5188 }
 0x829   : > { %v5191_v35 = vpop.eup %5190  ;;  %v1602_v36 = vsel %vm1030_vm3, %v5189_v34, 0.0 }
 0x82a   : > { %v1611_v37 = vmul.f32 %v5191_v35, %v5187_v24  ;;  %1603 = vadd.xlane.f32.xlu0 %v1602_v36 }
 0x82c   : > { %v1613_v42 = vpack.c.bf16 %v1611_v37, %v1611_v37 }
 0x82e   : > { %4786 = vmatmul.mubr.msk.bf16.vlgmr.msra.gmra.mrb[28].mxu1 %vm1030_vm3, %v1613_v42 }
 0x82f   : > { %4798 = vmatpush3.bf16.xpose.msra.mxu1 %v1777_v44  ;;  %4799 = vmatprep.mubr.msk.bf16.mxu1 %vm5469_vm0, %v5468_v11 }
 0x830   : > { %4809 = vmatprep.subr.bf16.mxu1 %v5468_v11 }
 0x840   : > { %1614 = vrot.lane.b32.xlu0 %v5908_v2, %s5471_s25 }
 0x844   : > { %1769 = vrot.lane.b32.xlu0 %v5891_v56, %s5472_s15 }
 0x8b7   : > { %v1604_v45 = vpop.xlane.xlu0 %1603 }
 0x8b8   : > { %5192 = vrcp.f32 %v1604_v45 }
 0x8bb   : > { %v1615_v46 = vpop.permute.xlu0 %1614 }
 0x8bc   : > { %v1620_v47 = vsel %vm1060_vm2, %v1615_v46, 0 }
 0x8bd   : > { %4778 = vmatpush3.bf16.msra.mxu0 %v1620_v47 }
 0x8be   : > { %4789 = vmatprep.subr.bf16.mxu0 %v5468_v11 }
 0x8bf   : > { %v1770_v50 = vpop.permute.xlu0 %1769 }
 0x8c0   : > { %4800 = vmatmul.mubr.msk.bf16.vlgmr.msra.gmra.mrb[32].mxu1 %vm937_vm1, %v1770_v50 }
 0x8c1   : > { %4811 = vmatprep.mubr.msk.bf16.mxu1 %vm5469_vm0, %v5468_v11 }
 0x8c2   : > { %v5193_v52 = vpop.eup %5192 }
 0x8c3   : > { %v1610_v48 = vmul.f32 %v5193_v52, %v5189_v34  ;;  %v5088_v52 = vld [vmem:[%s5757_s2 + $0x30] sm:$0xff]  }
 0x8c5   : > { %v1612_v54 = vpack.c.bf16 %v1610_v48, %v1610_v48  ;;  %v5089_v48 = vld [vmem:[%s5757_s2 + $0x38] sm:$0xff]  }
 0x8c7   : > { %4780 = vmatmul.mubr.msk.bf16.vlgmr.msra.gmra.mrb[28].mxu0 %vm1030_vm3, %v1612_v54 }
 0x8c8   : > { %4790 = vmatpush3.bf16.msra.mxu0 %v5086_v53  ;;  %4793 = vmatprep.mubr.msk.bf16.mxu0 %vm5469_vm0, %v5468_v11 }
 0x8c9   : > { %4791 = vmatprep.subr.bf16.mxu0 %v5468_v11 }
 0x8cc   : > { %4792 = vmatpush3.bf16.msra.mxu0 %v5087_v61 }
 0x8cd   : > { %4803 = vmatprep.subr.bf16.mxu0 %v5468_v11 }
 0x901   : > { %v1704_v56 = vpop.f32.mrb[28].mxu1 }
 0x902   : > { %v4787_v55 = vpop.f32.mrb[29].mxu1 }
 0x903   : > { %v1707_v59 = vpop.f32.mrb[30].mxu1 }
 0x904   : > { %v4788_v60 = vpop.f32.mrb[31].mxu1 }
 0x993   : > { %v1813_v62 = vpop.f32.mrb[32].mxu1 }
 0x994   : > { %v4801_v63 = vpop.f32.mrb[33].mxu1  ;;  %v1869_v0 = vsel %vm1030_vm3, %v1813_v62, -inf }
 0x995   : > { %1870 = vmax.xlane.f32.xlu0 %v1869_v0  ;;  %v1816_v1 = vpop.f32.mrb[34].mxu1  ;;  %v6076_v0 = vsub.s32 1, %v5864_v38 }
 0x996   : > { %v4802_v4 = vpop.f32.mrb[35].mxu1 }
 0x997   : > { %v2051_v1 = vrot.slane %v5875_v43, %v6076_v0 }
 0x99a   : > { %v1656_v6 = vpop.f32.mrb[28].mxu0 }
 0x99b   : > { %v1710_v7 = vpack.c.bf16 %v1704_v56, %v1656_v6  ;;  %v4781_v8 = vpop.f32.mrb[29].mxu0 }
 0x99c   : > { %v1659_v9 = vpop.f32.mrb[30].mxu0 }
 0x99d   : > { %v4782_v13 = vpop.f32.mrb[31].mxu0  ;;  %4794 = vmatmul.mubr.msk.bf16.vlgmr.msra.gmra.mrb[32].mxu0 %vm937_vm1, %v1710_v7 }
 0x99e   : > { %4804 = vmatpush3.bf16.xpose.msra.mxu0 %v1827_v12  ;;  %4805 = vmatprep.mubr.msk.bf16.mxu0 %vm5469_vm0, %v5468_v11 }
 0x99f   : > { %4815 = vmatprep.subr.bf16.mxu0 %v5468_v11 }
 0x9a5   : > { %4806 = vmatmul.mubr.msk.bf16.vlgmr.msra.gmra.mrb[36].mxu0 %vm937_vm1, %v1820_v14 }
 0x9a6   : > { %4817 = vmatprep.mubr.msk.bf16.mxu0 %vm5469_vm0, %v5468_v11 }
 0xa22   : > { %v1871_v15 = vpop.xlane.xlu0 %1870 }
 0xa23   : > { %v1875_v16 = vsub.f32 %v1813_v62, %v1871_v15 }
 0xa25   : > { %v1877_v17 = vmul.f32 1.442695, %v1875_v16  ;;  %v5090_v16 = vld [vmem:[%s5781_s29] ss:$8 sps:$4 sm:$0xff]  }
 0xa27   : > { %5194 = vpow2.f32 %v1877_v17  ;;  %v5092_v17 = vld [vmem:[%s5781_s29 + $0x4] ss:$8 sps:$4 sm:$0xff]  }
 0xa31   : > { %v5195_v18 = vpop.eup %5194 }
 0xa32   : > { %v1881_v49 = vsel %vm1030_vm3, %v5195_v18, 0.0 }
 0xa33   : > { %1882 = vadd.xlane.f32.xlu0 %v1881_v49  ;;  %v5099_v49 = vld [vmem:[%s5764_s14] sm:$0xff]  }
 0xa70   : > { %v1760_v20 = vpop.f32.mrb[32].mxu0 }
 0xa71   : > { %v1767_v51 = vadd.f32 %v1760_v20, %v6014_v19  ;;  %v4795_v22 = vpop.f32.mrb[33].mxu0  ;;  %v5093_v20 = vld [vmem:[%s5781_s29 + $0x10] ss:$8 sps:$4 sm:$0xff]  }
 0xa72   : > { %v1763_v57 = vpop.f32.mrb[34].mxu0  ;;  %v5102_v22 = vld [vmem:[%s5781_s29 + $0x34] ss:$8 sps:$4 sm:$0xff]  }
 0xa73   : > { %v1768_v23 = vadd.f32 %v1763_v57, %v6016_v21  ;;  %v4796_v24 = vpop.f32.mrb[35].mxu0  ;;  %v5100_v57 = vld [vmem:[%s5781_s29 + $0x30] ss:$8 sps:$4 sm:$0xff]  }
 0xa74   : > { %v5104_v24 = vld [vmem:[%s5781_s29 + $0x40] ss:$8 sps:$4 sm:$0xff]  }
 0xa78   : > { %v1863_v25 = vpop.f32.mrb[36].mxu0 }
 0xa79   : > { %v4807_v26 = vpop.f32.mrb[37].mxu0  ;;  %v1872_v27 = vsel %vm1030_vm3, %v1863_v25, -inf }
 0xa7a   : > { %1873 = vmax.xlane.f32.xlu1 %v1872_v27  ;;  %v1866_v28 = vpop.f32.mrb[38].mxu0 }
 0xa7b   : > { %v4808_v29 = vpop.f32.mrb[39].mxu0 }
 0xa8b   : > { %1941 = vrot.lane.b32.xlu1 %v5910_v3, %s5472_s15 }
 0xac0   : > { %v1883_v37 = vpop.xlane.xlu0 %1882 }
 0xb07   : > { %v1874_v30 = vpop.xlane.xlu1 %1873 }
 0xb08   : > { %v1876_v33 = vsub.f32 %v1863_v25, %v1874_v30 }
 0xb0a   : > { %v1879_v34 = vmul.f32 1.442695, %v1876_v33 }
 0xb0b   : > { %v1942_v35 = vpop.permute.xlu1 %1941 }
 0xb0c   : > { %5196 = vpow2.f32 %v1879_v34  ;;  %v1947_v19 = vsel %vm1060_vm2, %v1942_v35, 0  ;;  %v5107_v35 = vld [vmem:[%s5764_s14 + $0x10] sm:$0xff]  }
 0xb0d   : > { %4816 = vmatpush3.bf16.msra.mxu0 %v1947_v19  ;;  %5198 = vrcp.f32 %v1883_v37  ;;  %v5110_v19 = vld [vmem:[%s5781_s29 + $0x54] ss:$8 sps:$4 sm:$0xff]   ;;  %v5114_v37 = vld [vmem:[%s5781_s29 + $0x64] ss:$8 sps:$4 sm:$0xff]  }
 0xb0e   : > { %4829 = vmatprep.subr.bf16.mxu0 %v5468_v11 }
 0xb16   : > { %v5197_v21 = vpop.eup %5196 }
 0xb17   : > { %v1884_v36 = vsel %vm1030_vm3, %v5197_v21, 0.0  ;;  %v5199_v3 = vpop.eup %5198 }
 0xb18   : > { %1885 = vadd.xlane.f32.xlu0 %v1884_v36  ;;  %v1889_v42 = vmul.f32 %v5199_v3, %v5195_v18  ;;  %v5095_v18 = vld [vmem:[%s5781_s29 + $0x14] ss:$8 sps:$4 sm:$0xff]   ;;  %v5111_v36 = vld [vmem:[%s5764_s14 + $0x18] sm:$0xff]  }
 0xb19   : > { %v5112_v3 = vld [vmem:[%s5781_s29 + $0x60] ss:$8 sps:$4 sm:$0xff]  }
 0xb1a   : > { %v1891_v46 = vpack.c.bf16 %v1889_v42, %v1889_v42  ;;  %v5118_v42 = vld [vmem:[%s5781_s29 + $0x74] ss:$8 sps:$4 sm:$0xff]  }
 0xb2e   : > { %1893 = vrot.lane.b32.xlu0 %v5908_v2, %s5472_s15 }
 0xba5   : > { %v1886_v41 = vpop.xlane.xlu0 %1885 }
 0xba6   : > { %5200 = vrcp.f32 %v1886_v41  ;;  %v5115_v41 = vld [vmem:[%s5764_s14 + $0x20] sm:$0xff]  }
 0xba9   : > { %v1894_v44 = vpop.permute.xlu0 %1893 }
 0xbaa   : > { %v1899_v45 = vsel %vm1060_vm2, %v1894_v44, 0  ;;  %v5116_v44 = vld [vmem:[%s5781_s29 + $0x70] ss:$8 sps:$4 sm:$0xff]  }
 0xbab   : > { %4810 = vmatpush3.bf16.msra.mxu1 %v1899_v45  ;;  %v655_v45 = vld [vmem:[%s6520_s19] sm:$0xff] }
 0xbac   : > { %4821 = vmatprep.subr.bf16.mxu1 %v5468_v11 }
 0xbae   : > { %4812 = vmatmul.mubr.msk.bf16.vlgmr.msra.gmra.mrb[36].mxu1 %vm1030_vm3, %v1891_v46  ;;  %v656_v46 = vld [vmem:[%s6520_s19 + $0x8] sm:$0xff] }
 0xbaf   : > { %4825 = vmatprep.mubr.msk.bf16.mxu1 %vm5469_vm0, %v5468_v11  ;;  %4822 = vmatpush3.bf16.msra.mxu1 %v5088_v52  ;;  %v5121_v52 = vld [vmem:[%s5764_s14 + $0x38] sm:$0xff]  }
 0xbb0   : > { %v5201_v2 = vpop.eup %5200  ;;  %4823 = vmatprep.subr.bf16.mxu1 %v5468_v11 }
 0xbb1   : > { %v1890_v47 = vmul.f32 %v5201_v2, %v5197_v21  ;;  %v5108_v21 = vld [vmem:[%s5781_s29 + $0x50] ss:$8 sps:$4 sm:$0xff]  }
 0xbb2   : > { %v5119_v2 = vld [vmem:[%s5764_s14 + $0x28] sm:$0xff]  }
 0xbb3   : > { %v1892_v50 = vpack.c.bf16 %v1890_v47, %v1890_v47  ;;  %4824 = vmatpush3.bf16.msra.mxu1 %v5089_v48  ;;  %v2201_v47 = vpack.c.bf16 %v656_v46, %v655_v45 }
 0xbb4   : > { %2306 = vmatprep.subr.bf16.mxu1 %v5092_v17 }
 0xbb5   : > { %4818 = vmatmul.mubr.msk.bf16.vlgmr.msra.gmra.mrb[40].mxu0 %vm1030_vm3, %v1892_v50  ;;  %v5120_v50 = vld [vmem:[%s5764_s14 + $0x30] sm:$0xff]  }
 0xbb6   : > { %4845 = vmatprep.mubr.msk.bf16.mxu0 %vm5469_vm0, %v5468_v11  ;;  %4830 = vmatpush3.bf16.msra.mxu0 %v5099_v49 }
 0xbb7   : > { %4831 = vmatprep.subr.bf16.mxu0 %v5468_v11 }
 0xc81   : > { %v1935_v53 = vpop.f32.mrb[36].mxu1 }
 0xc82   : > { %v4813_v54 = vpop.f32.mrb[37].mxu1 }
 0xc83   : > { %v1938_v56 = vpop.f32.mrb[38].mxu1 }
 0xc84   : > { %v4814_v55 = vpop.f32.mrb[39].mxu1 }
 0xc88   : > { %v1983_v59 = vpop.f32.mrb[40].mxu0 }
 0xc89   : > { %v1989_v60 = vpack.c.bf16 %v1983_v59, %v1935_v53  ;;  %v4819_v61 = vpop.f32.mrb[41].mxu0 }
 0xc8a   : > { %v1986_v62 = vpop.f32.mrb[42].mxu0 }
 0xc8b   : > { %v4820_v63 = vpop.f32.mrb[43].mxu0  ;;  %4826 = vmatmul.mubr.msk.bf16.vlgmr.msra.gmra.mrb[40].mxu1 %vm937_vm1, %v1989_v60  ;;  %v2082_v60 = vrot.slane %v5870_v40, %v6076_v0 }
 0xc8c   : > { %2338 = vmatprep.mubr.bf16.mxu1 %v5467_v10  ;;  %2307 = vmatpush1.bf16.msra.mxu1 %v5090_v16 }
 0xc8d   : > { %2308 = vmatprep.subr.bf16.mxu1 %v5095_v18 }
 0xc90   : > { %2309 = vmatpush1.bf16.msra.mxu1 %v5093_v20 }
 0xd5e   : > { %v2039_v4 = vpop.f32.mrb[40].mxu1 }
 0xd5f   : > { %v2046_v5 = vadd.f32 %v2039_v4, %v1767_v51  ;;  %v4827_v6 = vpop.f32.mrb[41].mxu1  ;;  %v5098_v51 = vld [vmem:[%s5781_s29 + $0x24] ss:$8 sps:$4 sm:$0xff]  }
 0xd60   : > { %v2042_v7 = vpop.f32.mrb[42].mxu1  ;;  %2310 = vmatprep.subr.bf16.mxu1 %v5098_v51 }
 0xd61   : > { %v2052_v8 = vadd.f32 %v2051_v1, %v2046_v5  ;;  %v2047_v9 = vadd.f32 %v2042_v7, %v1768_v23  ;;  %v4828_v12 = vpop.f32.mrb[43].mxu1  ;;  %v5106_v23 = vld [vmem:[%s5781_s29 + $0x44] ss:$8 sps:$4 sm:$0xff]   ;;  %v2088_v5 = vrot.slane %v5904_v58, %v6076_v0 }
 0xd62   : > { %v6136_v12 = vsub.s32 2, %v5864_v38 }
 0xd63   : > { %v2053_v13 = vadd.f32 %v2051_v1, %v2047_v9  ;;  %v2054_v14 = vadd.f32 %v2052_v8, %v5843_v31  ;;  %v5103_v31 = vld [vmem:[%s5764_s14 + $0x8] sm:$0xff]  }
 0xd64   : > { %4832 = vmatpush3.bf16.msra.mxu0 %v5103_v31 }
 0xd65   : > { %2056 = vadd.xlane.f32.xlu1 %v2054_v14  ;;  %v2055_v15 = vadd.f32 %v2053_v13, %v5845_v32  ;;  %v5096_v32 = vld [vmem:[%s5781_s29 + $0x20] ss:$8 sps:$4 sm:$0xff]   ;;  %4833 = vmatprep.subr.bf16.mxu0 %v5468_v11  ;;  %v2221_v13 = vrot.slane %v5870_v40, %v6136_v12  ;;  %v2225_v40 = vrot.slane %v5904_v58, %v6136_v12 }
 0xd66   : > { %2311 = vmatpush1.bf16.msra.mxu1 %v5096_v32 }
 0xd67   : > { %2058 = vadd.xlane.f32.xlu0 %v2055_v15  ;;  %2312 = vmatprep.subr.bf16.mxu1 %v5102_v22 }
 0xd68   : > { %4834 = vmatpush3.bf16.msra.mxu0 %v5107_v35 }
 0xd69   : > { %4835 = vmatprep.subr.bf16.mxu0 %v5468_v11 }
 0xd6a   : > { %2313 = vmatpush1.bf16.msra.mxu1 %v5100_v57  ;;  %v2111_v57 = vrot.slane %v5875_v43, %v6136_v12 }
 0xd6b   : > { %2314 = vmatprep.subr.bf16.mxu1 %v5106_v23 }
 0xd6c   : > { %4836 = vmatpush3.bf16.msra.mxu0 %v5111_v36 }
 0xd6d   : > { %4837 = vmatprep.subr.bf16.mxu0 %v5468_v11 }
 0xd6e   : > { %2315 = vmatpush1.bf16.msra.mxu1 %v5104_v24 }
 0xd6f   : > { %2316 = vmatprep.subr.bf16.mxu1 %v5110_v19 }
 0xd70   : > { %4838 = vmatpush3.bf16.msra.mxu0 %v5115_v41 }
 0xd71   : > { %4839 = vmatprep.subr.bf16.mxu0 %v5468_v11 }
 0xd72   : > { %2317 = vmatpush1.bf16.msra.mxu1 %v5108_v21 }
 0xd73   : > { %2318 = vmatprep.subr.bf16.mxu1 %v5114_v37 }
 0xd74   : > { %4840 = vmatpush3.bf16.msra.mxu0 %v5119_v2 }
 0xd75   : > { %4841 = vmatprep.subr.bf16.mxu0 %v5468_v11 }
 0xd76   : > { %2319 = vmatpush1.bf16.msra.mxu1 %v5112_v3 }
 0xd77   : > { %2320 = vmatprep.subr.bf16.mxu1 %v5118_v42 }
 0xd78   : > { %4842 = vmatpush3.bf16.msra.mxu0 %v5120_v50 }
 0xd79   : > { %4843 = vmatprep.subr.bf16.mxu0 %v5468_v11 }
 0xd7a   : > { %2321 = vmatpush1.bf16.msra.mxu1 %v5116_v44 }
 0xd7b   : > { %4855 = vmatprep.subr.bf16.mxu1 %v5468_v11 }
 0xd7c   : > { %4844 = vmatpush3.bf16.msra.mxu0 %v5121_v52 }
 0xd7d   : > { %2339 = vmatmul.mubr.bf16.vlgmr.msra.gmra.mrb[44].mxu1 %v2201_v47  ;;  %4849 = vmatprep.subr.bf16.mxu0 %v5468_v11 }
 0xd7e   : > { %4857 = vmatprep.mubr.msk.bf16.mxu1 %vm5469_vm0, %v5468_v11 }
 0xdf2   : > { %v2057_v25 = vpop.xlane.xlu1 %2056 }
 0xdf3   : > { %v2061_v26 = vmul.f32 0.0078125, %v2057_v25 }
 0xdf4   : > { %v2059_v27 = vpop.xlane.xlu0 %2058 }
 0xdf5   : > { %v2063_v28 = vsub.f32 %v2054_v14, %v2061_v26  ;;  %v2062_v29 = vmul.f32 0.0078125, %v2059_v27 }
 0xdf7   : > { %v2064_v30 = vsub.f32 %v2055_v15, %v2062_v29  ;;  %v2065_v33 = vmul.f32 %v2063_v28, %v2063_v28 }
 0xdf9   : > { %2067 = vadd.xlane.f32.xlu0 %v2065_v33  ;;  %v2066_v34 = vmul.f32 %v2064_v30, %v2064_v30 }
 0xdfb   : > { %2069 = vadd.xlane.f32.xlu1 %v2066_v34 }
 0xe50   : > { %v2340_v14 = vpop.f32.mrb[44].mxu1 }
 0xe51   : > { %v2341_v15 = vadd.f32 %v2340_v14, %v2221_v13  ;;  %v2342_v16 = vpop.f32.mrb[45].mxu1 }
 0xe52   : > { %v2344_v17 = vpop.f32.mrb[46].mxu1  ;;  %v2343_v22 = vadd.f32 %v2342_v16, %v2225_v40 }
 0xe53   : > { %v6140_v18 = vpack.c.bf16 %v2341_v15, %v2341_v15  ;;  %v2345_v49 = vadd.f32 %v2344_v17, %v2221_v13  ;;  %v2346_v20 = vpop.f32.mrb[47].mxu1 }
 0xe54   : > { %v2347_v23 = vadd.f32 %v2346_v20, %v2225_v40  ;;  %v6154_v25 = vpack.c.bf16 %v2343_v22, %v2343_v22 }
 0xe55   : > { %v6142_v51 = vpack.c.bf16 %v2345_v49, %v2345_v49  ;;  %v2373_v31 = vsel %vm937_vm1, %v6140_v18, 0 }
 0xe56   : > { %v6156_v29 = vpack.c.bf16 %v2347_v23, %v2347_v23  ;;  %v2491_v43 = vsel %vm1060_vm2, %v6154_v25, 0 }
 0xe57   : > { %v2419_v32 = vsel %vm937_vm1, %v6142_v51, 0 }
 0xe58   : > { %4856 = vmatpush3.bf16.xpose.msra.mxu1 %v2419_v32  ;;  %v2537_v58 = vsel %vm1060_vm2, %v6156_v29, 0 }
 0xe59   : > { %4867 = vmatprep.subr.bf16.mxu1 %v5468_v11 }
 0xe86   : > { %v2068_v48 = vpop.xlane.xlu0 %2067 }
 0xe87   : > { %v2071_v53 = vmul.f32 0.0078125, %v2068_v48 }
 0xe88   : > { %v2070_v54 = vpop.xlane.xlu1 %2069 }
 0xe89   : > { %v2073_v56 = vadd.f32 1e-05, %v2071_v53  ;;  %v2072_v55 = vmul.f32 0.0078125, %v2070_v54 }
 0xe8b   : > { %5202 = vrsqrt.f32 %v2073_v56  ;;  %v2074_v59 = vadd.f32 1e-05, %v2072_v55 }
 0xe8d   : > { %5204 = vrsqrt.f32 %v2074_v59 }
 0xe95   : > { %v5203_v61 = vpop.eup %5202 }
 0xe96   : > { %v2077_v62 = vmul.f32 %v5203_v61, %v2063_v28 }
 0xe97   : > { %v5205_v63 = vpop.eup %5204 }
 0xe98   : > { %v2078_v1 = vmul.f32 %v5205_v63, %v2064_v30  ;;  %v2083_v4 = vmul.f32 %v2082_v60, %v2077_v62 }
 0xe9a   : > { %v2084_v6 = vmul.f32 %v2082_v60, %v2078_v1  ;;  %v6127_v7 = vadd.f32 %v2088_v5, %v2083_v4 }
 0xe9c   : > { %v6129_v8 = vadd.f32 %v2088_v5, %v2084_v6 }
 0xe9e   : > { %v2091_v9 = vpack.c.bf16 %v6129_v8, %v6127_v7 }
 0xea0   : > { %4846 = vmatmul.mubr.bf16.vlgmr.msra.gmra.mrb[44].mxu0 %v2091_v9 }
 0xea1   : > { %4851 = vmatprep.mubr.msk.bf16.mxu0 %vm5469_vm0, %v5468_v11  ;;  %4850 = vmatpush3.bf16.xpose.msra.mxu0 %v2373_v31 }
 0xea2   : > { %4861 = vmatprep.subr.bf16.mxu0 %v5468_v11 }
 0xf73   : > { %v2194_v24 = vpop.f32.mrb[44].mxu0 }
 0xf74   : > { %v2195_v26 = vadd.f32 %v2194_v24, %v2111_v57  ;;  %v4847_v27 = vpop.f32.mrb[45].mxu0 }
 0xf75   : > { %v2197_v28 = vpop.f32.mrb[46].mxu0 }
 0xf76   : > { %v6158_v30 = vpack.c.bf16 %v2195_v26, %v2195_v26  ;;  %v2198_v33 = vadd.f32 %v2197_v28, %v2111_v57  ;;  %v4848_v34 = vpop.f32.mrb[47].mxu0 }
 0xf78   : > { %v6160_v35 = vpack.c.bf16 %v2198_v33, %v2198_v33  ;;  %4852 = vmatmul.mubr.msk.bf16.vlgmr.msra.gmra.mrb[48].mxu0 %vm937_vm1, %v6158_v30 }
 0xf79   : > { %4862 = vmatpush3.bf16.msra.mxu0 %v2491_v43  ;;  %4863 = vmatprep.mubr.msk.bf16.mxu0 %vm5469_vm0, %v5468_v11 }
 0xf7a   : > { %4858 = vmatmul.mubr.msk.bf16.vlgmr.msra.gmra.mrb[48].mxu1 %vm937_vm1, %v6160_v35  ;;  %4873 = vmatprep.subr.bf16.mxu0 %v5468_v11 }
 0xf7b   : > { %4868 = vmatpush3.bf16.msra.mxu1 %v2537_v58  ;;  %4869 = vmatprep.mubr.msk.bf16.mxu1 %vm5469_vm0, %v5468_v11 }
 0xf7c   : > { %4879 = vmatprep.subr.bf16.mxu1 %v5468_v11 }
0x104b   : > { %v2409_v19 = vpop.f32.mrb[48].mxu0 }
0x104c   : > { %v4853_v21 = vpop.f32.mrb[49].mxu0  ;;  %v2461_v36 = vsel %vm1030_vm3, %v2409_v19, -inf }
0x104d   : > { %v2455_v37 = vpop.f32.mrb[48].mxu1  ;;  %2462 = vmax.xlane.f32.xlu0 %v2461_v36  ;;  %v2412_v3 = vpop.f32.mrb[50].mxu0 }
0x104e   : > { %v4854_v41 = vpop.f32.mrb[51].mxu0  ;;  %v4859_v42 = vpop.f32.mrb[49].mxu1  ;;  %v2464_v44 = vsel %vm1030_vm3, %v2455_v37, -inf }
0x104f   : > { %2465 = vmax.xlane.f32.xlu1 %v2464_v44  ;;  %v2458_v45 = vpop.f32.mrb[50].mxu1 }
0x1050   : > { %v4860_v46 = vpop.f32.mrb[51].mxu1 }
0x1060   : > { %2636 = vrot.lane.b32.xlu1 %v6142_v51, %s5470_s30 }
0x10da   : > { %v2463_v2 = vpop.xlane.xlu0 %2462 }
0x10db   : > { %v2467_v47 = vsub.f32 %v2409_v19, %v2463_v2 }
0x10dc   : > { %v2466_v50 = vpop.xlane.xlu1 %2465 }
0x10dd   : > { %v2469_v52 = vmul.f32 1.442695, %v2467_v47  ;;  %v2468_v48 = vsub.f32 %v2455_v37, %v2466_v50 }
0x10df   : > { %5206 = vpow2.f32 %v2469_v52  ;;  %v2471_v53 = vmul.f32 1.442695, %v2468_v48 }
0x10e0   : > { %v2637_v60 = vpop.permute.xlu1 %2636 }
0x10e1   : > { %5208 = vpow2.f32 %v2471_v53  ;;  %v2642_v15 = vsel %vm937_vm1, %v2637_v60, 0 }
0x10e9   : > { %v5207_v54 = vpop.eup %5206 }
0x10ea   : > { %v2473_v56 = vsel %vm1030_vm3, %v5207_v54, 0.0 }
0x10eb   : > { %v5209_v55 = vpop.eup %5208  ;;  %2474 = vadd.xlane.f32.xlu0 %v2473_v56 }
0x10ec   : > { %v2476_v59 = vsel %vm1030_vm3, %v5209_v55, 0.0 }
0x10ed   : > { %2477 = vadd.xlane.f32.xlu1 %v2476_v59 }
0x10fe   : > { %2581 = vrot.lane.b32.xlu1 %v6158_v30, %s5470_s30 }
0x1101   : > { %2584 = vrot.lane.b32.xlu0 %v6140_v18, %s5470_s30 }
0x1102   : > { %2633 = vrot.lane.b32.xlu1 %v6160_v35, %s5470_s30 }
0x1178   : > { %v2475_v61 = vpop.xlane.xlu0 %2474 }
0x1179   : > { %5210 = vrcp.f32 %v2475_v61  ;;  %v5124_v61 = vld [vmem:[%s5770_s21 + $0x10] sm:$0xff]  }
0x117a   : > { %v2478_v62 = vpop.xlane.xlu1 %2477 }
0x117b   : > { %5212 = vrcp.f32 %v2478_v62 }
0x117c   : > { %v2585_v5 = vpop.permute.xlu0 %2584 }
0x117d   : > { %v2590_v13 = vsel %vm937_vm1, %v2585_v5, 0 }
0x117e   : > { %v2582_v16 = vpop.permute.xlu1 %2581 }
0x1182   : > { %v2634_v17 = vpop.permute.xlu1 %2633 }
0x1183   : > { %v5211_v63 = vpop.eup %5210 }
0x1184   : > { %v2481_v1 = vmul.f32 %v5211_v63, %v5207_v54 }
0x1185   : > { %v5213_v4 = vpop.eup %5212 }
0x1186   : > { %v2482_v6 = vmul.f32 %v5213_v4, %v5209_v55  ;;  %v2483_v9 = vpack.c.bf16 %v2481_v1, %v2481_v1  ;;  %v5122_v4 = vld [vmem:[%s5770_s21] sm:$0xff]  }
0x1188   : > { %4864 = vmatmul.mubr.msk.bf16.vlgmr.msra.gmra.mrb[52].mxu0 %vm1030_vm3, %v2483_v9  ;;  %v2484_v14 = vpack.c.bf16 %v2482_v6, %v2482_v6  ;;  %v5125_v6 = vld [vmem:[%s5770_s21 + $0x18] sm:$0xff]   ;;  %v5123_v9 = vld [vmem:[%s5770_s21 + $0x8] sm:$0xff]  }
0x1189   : > { %4874 = vmatpush3.bf16.xpose.msra.mxu0 %v2590_v13  ;;  %4875 = vmatprep.mubr.msk.bf16.mxu0 %vm5469_vm0, %v5468_v11 }
0x118a   : > { %4870 = vmatmul.mubr.msk.bf16.vlgmr.msra.gmra.mrb[52].mxu1 %vm1030_vm3, %v2484_v14  ;;  %4885 = vmatprep.subr.bf16.mxu0 %v5468_v11 }
0x118b   : > { %4880 = vmatpush3.bf16.xpose.msra.mxu1 %v2642_v15  ;;  %4881 = vmatprep.mubr.msk.bf16.mxu1 %vm5469_vm0, %v5468_v11 }
0x118c   : > { %4891 = vmatprep.subr.bf16.mxu1 %v5468_v11 }
0x1190   : > { %4876 = vmatmul.mubr.msk.bf16.vlgmr.msra.gmra.mrb[56].mxu0 %vm937_vm1, %v2582_v16 }
0x1191   : > { %4887 = vmatprep.mubr.msk.bf16.mxu0 %vm5469_vm0, %v5468_v11 }
0x1192   : > { %4882 = vmatmul.mubr.msk.bf16.vlgmr.msra.gmra.mrb[56].mxu1 %vm937_vm1, %v2634_v17 }
0x1193   : > { %4893 = vmatprep.mubr.msk.bf16.mxu1 %vm5469_vm0, %v5468_v11 }
0x125b   : > { %v6204_v49 = vpop.f32.mrb[52].mxu0 }
0x125c   : > { %v4865_v20 = vpop.f32.mrb[53].mxu0 }
0x125d   : > { %v2530_v31 = vpop.f32.mrb[54].mxu0  ;;  %v6206_v32 = vpop.f32.mrb[52].mxu1 }
0x125e   : > { %v2579_v40 = vpack.c.bf16 %v6206_v32, %v6204_v49  ;;  %v4866_v22 = vpop.f32.mrb[55].mxu0  ;;  %v4871_v57 = vpop.f32.mrb[53].mxu1 }
0x125f   : > { %v2576_v23 = vpop.f32.mrb[54].mxu1 }
0x1260   : > { %v4872_v24 = vpop.f32.mrb[55].mxu1 }
0x1263   : > { %v2626_v26 = vpop.f32.mrb[56].mxu0 }
0x1264   : > { %v4877_v27 = vpop.f32.mrb[57].mxu0  ;;  %v2684_v28 = vsel %vm1030_vm3, %v2626_v26, -inf }
0x1265   : > { %v2678_v33 = vpop.f32.mrb[56].mxu1  ;;  %2685 = vmax.xlane.f32.xlu0 %v2684_v28  ;;  %v2629_v34 = vpop.f32.mrb[58].mxu0 }
0x1266   : > { %v4878_v43 = vpop.f32.mrb[59].mxu0  ;;  %v4883_v58 = vpop.f32.mrb[57].mxu1  ;;  %v2687_v19 = vsel %vm1030_vm3, %v2678_v33, -inf }
0x1267   : > { %2688 = vmax.xlane.f32.xlu1 %v2687_v19  ;;  %v2681_v21 = vpop.f32.mrb[58].mxu1 }
0x1268   : > { %v4884_v36 = vpop.f32.mrb[59].mxu1 }
0x1278   : > { %2758 = vrot.lane.b32.xlu1 %v6156_v29, %s5470_s30 }
0x127c   : > { %2921 = vrot.lane.b32.xlu1 %v6140_v18, %s5471_s25 }
0x1280   : > { %2971 = vrot.lane.b32.xlu1 %v6142_v51, %s5471_s25 }
0x1284   : > { %2969 = vrot.lane.b32.xlu1 %v6160_v35, %s5471_s25 }
0x12f2   : > { %v2686_v37 = vpop.xlane.xlu0 %2685 }
0x12f3   : > { %v2690_v3 = vsub.f32 %v2626_v26, %v2686_v37 }
0x12f4   : > { %v2689_v41 = vpop.xlane.xlu1 %2688 }
0x12f5   : > { %v2692_v42 = vmul.f32 1.442695, %v2690_v3  ;;  %v2691_v44 = vsub.f32 %v2678_v33, %v2689_v41 }
0x12f7   : > { %5214 = vpow2.f32 %v2692_v42  ;;  %v2694_v45 = vmul.f32 1.442695, %v2691_v44 }
0x12f8   : > { %v2759_v46 = vpop.permute.xlu1 %2758 }
0x12f9   : > { %5216 = vpow2.f32 %v2694_v45  ;;  %v2764_v2 = vsel %vm1060_vm2, %v2759_v46, 0 }
0x12fa   : > { %4892 = vmatpush3.bf16.msra.mxu1 %v2764_v2 }
0x12fb   : > { %4905 = vmatprep.subr.bf16.mxu1 %v5468_v11 }
0x12fc   : > { %v2922_v13 = vpop.permute.xlu1 %2921 }
0x12fd   : > { %v2927_v23 = vsel %vm937_vm1, %v2922_v13, 0 }
0x1300   : > { %v2972_v14 = vpop.permute.xlu1 %2971 }
0x1301   : > { %v5215_v47 = vpop.eup %5214  ;;  %v2977_v15 = vsel %vm937_vm1, %v2972_v14, 0 }
0x1302   : > { %v2696_v50 = vsel %vm1030_vm3, %v5215_v47, 0.0 }
0x1303   : > { %v5217_v52 = vpop.eup %5216  ;;  %2697 = vadd.xlane.f32.xlu0 %v2696_v50 }
0x1304   : > { %v2699_v48 = vsel %vm1030_vm3, %v5217_v52, 0.0  ;;  %v2970_v16 = vpop.permute.xlu1 %2969 }
0x1307   : > { %2700 = vadd.xlane.f32.xlu0 %v2699_v48 }
0x131d   : > { %2709 = vrot.lane.b32.xlu0 %v6154_v25, %s5470_s30 }
0x1321   : > { %2919 = vrot.lane.b32.xlu0 %v6158_v30, %s5471_s25 }
0x1390   : > { %v2698_v53 = vpop.xlane.xlu0 %2697 }
0x1391   : > { %5218 = vrcp.f32 %v2698_v53 }
0x1394   : > { %v2701_v54 = vpop.xlane.xlu0 %2700 }
0x1395   : > { %5220 = vrcp.f32 %v2701_v54 }
0x1398   : > { %v2710_v56 = vpop.permute.xlu0 %2709 }
0x1399   : > { %v2715_v55 = vsel %vm1060_vm2, %v2710_v56, 0 }
0x139a   : > { %4886 = vmatpush3.bf16.msra.mxu0 %v2715_v55 }
0x139b   : > { %v5219_v59 = vpop.eup %5218  ;;  %4897 = vmatprep.subr.bf16.mxu0 %v5468_v11 }
0x139c   : > { %v2704_v60 = vmul.f32 %v5219_v59, %v5215_v47  ;;  %v2920_v28 = vpop.permute.xlu0 %2919 }
0x139e   : > { %v2706_v62 = vpack.c.bf16 %v2704_v60, %v2704_v60 }
0x139f   : > { %v5221_v63 = vpop.eup %5220 }
0x13a0   : > { %v2705_v1 = vmul.f32 %v5221_v63, %v5217_v52  ;;  %4888 = vmatmul.mubr.msk.bf16.vlgmr.msra.gmra.mrb[60].mxu0 %vm1030_vm3, %v2706_v62 }
0x13a1   : > { %4898 = vmatpush3.bf16.msra.mxu0 %v5124_v61  ;;  %4901 = vmatprep.mubr.msk.bf16.mxu0 %vm5469_vm0, %v5468_v11 }
0x13a2   : > { %v2707_v5 = vpack.c.bf16 %v2705_v1, %v2705_v1  ;;  %4899 = vmatprep.subr.bf16.mxu0 %v5468_v11 }
0x13a4   : > { %4894 = vmatmul.mubr.msk.bf16.vlgmr.msra.gmra.mrb[60].mxu1 %vm1030_vm3, %v2707_v5 }
0x13a5   : > { %4906 = vmatpush3.bf16.msra.mxu1 %v5122_v4  ;;  %4909 = vmatprep.mubr.msk.bf16.mxu1 %vm5469_vm0, %v5468_v11 }
0x13a6   : > { %4907 = vmatprep.subr.bf16.mxu1 %v5468_v11  ;;  %4900 = vmatpush3.bf16.msra.mxu0 %v5125_v6 }
0x13a7   : > { %4913 = vmatprep.subr.bf16.mxu0 %v5468_v11 }
0x13a9   : > { %4908 = vmatpush3.bf16.msra.mxu1 %v5123_v9 }
0x13aa   : > { %4919 = vmatprep.subr.bf16.mxu1 %v5468_v11 }
0x13ac   : > { %4910 = vmatmul.mubr.msk.bf16.vlgmr.msra.gmra.mrb[64].mxu1 %vm937_vm1, %v2579_v40 }
0x13ad   : > { %4921 = vmatprep.mubr.msk.bf16.mxu1 %vm5469_vm0, %v5468_v11 }
0x13b2   : > { %4920 = vmatpush3.bf16.xpose.msra.mxu1 %v2977_v15 }
0x13b3   : > { %4931 = vmatprep.subr.bf16.mxu1 %v5468_v11 }
0x13b9   : > { %4922 = vmatmul.mubr.msk.bf16.vlgmr.msra.gmra.mrb[68].mxu1 %vm937_vm1, %v2970_v16 }
0x13ba   : > { %4933 = vmatprep.mubr.msk.bf16.mxu1 %vm5469_vm0, %v5468_v11 }
0x1473   : > { %v2751_v17 = vpop.f32.mrb[60].mxu0 }
0x1474   : > { %v4889_v20 = vpop.f32.mrb[61].mxu0 }
0x1475   : > { %v2754_v49 = vpop.f32.mrb[62].mxu0 }
0x1476   : > { %v4890_v31 = vpop.f32.mrb[63].mxu0  ;;  %v5126_v49 = vld [vmem:[%s5770_s21 + $0x20] sm:$0xff]  }
0x1477   : > { %v2800_v32 = vpop.f32.mrb[60].mxu1 }
0x1478   : > { %v2806_v40 = vpack.c.bf16 %v2800_v32, %v2751_v17  ;;  %v4895_v22 = vpop.f32.mrb[61].mxu1 }
0x1479   : > { %v2803_v57 = vpop.f32.mrb[62].mxu1 }
0x147a   : > { %v4896_v24 = vpop.f32.mrb[63].mxu1  ;;  %4902 = vmatmul.mubr.msk.bf16.vlgmr.msra.gmra.mrb[64].mxu0 %vm937_vm1, %v2806_v40  ;;  %v5127_v57 = vld [vmem:[%s5770_s21 + $0x28] sm:$0xff]  }
0x147b   : > { %4914 = vmatpush3.bf16.xpose.msra.mxu0 %v2927_v23  ;;  %4915 = vmatprep.mubr.msk.bf16.mxu0 %vm5469_vm0, %v5468_v11 }
0x147c   : > { %4925 = vmatprep.subr.bf16.mxu0 %v5468_v11 }
0x147f   : > { %v2912_v26 = vpop.f32.mrb[64].mxu1 }
0x1480   : > { %v4911_v27 = vpop.f32.mrb[65].mxu1 }
0x1481   : > { %v2915_v33 = vpop.f32.mrb[66].mxu1 }
0x1482   : > { %v4912_v34 = vpop.f32.mrb[67].mxu1  ;;  %4916 = vmatmul.mubr.msk.bf16.vlgmr.msra.gmra.mrb[68].mxu0 %vm937_vm1, %v2920_v28 }
0x1483   : > { %4927 = vmatprep.mubr.msk.bf16.mxu0 %vm5469_vm0, %v5468_v11 }
0x148c   : > { %v3013_v43 = vpop.f32.mrb[68].mxu1 }
0x148d   : > { %v4923_v58 = vpop.f32.mrb[69].mxu1  ;;  %v3022_v19 = vsel %vm1030_vm3, %v3013_v43, -inf }
0x148e   : > { %3023 = vmax.xlane.f32.xlu1 %v3022_v19  ;;  %v3016_v21 = vpop.f32.mrb[70].mxu1 }
0x148f   : > { %v4924_v36 = vpop.f32.mrb[71].mxu1 }
0x149f   : > { %3091 = vrot.lane.b32.xlu1 %v6156_v29, %s5471_s25 }
0x14a3   : > { %3200 = vrot.lane.b32.xlu1 %v6140_v18, %s5472_s15 }
0x14a7   : > { %3250 = vrot.lane.b32.xlu1 %v6142_v51, %s5472_s15 }
0x14ab   : > { %3248 = vrot.lane.b32.xlu1 %v6160_v35, %s5472_s15 }
0x151b   : > { %v3024_v37 = vpop.xlane.xlu1 %3023 }
0x151c   : > { %v3026_v42 = vsub.f32 %v3013_v43, %v3024_v37 }
0x151e   : > { %v3029_v44 = vmul.f32 1.442695, %v3026_v42 }
0x151f   : > { %v3092_v3 = vpop.permute.xlu1 %3091 }
0x1520   : > { %v3097_v41 = vsel %vm1060_vm2, %v3092_v3, 0  ;;  %5222 = vpow2.f32 %v3029_v44 }
0x1521   : > { %4932 = vmatpush3.bf16.msra.mxu1 %v3097_v41 }
0x1522   : > { %4945 = vmatprep.subr.bf16.mxu1 %v5468_v11 }
0x1523   : > { %v3201_v5 = vpop.permute.xlu1 %3200 }
0x1524   : > { %v3206_v9 = vsel %vm937_vm1, %v3201_v5, 0 }
0x152a   : > { %v5223_v48 = vpop.eup %5222 }
0x152b   : > { %v3034_v56 = vsel %vm1030_vm3, %v5223_v48, 0.0 }
0x154d   : > { %v2856_v45 = vpop.f32.mrb[64].mxu0 }
0x154e   : > { %v6274_v46 = vadd.f32 %v2912_v26, %v2856_v45  ;;  %v4903_v18 = vpop.f32.mrb[65].mxu0 }
0x154f   : > { %v2859_v2 = vpop.f32.mrb[66].mxu0 }
0x1550   : > { %v6276_v47 = vadd.f32 %v2915_v33, %v2859_v2  ;;  %v4904_v51 = vpop.f32.mrb[67].mxu0  ;;  %v3251_v33 = vpop.permute.xlu1 %3250 }
0x1551   : > { %v3256_v21 = vsel %vm937_vm1, %v3251_v33, 0 }
0x1554   : > { %v3249_v37 = vpop.permute.xlu1 %3248 }
0x1555   : > { %v2963_v50 = vpop.f32.mrb[68].mxu0 }
0x1556   : > { %v4917_v35 = vpop.f32.mrb[69].mxu0  ;;  %v3019_v52 = vsel %vm1030_vm3, %v2963_v50, -inf }
0x1557   : > { %3020 = vmax.xlane.f32.xlu0 %v3019_v52  ;;  %v2966_v53 = vpop.f32.mrb[70].mxu0 }
0x1558   : > { %v4918_v54 = vpop.f32.mrb[71].mxu0 }
0x155b   : > { %3035 = vadd.xlane.f32.xlu0 %v3034_v56 }
0x15e4   : > { %v3021_v55 = vpop.xlane.xlu0 %3020 }
0x15e5   : > { %v3025_v59 = vsub.f32 %v2963_v50, %v3021_v55 }
0x15e7   : > { %v3027_v60 = vmul.f32 1.442695, %v3025_v59 }
0x15e8   : > { %v3036_v61 = vpop.xlane.xlu0 %3035 }
0x15e9   : > { %5224 = vpow2.f32 %v3027_v60 }
0x15ea   : > { %5226 = vrcp.f32 %v3036_v61 }
0x15f3   : > { %v5225_v62 = vpop.eup %5224 }
0x15f4   : > { %v5227_v63 = vpop.eup %5226  ;;  %v3031_v1 = vsel %vm1030_vm3, %v5225_v62, 0.0 }
0x15f5   : > { %v3040_v4 = vmul.f32 %v5227_v63, %v5223_v48  ;;  %3032 = vadd.xlane.f32.xlu0 %v3031_v1 }
0x15f7   : > { %v3042_v6 = vpack.c.bf16 %v3040_v4, %v3040_v4 }
0x15f9   : > { %4934 = vmatmul.mubr.msk.bf16.vlgmr.msra.gmra.mrb[72].mxu1 %vm1030_vm3, %v3042_v6 }
0x15fa   : > { %4946 = vmatpush3.bf16.xpose.msra.mxu1 %v3206_v9  ;;  %4947 = vmatprep.mubr.msk.bf16.mxu1 %vm5469_vm0, %v5468_v11 }
0x15fb   : > { %4957 = vmatprep.subr.bf16.mxu1 %v5468_v11 }
0x160b   : > { %3043 = vrot.lane.b32.xlu0 %v6154_v25, %s5471_s25 }
0x160f   : > { %3198 = vrot.lane.b32.xlu0 %v6158_v30, %s5472_s15 }
0x1682   : > { %v3033_v13 = vpop.xlane.xlu0 %3032 }
0x1683   : > { %5228 = vrcp.f32 %v3033_v13 }
0x1686   : > { %v3044_v14 = vpop.permute.xlu0 %3043 }
0x1687   : > { %v3049_v15 = vsel %vm1060_vm2, %v3044_v14, 0 }
0x1688   : > { %4926 = vmatpush3.bf16.msra.mxu0 %v3049_v15 }
0x1689   : > { %4937 = vmatprep.subr.bf16.mxu0 %v5468_v11 }
0x168a   : > { %v3199_v16 = vpop.permute.xlu0 %3198 }
0x168b   : > { %4948 = vmatmul.mubr.msk.bf16.vlgmr.msra.gmra.mrb[76].mxu1 %vm937_vm1, %v3199_v16  ;;  %v5128_v16 = vld [vmem:[%s5770_s21 + $0x30] sm:$0xff]  }
0x168c   : > { %4959 = vmatprep.mubr.msk.bf16.mxu1 %vm5469_vm0, %v5468_v11 }
0x168d   : > { %v5229_v17 = vpop.eup %5228 }
0x168e   : > { %v3039_v20 = vmul.f32 %v5229_v17, %v5225_v62  ;;  %v5129_v17 = vld [vmem:[%s5770_s21 + $0x38] sm:$0xff]   ;;  %s6521_s21 = sld [smem:[#allocation23_spill]] (!%p4512_p4) }
0x1690   : > { %v3041_v31 = vpack.c.bf16 %v3039_v20, %v3039_v20 }
0x1692   : > { %4928 = vmatmul.mubr.msk.bf16.vlgmr.msra.gmra.mrb[72].mxu0 %vm1030_vm3, %v3041_v31 }
0x1693   : > { %4938 = vmatpush3.bf16.msra.mxu0 %v5126_v49  ;;  %4941 = vmatprep.mubr.msk.bf16.mxu0 %vm5469_vm0, %v5468_v11 }
0x1694   : > { %4939 = vmatprep.subr.bf16.mxu0 %v5468_v11 }
0x1697   : > { %4940 = vmatpush3.bf16.msra.mxu0 %v5127_v57 }
0x1698   : > { %4951 = vmatprep.subr.bf16.mxu0 %v5468_v11 }
0x16cc   : > { %v3133_v30 = vpop.f32.mrb[72].mxu1 }
0x16cd   : > { %v4935_v32 = vpop.f32.mrb[73].mxu1 }
0x16ce   : > { %v3136_v40 = vpop.f32.mrb[74].mxu1 }
0x16cf   : > { %v4936_v22 = vpop.f32.mrb[75].mxu1 }
0x175e   : > { %v3242_v23 = vpop.f32.mrb[76].mxu1 }
0x175f   : > { %v4949_v24 = vpop.f32.mrb[77].mxu1  ;;  %v3298_v26 = vsel %vm1030_vm3, %v3242_v23, -inf }
0x1760   : > { %3299 = vmax.xlane.f32.xlu0 %v3298_v26  ;;  %v3245_v27 = vpop.f32.mrb[78].mxu1  ;;  %v6336_v24 = vld [vmem:[%s5801_s22] sm:$0xff] }
0x1761   : > { %v4950_v28 = vpop.f32.mrb[79].mxu1 }
0x1765   : > { %v3085_v34 = vpop.f32.mrb[72].mxu0 }
0x1766   : > { %v3139_v43 = vpack.c.bf16 %v3133_v30, %v3085_v34  ;;  %v4929_v58 = vpop.f32.mrb[73].mxu0 }
0x1767   : > { %v3088_v19 = vpop.f32.mrb[74].mxu0 }
0x1768   : > { %v4930_v36 = vpop.f32.mrb[75].mxu0  ;;  %4942 = vmatmul.mubr.msk.bf16.vlgmr.msra.gmra.mrb[76].mxu0 %vm937_vm1, %v3139_v43 }
0x1769   : > { %4952 = vmatpush3.bf16.xpose.msra.mxu0 %v3256_v21  ;;  %4953 = vmatprep.mubr.msk.bf16.mxu0 %vm5469_vm0, %v5468_v11 }
0x176a   : > { %4963 = vmatprep.subr.bf16.mxu0 %v5468_v11 }
0x1770   : > { %4954 = vmatmul.mubr.msk.bf16.vlgmr.msra.gmra.mrb[80].mxu0 %vm937_vm1, %v3249_v37  ;;  %v5130_v37 = vld [vmem:[%s5786_s13] ss:$8 sps:$4 sm:$0xff]  }
0x1771   : > { %4965 = vmatprep.mubr.msk.bf16.mxu0 %vm5469_vm0, %v5468_v11 }
0x17ed   : > { %v3300_v3 = vpop.xlane.xlu0 %3299 }
0x17ee   : > { %v3304_v41 = vsub.f32 %v3242_v23, %v3300_v3  ;;  %v5132_v3 = vld [vmem:[%s5786_s13 + $0x4] ss:$8 sps:$4 sm:$0xff]  }
0x17f0   : > { %v3306_v42 = vmul.f32 1.442695, %v3304_v41  ;;  %v5135_v41 = vld [vmem:[%s5786_s13 + $0x14] ss:$8 sps:$4 sm:$0xff]  }
0x17f2   : > { %5230 = vpow2.f32 %v3306_v42  ;;  %v5133_v42 = vld [vmem:[%s5786_s13 + $0x10] ss:$8 sps:$4 sm:$0xff]  }
0x17fc   : > { %v5231_v44 = vpop.eup %5230 }
0x17fd   : > { %v3310_v45 = vsel %vm1030_vm3, %v5231_v44, 0.0 }
0x17fe   : > { %3311 = vadd.xlane.f32.xlu0 %v3310_v45 }
0x183b   : > { %v3189_v18 = vpop.f32.mrb[76].mxu0 }
0x183c   : > { %v3196_v2 = vadd.f32 %v3189_v18, %v6274_v46  ;;  %v4943_v51 = vpop.f32.mrb[77].mxu0 }
0x183d   : > { %v3192_v50 = vpop.f32.mrb[78].mxu0 }
0x183e   : > { %v3197_v35 = vadd.f32 %v3192_v50, %v6276_v47  ;;  %v4944_v52 = vpop.f32.mrb[79].mxu0 }
0x183f   : > { %v5136_v52 = vld [vmem:[%s5786_s13 + $0x20] ss:$8 sps:$4 sm:$0xff]  }
0x1843   : > { %v3292_v48 = vpop.f32.mrb[80].mxu0 }
0x1844   : > { %v4955_v53 = vpop.f32.mrb[81].mxu0  ;;  %v3301_v54 = vsel %vm1030_vm3, %v3292_v48, -inf }
0x1845   : > { %3302 = vmax.xlane.f32.xlu1 %v3301_v54  ;;  %v3295_v56 = vpop.f32.mrb[82].mxu0  ;;  %v5139_v53 = vld [vmem:[%s5786_s13 + $0x30] ss:$8 sps:$4 sm:$0xff]   ;;  %v5144_v54 = vld [vmem:[%s5786_s13 + $0x44] ss:$8 sps:$4 sm:$0xff]  }
0x1846   : > { %v4956_v55 = vpop.f32.mrb[83].mxu0  ;;  %v5142_v56 = vld [vmem:[%s5786_s13 + $0x40] ss:$8 sps:$4 sm:$0xff]  }
0x1847   : > { %v5147_v55 = vld [vmem:[%s5786_s13 + $0x54] ss:$8 sps:$4 sm:$0xff]  }
0x1856   : > { %3370 = vrot.lane.b32.xlu1 %v6156_v29, %s5472_s15 }
0x188b   : > { %v3312_v1 = vpop.xlane.xlu0 %3311 }
0x18d2   : > { %v3303_v59 = vpop.xlane.xlu1 %3302 }
0x18d3   : > { %v3305_v60 = vsub.f32 %v3292_v48, %v3303_v59  ;;  %v5141_v48 = vld [vmem:[%s5786_s13 + $0x34] ss:$8 sps:$4 sm:$0xff]   ;;  %v5145_v59 = vld [vmem:[%s5786_s13 + $0x50] ss:$8 sps:$4 sm:$0xff]  }
0x18d5   : > { %v3308_v61 = vmul.f32 1.442695, %v3305_v60  ;;  %v5148_v60 = vld [vmem:[%s5786_s13 + $0x60] ss:$8 sps:$4 sm:$0xff]  }
0x18d6   : > { %v3371_v62 = vpop.permute.xlu1 %3370 }
0x18d7   : > { %5232 = vpow2.f32 %v3308_v61  ;;  %v3376_v46 = vsel %vm1060_vm2, %v3371_v62, 0  ;;  %v5150_v61 = vld [vmem:[%s5786_s13 + $0x64] ss:$8 sps:$4 sm:$0xff]   ;;  %v5153_v62 = vld [vmem:[%s5786_s13 + $0x74] ss:$8 sps:$4 sm:$0xff]  }
0x18d8   : > { %4964 = vmatpush3.bf16.msra.mxu0 %v3376_v46  ;;  %5234 = vrcp.f32 %v3312_v1  ;;  %v5151_v46 = vld [vmem:[%s5786_s13 + $0x70] ss:$8 sps:$4 sm:$0xff]   ;;  %v5156_v1 = vld [vmem:[%s5796_s3 + $0x48] sm:$0xff]  }
0x18d9   : > { %3624 = vmatprep.subr.bf16.mxu0 %v5132_v3  ;;  %v3538_v3 = vsub.s32 4, %v5864_v38 }
0x18e1   : > { %v5233_v47 = vpop.eup %5232 }
0x18e2   : > { %v3313_v63 = vsel %vm1030_vm3, %v5233_v47, 0.0  ;;  %v5235_v4 = vpop.eup %5234 }
0x18e3   : > { %3314 = vadd.xlane.f32.xlu0 %v3313_v63  ;;  %v3318_v5 = vmul.f32 %v5235_v4, %v5231_v44  ;;  %v5155_v63 = vld [vmem:[%s5796_s3] sm:$0xff]   ;;  %v5157_v4 = vld [vmem:[%s5796_s3 + $0x8] sm:$0xff]  }
0x18e5   : > { %v3320_v13 = vpack.c.bf16 %v3318_v5, %v3318_v5  ;;  %v5159_v5 = vld [vmem:[%s5796_s3 + $0x10] sm:$0xff]  }
0x18f9   : > { %3322 = vrot.lane.b32.xlu0 %v6154_v25, %s5472_s15 }
0x1970   : > { %v3315_v29 = vpop.xlane.xlu0 %3314 }
0x1971   : > { %5236 = vrcp.f32 %v3315_v29  ;;  %v5158_v29 = vld [vmem:[%s5796_s3 + $0x50] sm:$0xff]  }
0x1974   : > { %v3323_v6 = vpop.permute.xlu0 %3322 }
0x1975   : > { %v3328_v9 = vsel %vm1060_vm2, %v3323_v6, 0  ;;  %v5160_v6 = vld [vmem:[%s5796_s3 + $0x58] sm:$0xff]  }
0x1976   : > { %4958 = vmatpush3.bf16.msra.mxu1 %v3328_v9  ;;  %v5161_v9 = vld [vmem:[%s5796_s3 + $0x18] sm:$0xff]  }
0x1977   : > { %4969 = vmatprep.subr.bf16.mxu1 %v5468_v11 }
0x1979   : > { %4960 = vmatmul.mubr.msk.bf16.vlgmr.msra.gmra.mrb[80].mxu1 %vm1030_vm3, %v3320_v13  ;;  %v5162_v13 = vld [vmem:[%s5796_s3 + $0x60] sm:$0xff]  }
0x197a   : > { %4973 = vmatprep.mubr.msk.bf16.mxu1 %vm5469_vm0, %v5468_v11  ;;  %4970 = vmatpush3.bf16.msra.mxu1 %v5128_v16 }
0x197b   : > { %v5237_v25 = vpop.eup %5236  ;;  %4971 = vmatprep.subr.bf16.mxu1 %v5468_v11 }
0x197c   : > { %v3319_v14 = vmul.f32 %v5237_v25, %v5233_v47  ;;  %v5154_v47 = vld [vmem:[%s5796_s3 + $0x40] sm:$0xff]  }
0x197d   : > { %v5163_v25 = vld [vmem:[%s5796_s3 + $0x20] sm:$0xff]  }
0x197e   : > { %v3321_v15 = vpack.c.bf16 %v3319_v14, %v3319_v14  ;;  %4972 = vmatpush3.bf16.msra.mxu1 %v5129_v17  ;;  %v5164_v14 = vld [vmem:[%s5796_s3 + $0x68] sm:$0xff]  }
0x197f   : > { %4659 = vmatprep.subr.bf16.mxu1 %v5154_v47 }
0x1980   : > { %4966 = vmatmul.mubr.msk.bf16.vlgmr.msra.gmra.mrb[84].mxu0 %vm1030_vm3, %v3321_v15 }
0x1981   : > { %3656 = vmatprep.mubr.bf16.mxu0 %v5467_v10  ;;  %v6333_v10 = vsub.s32 3, %v5864_v38  ;;  %3625 = vmatpush1.bf16.msra.mxu0 %v5130_v37  ;;  %v5169_v37 = vld [vmem:[%s5796_s3 + $0x38] sm:$0xff]  }
0x1982   : > { %3626 = vmatprep.subr.bf16.mxu0 %v5135_v41  ;;  %v3539_v41 = vrot.slane %v6336_v24, %v3538_v3 }
0x1983   : > { %v3480_v11 = vrot.slane %v6336_v24, %v6333_v10 }
0x1985   : > { %3627 = vmatpush1.bf16.msra.mxu0 %v5133_v42 }
0x1a4c   : > { %v3364_v20 = vpop.f32.mrb[80].mxu1 }
0x1a4d   : > { %v4961_v49 = vpop.f32.mrb[81].mxu1 }
0x1a4e   : > { %v3367_v31 = vpop.f32.mrb[82].mxu1 }
0x1a4f   : > { %v4962_v30 = vpop.f32.mrb[83].mxu1 }
0x1a50   : > { %v6378_v30 = vld [vmem:[%s5801_s22 + $0x8] sm:$0xff] }
0x1a51   : > { %v3543_v42 = vrot.slane %v6378_v30, %v3538_v3  ;;  %v5259_v3 = vld [vmem:[#allocation8 + $0x20] ss:$16 sps:$4 sm:$0xff] (!%p4512_p4)  }
0x1a53   : > { %v3412_v32 = vpop.f32.mrb[84].mxu0 }
0x1a54   : > { %v3418_v40 = vpack.c.bf16 %v3412_v32, %v3364_v20  ;;  %v4967_v22 = vpop.f32.mrb[85].mxu0  ;;  %v3510_v32 = vrot.slane %v6378_v30, %v6333_v10 }
0x1a55   : > { %v3415_v57 = vpop.f32.mrb[86].mxu0 }
0x1a56   : > { %v4968_v23 = vpop.f32.mrb[87].mxu0  ;;  %4974 = vmatmul.mubr.msk.bf16.vlgmr.msra.gmra.mrb[84].mxu1 %vm937_vm1, %v3418_v40 }
0x1a57   : > { %4660 = vmatpush3.bf16.msra.mxu1 %v5155_v63 }
0x1a58   : > { %4661 = vmatprep.subr.bf16.mxu1 %v5156_v1 }
0x1a5b   : > { %4662 = vmatpush3.bf16.msra.mxu1 %v5157_v4 }
0x1a5c   : > { %4663 = vmatprep.subr.bf16.mxu1 %v5158_v29 }
0x1a5f   : > { %4664 = vmatpush3.bf16.msra.mxu1 %v5159_v5 }
0x1a60   : > { %4665 = vmatprep.subr.bf16.mxu1 %v5160_v6 }
0x1a63   : > { %4666 = vmatpush3.bf16.msra.mxu1 %v5161_v9 }
0x1a64   : > { %4667 = vmatprep.subr.bf16.mxu1 %v5162_v13 }
0x1a67   : > { %4668 = vmatpush3.bf16.msra.mxu1 %v5163_v25 }
0x1a68   : > { %4669 = vmatprep.subr.bf16.mxu1 %v5164_v14 }
0x1b29   : > { %v3468_v26 = vpop.f32.mrb[84].mxu1 }
0x1b2a   : > { %v3475_v27 = vadd.f32 %v3468_v26, %v3196_v2  ;;  %v4975_v28 = vpop.f32.mrb[85].mxu1  ;;  %v6385_v26 = vld [vmem:[%s5801_s22 + $0x10] sm:$0xff] }
0x1b2b   : > { %v3471_v33 = vpop.f32.mrb[86].mxu1 }
0x1b2c   : > { %v3481_v34 = vadd.f32 %v3480_v11, %v3475_v27  ;;  %v3476_v43 = vadd.f32 %v3471_v33, %v3197_v35  ;;  %v4976_v58 = vpop.f32.mrb[87].mxu1  ;;  %v5138_v35 = vld [vmem:[%s5786_s13 + $0x24] ss:$8 sps:$4 sm:$0xff]   ;;  %v3516_v27 = vrot.slane %v6385_v26, %v6333_v10 }
0x1b2d   : > { %3628 = vmatprep.subr.bf16.mxu0 %v5138_v35  ;;  %v5165_v58 = vld [vmem:[%s5796_s3 + $0x28] sm:$0xff]  }
0x1b2e   : > { %v3482_v19 = vadd.f32 %v3480_v11, %v3476_v43  ;;  %v3483_v21 = vadd.f32 %v3481_v34, %v6127_v7  ;;  %3629 = vmatpush1.bf16.msra.mxu0 %v5136_v52  ;;  %4670 = vmatpush3.bf16.msra.mxu1 %v5165_v58  ;;  %v5251_v58 = vld [vmem:[#allocation8 + $0xc] ss:$16 sps:$4 sm:$0xff] (!%p4512_p4)  }
0x1b2f   : > { %3630 = vmatprep.subr.bf16.mxu0 %v5141_v48 }
0x1b30   : > { %3485 = vadd.xlane.f32.xlu1 %v3483_v21  ;;  %v3484_v36 = vadd.f32 %v3482_v19, %v6129_v8  ;;  %v5166_v19 = vld [vmem:[%s5796_s3 + $0x70] sm:$0xff]  }
0x1b31   : > { %4671 = vmatprep.subr.bf16.mxu1 %v5166_v19  ;;  %v5473_v19 = vmov (!%p4512_p4), 0  }
0x1b32   : > { %3487 = vadd.xlane.f32.xlu0 %v3484_v36  ;;  %3631 = vmatpush1.bf16.msra.mxu0 %v5139_v53 }
0x1b33   : > { %3632 = vmatprep.subr.bf16.mxu0 %v5144_v54 }
0x1b36   : > { %3633 = vmatpush1.bf16.msra.mxu0 %v5142_v56 }
0x1b37   : > { %3634 = vmatprep.subr.bf16.mxu0 %v5147_v55  ;;  %v3707_v55 = vsub.s32 5, %v5864_v38 }
0x1b3a   : > { %3635 = vmatpush1.bf16.msra.mxu0 %v5145_v59 }
0x1b3b   : > { %3636 = vmatprep.subr.bf16.mxu0 %v5150_v61 }
0x1b3e   : > { %3637 = vmatpush1.bf16.msra.mxu0 %v5148_v60  ;;  %v3708_v60 = vrot.slane %v6336_v24, %v3707_v55 }
0x1b3f   : > { %3638 = vmatprep.subr.bf16.mxu0 %v5153_v62 }
0x1b42   : > { %3639 = vmatpush1.bf16.msra.mxu0 %v5151_v46 }
0x1bbd   : > { %v3486_v44 = vpop.xlane.xlu1 %3485 }
0x1bbe   : > { %v3489_v45 = vmul.f32 0.0078125, %v3486_v44 }
0x1bbf   : > { %v3488_v18 = vpop.xlane.xlu0 %3487 }
0x1bc0   : > { %v6346_v7 = vsub.f32 %v3483_v21, %v3489_v45  ;;  %v3490_v8 = vmul.f32 0.0078125, %v3488_v18  ;;  %v5167_v21 = vld [vmem:[%s5796_s3 + $0x30] sm:$0xff]  }
0x1bc1   : > { %4672 = vmatpush3.bf16.msra.mxu1 %v5167_v21  ;;  %v5254_v21 = vld [vmem:[#allocation8 + $0x8] ss:$16 sps:$4 sm:$0xff] (!%p4512_p4)  }
0x1bc2   : > { %v6348_v2 = vsub.f32 %v3484_v36, %v3490_v8  ;;  %v3493_v51 = vmul.f32 %v6346_v7, %v6346_v7  ;;  %v5168_v36 = vld [vmem:[%s5796_s3 + $0x78] sm:$0xff]   ;;  %s6522_s3 = sld [smem:[#allocation24_spill]] (!%p4512_p4) }
0x1bc3   : > { %4673 = vmatprep.subr.bf16.mxu1 %v5168_v36  ;;  %v5255_v36 = vld [vmem:[#allocation8 + $0x24] ss:$16 sps:$4 sm:$0xff] (!%p4512_p4)  }
0x1bc4   : > { %3495 = vadd.xlane.f32.xlu0 %v3493_v51  ;;  %v3494_v50 = vmul.f32 %v6348_v2, %v6348_v2 }
0x1bc5   : > { %4674 = vmatpush3.bf16.msra.mxu1 %v5169_v37  ;;  %v5257_v37 = vld [vmem:[#allocation8 + $0x2c] ss:$16 sps:$4 sm:$0xff] (!%p4512_p4)  }
0x1bc6   : > { %3497 = vadd.xlane.f32.xlu1 %v3494_v50  ;;  %4146 = vmatprep.subr.bf16.mxu1 (!%p4512_p4), %v5251_v58 }
0x1c51   : > { %v3496_v15 = vpop.xlane.xlu0 %3495 }
0x1c52   : > { %v3499_v16 = vmul.f32 0.0078125, %v3496_v15 }
0x1c53   : > { %v3498_v17 = vpop.xlane.xlu1 %3497 }
0x1c54   : > { %v3501_v20 = vadd.f32 1e-05, %v3499_v16  ;;  %v3500_v49 = vmul.f32 0.0078125, %v3498_v17 }
0x1c56   : > { %5238 = vrsqrt.f32 %v3501_v20  ;;  %v3502_v31 = vadd.f32 1e-05, %v3500_v49 }
0x1c58   : > { %5240 = vrsqrt.f32 %v3502_v31 }
0x1c60   : > { %v5239_v40 = vpop.eup %5238 }
0x1c61   : > { %v3505_v22 = vmul.f32 %v5239_v40, %v6346_v7  ;;  %v3873_v40 = vrot.slane %v6378_v30, %v3707_v55  ;;  %v5249_v30 = vld [vmem:[#allocation8 + $0x4] ss:$16 sps:$4 sm:$0xff] (!%p4512_p4)  }
0x1c62   : > { %v5241_v57 = vpop.eup %5240  ;;  %4103 = vmatprep.subr.bf16.mxu0 (!%p4512_p4), %v5249_v30 }
0x1c63   : > { %v3506_v23 = vmul.f32 %v5241_v57, %v6348_v2  ;;  %v3511_v11 = vmul.f32 %v3510_v32, %v3505_v22  ;;  %v3879_v57 = vrot.slane %v6385_v26, %v3707_v55  ;;  %v5253_v26 = vld [vmem:[#allocation8] ss:$16 sps:$4 sm:$0xff] (!%p4512_p4)   ;;  %v5284_v55 = vld [vmem:[#allocation8 + $0xa8] ss:$16 sps:$4 sm:$0xff] (!%p4512_p4)  }
0x1c65   : > { %v3512_v28 = vmul.f32 %v3510_v32, %v3506_v23  ;;  %v3517_v33 = vadd.f32 %v3516_v27, %v3511_v11 }
0x1c67   : > { %v3518_v34 = vadd.f32 %v3516_v27, %v3512_v28 }
0x1c69   : > { %v3519_v43 = vpack.c.bf16 %v3518_v34, %v3517_v33 }
0x1c6b   : > { %3657 = vmatmul.mubr.bf16.vlgmr.msra.gmra.mrb[88].mxu0 %v3519_v43 }
0x1c6c   : > { %4135 = vmatprep.mubr.bf16.mxu0 (!%p4512_p4), %v5473_v19  ;;  %4104 = vmatpush1.bf16.msra.mxu0 (!%p4512_p4), %v5253_v26 }
0x1c6d   : > { %4105 = vmatprep.subr.bf16.mxu0 (!%p4512_p4), %v5255_v36 }
0x1c70   : > { %4106 = vmatpush1.bf16.msra.mxu0 (!%p4512_p4), %v5259_v3 }
0x1d3e   : > { %v3658_v44 = vpop.f32.mrb[88].mxu0 }
0x1d3f   : > { %v3659_v45 = vadd.f32 %v3658_v44, %v3539_v41  ;;  %v3660_v18 = vpop.f32.mrb[89].mxu0  ;;  %v5263_v44 = vld [vmem:[#allocation8 + $0x4c] ss:$16 sps:$4 sm:$0xff] (!%p4512_p4)  }
0x1d40   : > { %v3661_v7 = vadd.f32 %v3660_v18, %v3543_v42  ;;  %v3662_v8 = vpop.f32.mrb[90].mxu0  ;;  %v5266_v18 = vld [vmem:[#allocation8 + $0x48] ss:$16 sps:$4 sm:$0xff] (!%p4512_p4)  }
0x1d41   : > { %v3663_v2 = vadd.f32 %v3662_v8, %v3539_v41  ;;  %v3664_v51 = vpop.f32.mrb[91].mxu0  ;;  %v3667_v35 = vmax.f32 %v3659_v45, 0.0  ;;  %v5260_v41 = vld [vmem:[#allocation8 + $0x28] ss:$16 sps:$4 sm:$0xff] (!%p4512_p4)   ;;  %v5265_v45 = vld [vmem:[#allocation8 + $0x40] ss:$16 sps:$4 sm:$0xff] (!%p4512_p4)  }
0x1d42   : > { %v3665_v50 = vadd.f32 %v3664_v51, %v3543_v42  ;;  %v3668_v48 = vmax.f32 %v3661_v7, 0.0  ;;  %v5261_v42 = vld [vmem:[#allocation8 + $0x44] ss:$16 sps:$4 sm:$0xff] (!%p4512_p4)   ;;  %v5269_v8 = vld [vmem:[#allocation8 + $0x6c] ss:$16 sps:$4 sm:$0xff] (!%p4512_p4)  }
0x1d43   : > { %v3669_v52 = vmax.f32 %v3663_v2, 0.0  ;;  %v5267_v7 = vld [vmem:[#allocation8 + $0x64] ss:$16 sps:$4 sm:$0xff] (!%p4512_p4)   ;;  %4107 = vmatprep.subr.bf16.mxu0 (!%p4512_p4), %v5261_v42  ;;  %v5271_v2 = vld [vmem:[#allocation8 + $0x60] ss:$16 sps:$4 sm:$0xff] (!%p4512_p4)  }
0x1d44   : > { %v3670_v53 = vmax.f32 %v3665_v50, 0.0  ;;  %4108 = vmatpush1.bf16.msra.mxu0 (!%p4512_p4), %v5265_v45  ;;  %v5272_v51 = vld [vmem:[#allocation8 + $0x68] ss:$16 sps:$4 sm:$0xff] (!%p4512_p4)   ;;  %v5273_v50 = vld [vmem:[#allocation8 + $0x84] ss:$16 sps:$4 sm:$0xff] (!%p4512_p4)  }
0x1d45   : > { %v3671_v54 = vpack.c.bf16 %v3669_v52, %v3667_v35  ;;  %4109 = vmatprep.subr.bf16.mxu0 (!%p4512_p4), %v5267_v7  ;;  %v5275_v35 = vld [vmem:[#allocation8 + $0x8c] ss:$16 sps:$4 sm:$0xff] (!%p4512_p4)   ;;  %v5277_v52 = vld [vmem:[#allocation8 + $0x80] ss:$16 sps:$4 sm:$0xff] (!%p4512_p4)  }
0x1d46   : > { %v3672_v56 = vpack.c.bf16 %v3670_v53, %v3668_v48  ;;  %v5278_v48 = vld [vmem:[#allocation8 + $0x88] ss:$16 sps:$4 sm:$0xff] (!%p4512_p4)   ;;  %v5279_v53 = vld [vmem:[#allocation8 + $0xa4] ss:$16 sps:$4 sm:$0xff] (!%p4512_p4)  }
0x1d48   : > { %3837 = vmatprep.mubr.bf16.mxu1 %v3672_v56  ;;  %4110 = vmatpush1.bf16.msra.mxu0 (!%p4512_p4), %v5271_v2  ;;  %v5283_v56 = vld [vmem:[#allocation8 + $0xa0] ss:$16 sps:$4 sm:$0xff] (!%p4512_p4)  }
0x1d49   : > { %3838 = vmatmul.mubr.bf16.vlgmr.msra.gmra.mrb[88].mxu1 %v3671_v54  ;;  %4111 = vmatprep.subr.bf16.mxu0 (!%p4512_p4), %v5273_v50  ;;  %v5281_v54 = vld [vmem:[#allocation8 + $0xac] ss:$16 sps:$4 sm:$0xff] (!%p4512_p4)  }
0x1d4a   : > { %4178 = vmatprep.mubr.bf16.mxu1 (!%p4512_p4), %v5473_v19  ;;  %4147 = vmatpush1.bf16.msra.mxu1 (!%p4512_p4), %v5254_v21 }
0x1d4b   : > { %4148 = vmatprep.subr.bf16.mxu1 (!%p4512_p4), %v5257_v37 }
0x1d4c   : > { %4112 = vmatpush1.bf16.msra.mxu0 (!%p4512_p4), %v5277_v52 }
0x1d4d   : > { %4113 = vmatprep.subr.bf16.mxu0 (!%p4512_p4), %v5279_v53 }
0x1d4e   : > { %4149 = vmatpush1.bf16.msra.mxu1 (!%p4512_p4), %v5260_v41 }
0x1d4f   : > { %4150 = vmatprep.subr.bf16.mxu1 (!%p4512_p4), %v5263_v44 }
0x1d50   : > { %4114 = vmatpush1.bf16.msra.mxu0 (!%p4512_p4), %v5283_v56 }
0x1d52   : > { %4151 = vmatpush1.bf16.msra.mxu1 (!%p4512_p4), %v5266_v18 }
0x1d53   : > { %4152 = vmatprep.subr.bf16.mxu1 (!%p4512_p4), %v5269_v8 }
0x1d56   : > { %4153 = vmatpush1.bf16.msra.mxu1 (!%p4512_p4), %v5272_v51 }
0x1d57   : > { %4154 = vmatprep.subr.bf16.mxu1 (!%p4512_p4), %v5275_v35 }
0x1d5a   : > { %4155 = vmatpush1.bf16.msra.mxu1 (!%p4512_p4), %v5278_v48 }
0x1d5b   : > { %4156 = vmatprep.subr.bf16.mxu1 (!%p4512_p4), %v5281_v54 }
0x1d5e   : > { %4157 = vmatpush1.bf16.msra.mxu1 (!%p4512_p4), %v5284_v55 }
0x1e1c   : > { %v4675_v59 = vpop.f32.mrb[88].mxu1 }
0x1e1d   : > { %v4676_v61 = vpop.f32.mrb[89].mxu1 }
0x1e1e   : > { %v4677_v62 = vadd.f32 %v4676_v61, %v4675_v59  ;;  %v4678_v46 = vpop.f32.mrb[90].mxu1  ;;  %v5285_v59 = vld [vmem:[#allocation8 + $0xc4] ss:$16 sps:$4 sm:$0xff] (!%p4512_p4)   ;;  %v5289_v61 = vld [vmem:[#allocation8 + $0xc0] ss:$16 sps:$4 sm:$0xff] (!%p4512_p4)  }
0x1e1f   : > { %v4679_v47 = vpop.f32.mrb[91].mxu1  ;;  %4115 = vmatprep.subr.bf16.mxu0 (!%p4512_p4), %v5285_v59 }
0x1e20   : > { %v3840_v63 = vadd.f32 %v4677_v62, %v3708_v60  ;;  %v4680_v1 = vadd.f32 %v4679_v47, %v4678_v46  ;;  %v5290_v62 = vld [vmem:[#allocation8 + $0xc8] ss:$16 sps:$4 sm:$0xff] (!%p4512_p4)   ;;  %v5291_v46 = vld [vmem:[#allocation8 + $0xe4] ss:$16 sps:$4 sm:$0xff] (!%p4512_p4)   ;;  %v5293_v47 = vld [vmem:[#allocation8 + $0xec] ss:$16 sps:$4 sm:$0xff] (!%p4512_p4)   ;;  %4116 = vmatpush1.bf16.msra.mxu0 (!%p4512_p4), %v5289_v61 }
0x1e21   : > { %4117 = vmatprep.subr.bf16.mxu0 (!%p4512_p4), %v5291_v46 }
0x1e22   : > { %v3843_v4 = vadd.f32 %v4680_v1, %v3708_v60  ;;  %v3846_v29 = vadd.f32 %v3840_v63, %v3517_v33  ;;  %v5287_v60 = vld [vmem:[#allocation8 + $0xcc] ss:$16 sps:$4 sm:$0xff] (!%p4512_p4)   ;;  %v5295_v63 = vld [vmem:[#allocation8 + $0xe0] ss:$16 sps:$4 sm:$0xff] (!%p4512_p4)   ;;  %v5296_v1 = vld [vmem:[#allocation8 + $0xe8] ss:$16 sps:$4 sm:$0xff] (!%p4512_p4)  }
0x1e23   : > { %4158 = vmatprep.subr.bf16.mxu1 (!%p4512_p4), %v5287_v60 }
0x1e24   : > { %3848 = vadd.xlane.f32.xlu0 %v3846_v29  ;;  %v3847_v5 = vadd.f32 %v3843_v4, %v3518_v34  ;;  %4159 = vmatpush1.bf16.msra.mxu1 (!%p4512_p4), %v5290_v62 }
0x1e25   : > { %4160 = vmatprep.subr.bf16.mxu1 (!%p4512_p4), %v5293_v47  ;;  %4118 = vmatpush1.bf16.msra.mxu0 (!%p4512_p4), %v5295_v63 }
0x1e26   : > { %3850 = vadd.xlane.f32.xlu1 %v3847_v5 }
0x1e28   : > { %4161 = vmatpush1.bf16.msra.mxu1 (!%p4512_p4), %v5296_v1 }
0x1eb1   : > { %v3849_v6 = vpop.xlane.xlu0 %3848 }
0x1eb2   : > { %v3852_v9 = vmul.f32 0.0078125, %v3849_v6 }
0x1eb3   : > { %v3851_v13 = vpop.xlane.xlu1 %3850 }
0x1eb4   : > { %v3854_v25 = vsub.f32 %v3846_v29, %v3852_v9  ;;  %v3853_v14 = vmul.f32 0.0078125, %v3851_v13  ;;  %v3921_v29 = vld [vmem:[%s6521_s21] sm:$0xf] (!%p4512_p4) }
0x1eb5   : > { %v3934_v6 = vrot.slane (!%p4512_p4), %v3921_v29, %v6136_v12  ;;  %v3930_v9 = vrot.slane (!%p4512_p4), %v3921_v29, %v6076_v0  ;;  %v3938_v13 = vrot.slane (!%p4512_p4), %v3921_v29, %v6333_v10 }
0x1eb6   : > { %v3855_v38 = vsub.f32 %v3847_v5, %v3853_v14  ;;  %v3856_v15 = vmul.f32 %v3854_v25, %v3854_v25  ;;  %v3926_v5 = vrot.slane (!%p4512_p4), %v3921_v29, %v5867_v39 }
0x1eb8   : > { %3858 = vadd.xlane.f32.xlu0 %v3856_v15  ;;  %v3857_v24 = vmul.f32 %v3855_v38, %v3855_v38 }
0x1eba   : > { %3860 = vadd.xlane.f32.xlu1 %v3857_v24 }
0x1f45   : > { %v3859_v16 = vpop.xlane.xlu0 %3858 }
0x1f46   : > { %v3862_v17 = vmul.f32 0.0078125, %v3859_v16 }
0x1f47   : > { %v3861_v20 = vpop.xlane.xlu1 %3860 }
0x1f48   : > { %v3864_v49 = vadd.f32 1e-05, %v3862_v17  ;;  %v3863_v31 = vmul.f32 0.0078125, %v3861_v20 }
0x1f4a   : > { %5242 = vrsqrt.f32 %v3864_v49  ;;  %v3865_v32 = vadd.f32 1e-05, %v3863_v31 }
0x1f4c   : > { %5244 = vrsqrt.f32 %v3865_v32 }
0x1f54   : > { %v5243_v22 = vpop.eup %5242 }
0x1f55   : > { %v3868_v23 = vmul.f32 %v5243_v22, %v3854_v25 }
0x1f56   : > { %v5245_v11 = vpop.eup %5244 }
0x1f57   : > { %v3874_v27 = vmul.f32 %v3873_v40, %v3868_v23  ;;  %v3869_v28 = vmul.f32 %v5245_v11, %v3855_v38  ;;  %3887 = sbr.rel (%p4512_p4) target bundleno = 8249 (0x2039), region = 96 }
0x1f59   : > { %v6401_v33 = vadd.f32 %v3879_v57, %v3874_v27  ;;  %v3875_v34 = vmul.f32 %v3873_v40, %v3869_v28 }
0x1f5b   : > { %3882 = vst [vmem:[#allocation2] sm:$0xff] %v6401_v33  ;;  %v6404_v43 = vadd.f32 %v3879_v57, %v3875_v34 }
0x1f5d   : > { %3883 = vst [vmem:[#allocation2 + $0x8] sm:$0xff] %v6404_v43  ;;  %v3888_v4 = vpack.c.bf16 (!%p4512_p4), %v6404_v43, %v6401_v33 }
0x1f5f   : > { %4136 = vmatmul.mubr.bf16.vlgmr.msra.gmra.mrb[0].mxu0 %v3888_v4  ;;  %4179 = vmatmul.mubr.bf16.vlgmr.msra.gmra.mrb[0].mxu1 %v3888_v4 }
0x2032   : > { %v4137_v25 = vpop.f32.mrb[0].mxu0  ;;  %v4180_v14 = vpop.f32.mrb[0].mxu1 }
0x2033   : > { %v4138_v38 = vadd.f32 %v4137_v25, %v3926_v5  ;;  %v4181_v15 = vadd.f32 %v4180_v14, %v3934_v6  ;;  %v4139_v24 = vpop.f32.mrb[1].mxu0  ;;  %v4182_v16 = vpop.f32.mrb[1].mxu1 }
0x2034   : > { %v4140_v17 = vadd.f32 %v4139_v24, %v3930_v9  ;;  %v4183_v20 = vadd.f32 %v4182_v16, %v3938_v13  ;;  %v4141_v49 = vpop.f32.mrb[2].mxu0  ;;  %v4184_v31 = vpop.f32.mrb[2].mxu1 }
0x2035   : > { %4189 = vst [vmem:[%s6522_s3] sm:$0xff] %v4138_v38  ;;  %4191 = vst [vmem:[%s6522_s3 + $0x10] sm:$0xff] %v4181_v15  ;;  %v4142_v39 = vadd.f32 %v4141_v49, %v3926_v5  ;;  %v4185_v0 = vadd.f32 %v4184_v31, %v3934_v6  ;;  %v4143_v12 = vpop.f32.mrb[3].mxu0  ;;  %v4186_v10 = vpop.f32.mrb[3].mxu1 }
0x2036   : > { %4190 = vst [vmem:[%s6522_s3 + $0x8] sm:$0xff] %v4140_v17  ;;  %4192 = vst [vmem:[%s6522_s3 + $0x18] sm:$0xff] %v4183_v20  ;;  %v4144_v32 = vadd.f32 %v4143_v12, %v3930_v9  ;;  %v4187_v40 = vadd.f32 %v4186_v10, %v3938_v13 }
0x2037   : > { %4193 = vst [vmem:[%s6522_s3 + $0x20] sm:$0xff] %v4142_v39  ;;  %4195 = vst [vmem:[%s6522_s3 + $0x30] sm:$0xff] %v4185_v0 }
0x2038   : > { %4194 = vst [vmem:[%s6522_s3 + $0x28] sm:$0xff] %v4144_v32  ;;  %4196 = vst [vmem:[%s6522_s3 + $0x38] sm:$0xff] %v4187_v40 }
0x2039 PF: > { %s6523_s28 = sld [smem:[#allocation13_spill]]  ;;  %s6524_s12 = sld [smem:[#allocation14_spill]] }
0x203a   : > { %s6525_s25 = smov %s5449_s26  ;;  %s6526_s26 = smov %s5453_s27 }
0x203f   : > { %p27_p5 = scmp.ge.s32.totalorder %s6523_s28, 4   ;;  %s6527_s27 = smov %s6524_s12 }
0x2041   :  { %29 = sbr.rel (!%p27_p5) target bundleno = 17 (0x11), region = 159 }
0x2048   :  { %4208 = vsyncpa [#allocation4], 1 }
0x2049   :  { %4210 = vsyncpa [#allocation4 + $0x1], 1 }
0x204a   :  { %4211 = vsyncpa [#allocation6], 1 }
0x204b   :  { %4213 = vsyncpa [#allocation6 + $0x1], 1 }
0x204c   :  { %4214 = vsyncpa [#allocation9], 1 }

</bundles_post_ra>
